<compile_context>
chip_gen: v5e
topology: v5e:2x2
jax: 0.10.0
libtpu: 0.0.40
codegen_flags: <defaults>
</compile_context>

<pallas_src>
import jax
import jax.numpy as jnp
from jax.experimental import pallas as pl
from jax.experimental.pallas import tpu as pltpu

D_IN = 784      # 28*28 MNIST
D_H = 400
D_Z = 20
D_Z2 = 2 * D_Z  # fused [mu | logvar] width


def vae_kernel(x_ref, eps_ref,
               w1_ref, b1_ref,
               w2122_ref, b2122_ref,
               w3_ref, b3_ref,
               w4_ref, b4_ref,
               recon_ref, mulv_ref):
    bf16 = jnp.bfloat16
    x = x_ref[...]                                        # (tB, 784) bf16 (streamed bf16)

    # ---- encode: fc1 + ReLU (bf16 operands, f32 accumulation) ----
    h1 = jnp.dot(x, w1_ref[...],
                 preferred_element_type=jnp.float32) + b1_ref[...]
    h1 = jnp.maximum(h1, 0.0)                             # (tB, 400) f32

    # ---- fused fc21 || fc22 -> [mu | logvar] in one MXU pass ----
    mulv = jnp.dot(h1.astype(bf16), w2122_ref[...],
                   preferred_element_type=jnp.float32) + b2122_ref[...]   # (tB, 40) f32
    mu = mulv[:, :D_Z]
    logvar = mulv[:, D_Z:]

    # ---- reparametrize: z = eps * exp(0.5 * logvar) + mu (all f32) ----
    z = eps_ref[...] * jnp.exp(0.5 * logvar) + mu         # (tB, 20) f32

    # ---- decode: fc3 + ReLU, fc4 + sigmoid ----
    h3 = jnp.dot(z.astype(bf16), w3_ref[...],
                 preferred_element_type=jnp.float32) + b3_ref[...]
    h3 = jnp.maximum(h3, 0.0)                             # (tB, 400) f32
    logits = jnp.dot(h3.astype(bf16), w4_ref[...],
                     preferred_element_type=jnp.float32) + b4_ref[...]    # (tB, 784) f32

    recon_ref[...] = jax.nn.sigmoid(logits).astype(recon_ref.dtype)       # store bf16
    mulv_ref[...] = mulv                                                   # store f32


def _round_up(n, m):
    return (n + m - 1) // m * m


def _choose_tile(B, tile_b_max):
    """Pick a batch tile: multiple of 16 (bf16 packing), dividing B if possible (no pad),
    and keeping >= 4 grid steps when B allows (v7x has 2 TensorCores)."""
    if B % 16 == 0:
        candidates = [t for t in range(16, min(tile_b_max, B) + 1, 16) if B % t == 0]
        if candidates:
            with_4_steps = [t for t in candidates if B // t >= 4]
            return (with_4_steps or candidates)[-1]
    # fallback: padded path (only when B is not a multiple of 16)
    return min(tile_b_max, _round_up(B, 16))


def vae_forward(x, eps, kp, *, tile_b=512):
    """x: (B, 784) f32 or bf16, eps: (B, 20) f32 ~ N(0,1), kp: prepared kernel params.
    Returns (recon[bf16], mu[f32], logvar[f32])."""
    B = x.shape[0]
    x = x.astype(jnp.bfloat16)          # stream x in bf16 (kernel downcasts anyway)
    eps = eps.astype(jnp.float32)

    tile_b = _choose_tile(B, tile_b)
    b_pad = _round_up(B, tile_b)
    if b_pad != B:
        x = jnp.pad(x, ((0, b_pad - B), (0, 0)))
        eps = jnp.pad(eps, ((0, b_pad - B), (0, 0)))
    grid = (b_pad // tile_b,)

    def batch_spec(d):
        return pl.BlockSpec((tile_b, d), lambda i: (i, 0))

    def resident_spec(arr):
        # Same block every grid step -> stays resident in VMEM, no re-DMA per tile.
        return pl.BlockSpec(arr.shape, lambda i: (0, 0))

    weights = (kp["w1"], kp["b1"], kp["w2122"], kp["b2122"],
               kp["w3"], kp["b3"], kp["w4"], kp["b4"])

    flops = 2 * b_pad * (D_IN * D_H + D_H * D_Z2 + D_Z * D_H + D_H * D_IN)
    transcendentals = b_pad * (D_Z + D_IN)      # exp in reparam + sigmoid
    bytes_accessed = (b_pad * D_IN * 2          # x (bf16)
                      + b_pad * D_Z * 4         # eps (f32)
                      + b_pad * D_IN * 2        # recon (bf16)
                      + b_pad * D_Z2 * 4        # [mu|logvar] (f32)
                      + sum(int(w.size) * w.dtype.itemsize for w in weights))

    recon, mulv = pl.pallas_call(
        vae_kernel,
        grid=grid,
        in_specs=[batch_spec(D_IN), batch_spec(D_Z)] + [resident_spec(w) for w in weights],
        out_specs=(batch_spec(D_IN), batch_spec(D_Z2)),
        out_shape=(
            jax.ShapeDtypeStruct((b_pad, D_IN), jnp.bfloat16),   # reconstruction (bf16)
            jax.ShapeDtypeStruct((b_pad, D_Z2), jnp.float32),    # [mu | logvar]
        ),
        compiler_params=pltpu.CompilerParams(
            dimension_semantics=("parallel",),
            vmem_limit_bytes=64 * 1024 * 1024),
        cost_estimate=pl.CostEstimate(
            flops=flops,
            transcendentals=transcendentals,
            bytes_accessed=bytes_accessed),
    )(x, eps, *weights)

    if b_pad != B:
        recon = recon[:B]
        mulv = mulv[:B]
    return recon, mulv[:, :D_Z], mulv[:, D_Z:]


def init_params(key):
    """Deterministic init mirroring PyTorch nn.Linear default: U(-1/sqrt(fan_in), 1/sqrt(fan_in)).
    Weights stored as (in_features, out_features), all f32."""
    def linear(key, fan_in, fan_out):
        kw, kb = jax.random.split(key)
        bound = 1.0 / jnp.sqrt(fan_in)
        w = jax.random.uniform(kw, (fan_in, fan_out), jnp.float32, -bound, bound)
        b = jax.random.uniform(kb, (1, fan_out), jnp.float32, -bound, bound)
        return w, b

    k1, k21, k22, k3, k4 = jax.random.split(key, 5)
    w1, b1 = linear(k1, D_IN, D_H)
    w21, b21 = linear(k21, D_H, D_Z)
    w22, b22 = linear(k22, D_H, D_Z)
    w3, b3 = linear(k3, D_Z, D_H)
    w4, b4 = linear(k4, D_H, D_IN)
    return dict(w1=w1, b1=b1, w21=w21, b21=b21, w22=w22, b22=b22,
                w3=w3, b3=b3, w4=w4, b4=b4)


def prepare_kernel_params(p):
    """One-time prep: fuse fc21/fc22 and cast weights to bf16 (biases stay f32)."""
    bf16 = jnp.bfloat16
    return dict(
        w1=p["w1"].astype(bf16), b1=p["b1"],
        w2122=jnp.concatenate([p["w21"], p["w22"]], axis=1).astype(bf16),
        b2122=jnp.concatenate([p["b21"], p["b22"]], axis=1),
        w3=p["w3"].astype(bf16), b3=p["b3"],
        w4=p["w4"].astype(bf16), b4=p["b4"],
    )


def vae_forward_ref_bf16(x, eps, kp):
    """Pure-JAX reference matching the kernel's bf16-input numerics (recon kept f32)."""
    bf16 = jnp.bfloat16
    xb = x.astype(bf16)
    h1 = jnp.maximum(jnp.dot(xb, kp["w1"],
                             preferred_element_type=jnp.float32) + kp["b1"], 0.0)
    mulv = jnp.dot(h1.astype(bf16), kp["w2122"],
                   preferred_element_type=jnp.float32) + kp["b2122"]
    mu, logvar = mulv[:, :D_Z], mulv[:, D_Z:]
    z = eps * jnp.exp(0.5 * logvar) + mu
    h3 = jnp.maximum(jnp.dot(z.astype(bf16), kp["w3"],
                             preferred_element_type=jnp.float32) + kp["b3"], 0.0)
    recon = jax.nn.sigmoid(jnp.dot(h3.astype(bf16), kp["w4"],
                                   preferred_element_type=jnp.float32) + kp["b4"])
    return recon, mu, logvar


def vae_forward_ref_f32(x, eps, p):
    """Full-precision reference of the original module's math."""
    h1 = jnp.maximum(x @ p["w1"] + p["b1"], 0.0)
    mu = h1 @ p["w21"] + p["b21"]
    logvar = h1 @ p["w22"] + p["b22"]
    z = eps * jnp.exp(0.5 * logvar) + mu
    h3 = jnp.maximum(z @ p["w3"] + p["b3"], 0.0)
    recon = jax.nn.sigmoid(h3 @ p["w4"] + p["b4"])
    return recon, mu, logvar


if __name__ == "__main__":
    key = jax.random.PRNGKey(0)
    k_params, k_x, k_eps = jax.random.split(key, 3)

    B = 64          # small demo batch; tile chooser picks tile_b=16 -> 4-step batch grid
    params = init_params(k_params)
    kparams = prepare_kernel_params(params)

    # synthetic "MNIST" batch in [0, 1), flattened NCHW (B, 1, 28, 28) -> (B, 784)
    x = jax.random.uniform(k_x, (B, 1, 28, 28), jnp.float32).reshape(B, D_IN)
    # reparametrization noise (plays the role of torch.FloatTensor(...).normal_())
    eps = jax.random.normal(k_eps, (B, D_Z), jnp.float32)

    recon, mu, logvar = jax.block_until_ready(vae_forward(x, eps, kparams))

    assert recon.shape == (B, D_IN) and recon.dtype == jnp.bfloat16
    assert mu.shape == (B, D_Z) and logvar.shape == (B, D_Z)

    recon_f32 = recon.astype(jnp.float32)

    # 1) tight check against a bf16-input-matched pure-JAX reference
    #    (recon tolerance covers the bf16 output quantization, ~2^-8 relative)
    r_m, mu_m, lv_m = vae_forward_ref_bf16(x, eps, kparams)
    assert jnp.allclose(recon_f32, r_m, atol=1e-2), "recon mismatch (bf16-matched ref)"
    assert jnp.allclose(mu, mu_m, atol=2e-3), "mu mismatch (bf16-matched ref)"
    assert jnp.allclose(logvar, lv_m, atol=2e-3), "logvar mismatch (bf16-matched ref)"

    # 2) looser semantic check against the full-f32 original-module math
    r_f, mu_f, lv_f = vae_forward_ref_f32(x, eps, params)
    assert jnp.allclose(recon_f32, r_f, atol=5e-2), "recon mismatch (f32 ref)"
    assert jnp.allclose(mu, mu_f, atol=5e-2), "mu mismatch (f32 ref)"
    assert jnp.allclose(logvar, lv_f, atol=5e-2), "logvar mismatch (f32 ref)"

    print("KERNEL_OK")
</pallas_src>

<mosaic_0001>
module attributes {stable_mosaic.version = 11 : i64} {
  func.func @vae_kernel(%arg0: i32, %arg1: memref<16x784xbf16, #tpu.memory_space<vmem>>, %arg2: memref<16x20xf32, #tpu.memory_space<vmem>>, %arg3: memref<784x400xbf16, #tpu.memory_space<vmem>>, %arg4: memref<1x400xf32, #tpu.memory_space<vmem>>, %arg5: memref<400x40xbf16, #tpu.memory_space<vmem>>, %arg6: memref<1x40xf32, #tpu.memory_space<vmem>>, %arg7: memref<20x400xbf16, #tpu.memory_space<vmem>>, %arg8: memref<1x400xf32, #tpu.memory_space<vmem>>, %arg9: memref<400x784xbf16, #tpu.memory_space<vmem>>, %arg10: memref<1x784xf32, #tpu.memory_space<vmem>>, %arg11: memref<16x784xbf16, #tpu.memory_space<vmem>>, %arg12: memref<16x40xf32, #tpu.memory_space<vmem>>) attributes {dimension_semantics = [#tpu.dimension_semantics<parallel>], iteration_bounds = array<i64: 4>, scalar_prefetch = 0 : i64, scratch_operands = 0 : i64, tpu.core_type = #tpu.core_type<tc>, window_params = [{transform_indices = @transform_0, window_bounds = array<i64: 16, 784>}, {transform_indices = @transform_1, window_bounds = array<i64: 16, 20>}, {pipeline_mode = #tpu.pipeline_mode<synchronous>, transform_indices = @transform_2, window_bounds = array<i64: 784, 400>}, {pipeline_mode = #tpu.pipeline_mode<synchronous>, transform_indices = @transform_3, window_bounds = array<i64: 1, 400>}, {pipeline_mode = #tpu.pipeline_mode<synchronous>, transform_indices = @transform_4, window_bounds = array<i64: 400, 40>}, {pipeline_mode = #tpu.pipeline_mode<synchronous>, transform_indices = @transform_5, window_bounds = array<i64: 1, 40>}, {pipeline_mode = #tpu.pipeline_mode<synchronous>, transform_indices = @transform_6, window_bounds = array<i64: 20, 400>}, {pipeline_mode = #tpu.pipeline_mode<synchronous>, transform_indices = @transform_7, window_bounds = array<i64: 1, 400>}, {pipeline_mode = #tpu.pipeline_mode<synchronous>, transform_indices = @transform_8, window_bounds = array<i64: 400, 784>}, {pipeline_mode = #tpu.pipeline_mode<synchronous>, transform_indices = @transform_9, window_bounds = array<i64: 1, 784>}, {transform_indices = @transform_10, window_bounds = array<i64: 16, 784>}, {transform_indices = @transform_11, window_bounds = array<i64: 16, 40>}]} {
    %c0 = arith.constant 0 : index
    %c0_0 = arith.constant 0 : index
    %0 = vector.load %arg1[%c0, %c0_0] : memref<16x784xbf16, #tpu.memory_space<vmem>>, vector<16x784xbf16>
    %c0_1 = arith.constant 0 : index
    %c0_2 = arith.constant 0 : index
    %1 = vector.load %arg3[%c0_1, %c0_2] : memref<784x400xbf16, #tpu.memory_space<vmem>>, vector<784x400xbf16>
    %cst = arith.constant dense<0.000000e+00> : vector<16x400xf32>
    %2 = tpu.matmul %0, %1, %cst {dimension_numbers = #tpu.dot_dimension_numbers<[1], [0], [0], [1], [0, 0, 1, 1], [], []>} : vector<16x784xbf16>, vector<784x400xbf16>, vector<16x400xf32> -> vector<16x400xf32>
    %c0_3 = arith.constant 0 : index
    %c0_4 = arith.constant 0 : index
    %3 = vector.load %arg4[%c0_3, %c0_4] : memref<1x400xf32, #tpu.memory_space<vmem>>, vector<1x400xf32>
    %4 = vector.broadcast %3 : vector<1x400xf32> to vector<16x400xf32>
    %5 = arith.addf %2, %4 : vector<16x400xf32>
    %cst_5 = arith.constant 0.000000e+00 : f32
    %6 = vector.broadcast %cst_5 : f32 to vector<16x400xf32>
    %7 = arith.maximumf %5, %6 : vector<16x400xf32>
    %8 = arith.truncf %7 : vector<16x400xf32> to vector<16x400xbf16>
    %c0_6 = arith.constant 0 : index
    %c0_7 = arith.constant 0 : index
    %9 = vector.load %arg5[%c0_6, %c0_7] : memref<400x40xbf16, #tpu.memory_space<vmem>>, vector<400x40xbf16>
    %cst_8 = arith.constant dense<0.000000e+00> : vector<16x40xf32>
    %10 = tpu.matmul %8, %9, %cst_8 {dimension_numbers = #tpu.dot_dimension_numbers<[1], [0], [0], [1], [0, 0, 1, 1], [], []>} : vector<16x400xbf16>, vector<400x40xbf16>, vector<16x40xf32> -> vector<16x40xf32>
    %c0_9 = arith.constant 0 : index
    %c0_10 = arith.constant 0 : index
    %11 = vector.load %arg6[%c0_9, %c0_10] : memref<1x40xf32, #tpu.memory_space<vmem>>, vector<1x40xf32>
    %12 = vector.broadcast %11 : vector<1x40xf32> to vector<16x40xf32>
    %13 = arith.addf %10, %12 : vector<16x40xf32>
    %14 = vector.extract_strided_slice %13 {offsets = [0, 0], sizes = [16, 20], strides = [1, 1]} : vector<16x40xf32> to vector<16x20xf32>
    %15 = vector.extract_strided_slice %13 {offsets = [0, 20], sizes = [16, 20], strides = [1, 1]} : vector<16x40xf32> to vector<16x20xf32>
    %c0_11 = arith.constant 0 : index
    %c0_12 = arith.constant 0 : index
    %16 = vector.load %arg2[%c0_11, %c0_12] : memref<16x20xf32, #tpu.memory_space<vmem>>, vector<16x20xf32>
    %cst_13 = arith.constant 5.000000e-01 : f32
    %17 = vector.broadcast %cst_13 : f32 to vector<16x20xf32>
    %18 = arith.mulf %17, %15 : vector<16x20xf32>
    %19 = math.exp %18 : vector<16x20xf32>
    %20 = arith.mulf %16, %19 : vector<16x20xf32>
    %21 = arith.addf %20, %14 : vector<16x20xf32>
    %22 = arith.truncf %21 : vector<16x20xf32> to vector<16x20xbf16>
    %c0_14 = arith.constant 0 : index
    %c0_15 = arith.constant 0 : index
    %23 = vector.load %arg7[%c0_14, %c0_15] : memref<20x400xbf16, #tpu.memory_space<vmem>>, vector<20x400xbf16>
    %cst_16 = arith.constant dense<0.000000e+00> : vector<16x400xf32>
    %24 = tpu.matmul %22, %23, %cst_16 {dimension_numbers = #tpu.dot_dimension_numbers<[1], [0], [0], [1], [0, 0, 1, 1], [], []>} : vector<16x20xbf16>, vector<20x400xbf16>, vector<16x400xf32> -> vector<16x400xf32>
    %c0_17 = arith.constant 0 : index
    %c0_18 = arith.constant 0 : index
    %25 = vector.load %arg8[%c0_17, %c0_18] : memref<1x400xf32, #tpu.memory_space<vmem>>, vector<1x400xf32>
    %26 = vector.broadcast %25 : vector<1x400xf32> to vector<16x400xf32>
    %27 = arith.addf %24, %26 : vector<16x400xf32>
    %cst_19 = arith.constant 0.000000e+00 : f32
    %28 = vector.broadcast %cst_19 : f32 to vector<16x400xf32>
    %29 = arith.maximumf %27, %28 : vector<16x400xf32>
    %30 = arith.truncf %29 : vector<16x400xf32> to vector<16x400xbf16>
    %c0_20 = arith.constant 0 : index
    %c0_21 = arith.constant 0 : index
    %31 = vector.load %arg9[%c0_20, %c0_21] : memref<400x784xbf16, #tpu.memory_space<vmem>>, vector<400x784xbf16>
    %cst_22 = arith.constant dense<0.000000e+00> : vector<16x784xf32>
    %32 = tpu.matmul %30, %31, %cst_22 {dimension_numbers = #tpu.dot_dimension_numbers<[1], [0], [0], [1], [0, 0, 1, 1], [], []>} : vector<16x400xbf16>, vector<400x784xbf16>, vector<16x784xf32> -> vector<16x784xf32>
    %c0_23 = arith.constant 0 : index
    %c0_24 = arith.constant 0 : index
    %33 = vector.load %arg10[%c0_23, %c0_24] : memref<1x784xf32, #tpu.memory_space<vmem>>, vector<1x784xf32>
    %34 = vector.broadcast %33 : vector<1x784xf32> to vector<16x784xf32>
    %35 = arith.addf %32, %34 : vector<16x784xf32>
    %36 = arith.negf %35 : vector<16x784xf32>
    %37 = math.exp %36 : vector<16x784xf32>
    %cst_25 = arith.constant 1.000000e+00 : f32
    %38 = vector.broadcast %cst_25 : f32 to vector<16x784xf32>
    %39 = arith.addf %38, %37 : vector<16x784xf32>
    %40 = arith.divf %38, %39 : vector<16x784xf32>
    %41 = arith.truncf %40 : vector<16x784xf32> to vector<16x784xbf16>
    %c0_26 = arith.constant 0 : index
    %c0_27 = arith.constant 0 : index
    %42 = vector.load %arg11[%c0_26, %c0_27] : memref<16x784xbf16, #tpu.memory_space<vmem>>, vector<16x784xbf16>
    tpu.vector_store %arg11[%c0_26, %c0_27], %41 {strides = array<i32>} : memref<16x784xbf16, #tpu.memory_space<vmem>>, vector<16x784xbf16>,
    %c0_28 = arith.constant 0 : index
    %c0_29 = arith.constant 0 : index
    %43 = vector.load %arg12[%c0_28, %c0_29] : memref<16x40xf32, #tpu.memory_space<vmem>>, vector<16x40xf32>
    tpu.vector_store %arg12[%c0_28, %c0_29], %13 {strides = array<i32>} : memref<16x40xf32, #tpu.memory_space<vmem>>, vector<16x40xf32>,
    return
  }
  func.func @transform_0(%arg0: i32) -> (i32, i32) {
    %c0_i32 = arith.constant 0 : i32
    %c0_i32_0 = arith.constant 0 : i32
    return %arg0, %c0_i32 : i32, i32
  }
  func.func @transform_1(%arg0: i32) -> (i32, i32) {
    %c0_i32 = arith.constant 0 : i32
    %c0_i32_0 = arith.constant 0 : i32
    return %arg0, %c0_i32 : i32, i32
  }
  func.func @transform_2(%arg0: i32) -> (i32, i32) {
    %c0_i32 = arith.constant 0 : i32
    %c0_i32_0 = arith.constant 0 : i32
    %c0_i32_1 = arith.constant 0 : i32
    return %c0_i32, %c0_i32_0 : i32, i32
  }
  func.func @transform_3(%arg0: i32) -> (i32, i32) {
    %c0_i32 = arith.constant 0 : i32
    %c0_i32_0 = arith.constant 0 : i32
    %c0_i32_1 = arith.constant 0 : i32
    return %c0_i32, %c0_i32_0 : i32, i32
  }
  func.func @transform_4(%arg0: i32) -> (i32, i32) {
    %c0_i32 = arith.constant 0 : i32
    %c0_i32_0 = arith.constant 0 : i32
    %c0_i32_1 = arith.constant 0 : i32
    return %c0_i32, %c0_i32_0 : i32, i32
  }
  func.func @transform_5(%arg0: i32) -> (i32, i32) {
    %c0_i32 = arith.constant 0 : i32
    %c0_i32_0 = arith.constant 0 : i32
    %c0_i32_1 = arith.constant 0 : i32
    return %c0_i32, %c0_i32_0 : i32, i32
  }
  func.func @transform_6(%arg0: i32) -> (i32, i32) {
    %c0_i32 = arith.constant 0 : i32
    %c0_i32_0 = arith.constant 0 : i32
    %c0_i32_1 = arith.constant 0 : i32
    return %c0_i32, %c0_i32_0 : i32, i32
  }
  func.func @transform_7(%arg0: i32) -> (i32, i32) {
    %c0_i32 = arith.constant 0 : i32
    %c0_i32_0 = arith.constant 0 : i32
    %c0_i32_1 = arith.constant 0 : i32
    return %c0_i32, %c0_i32_0 : i32, i32
  }
  func.func @transform_8(%arg0: i32) -> (i32, i32) {
    %c0_i32 = arith.constant 0 : i32
    %c0_i32_0 = arith.constant 0 : i32
    %c0_i32_1 = arith.constant 0 : i32
    return %c0_i32, %c0_i32_0 : i32, i32
  }
  func.func @transform_9(%arg0: i32) -> (i32, i32) {
    %c0_i32 = arith.constant 0 : i32
    %c0_i32_0 = arith.constant 0 : i32
    %c0_i32_1 = arith.constant 0 : i32
    return %c0_i32, %c0_i32_0 : i32, i32
  }
  func.func @transform_10(%arg0: i32) -> (i32, i32) {
    %c0_i32 = arith.constant 0 : i32
    %c0_i32_0 = arith.constant 0 : i32
    return %arg0, %c0_i32 : i32, i32
  }
  func.func @transform_11(%arg0: i32) -> (i32, i32) {
    %c0_i32 = arith.constant 0 : i32
    %c0_i32_0 = arith.constant 0 : i32
    return %arg0, %c0_i32 : i32, i32
  }
}

</mosaic_0001>

<bundles_post_ra>
// kernel: tpu_custom_call.1
= control target key start
LH: loop header
LB: loop body
LE: loop exit
PB: predicated region body
PF: predicated region fallthrough
CT: control target
= control target key end

     0   :  { %s9444_s0 = inlined_call_operand.vmem [shape: bf16[64,784], index: 0, kind: input, shape index: {}]   ;;  %s9445_s1 = inlined_call_operand.vmem [shape: f32[64,20], index: 1, kind: input, shape index: {}]   ;;  %s9446_s2 = inlined_call_operand.vmem [shape: bf16[784,400], index: 2, kind: input, shape index: {}]   ;;  %s9447_s3 = inlined_call_operand.vmem [shape: f32[1,400], index: 3, kind: input, shape index: {}]   ;;  %s9448_s4 = inlined_call_operand.vmem [shape: bf16[400,40], index: 4, kind: input, shape index: {}]   ;;  %s9449_s5 = inlined_call_operand.vmem [shape: f32[1,40], index: 5, kind: input, shape index: {}]   ;;  %s9450_s6 = inlined_call_operand.vmem [shape: bf16[20,400], index: 6, kind: input, shape index: {}]   ;;  %s9451_s7 = inlined_call_operand.vmem [shape: f32[1,400], index: 7, kind: input, shape index: {}]   ;;  %s9452_s8 = inlined_call_operand.vmem [shape: bf16[400,784], index: 8, kind: input, shape index: {}]   ;;  %s9453_s9 = inlined_call_operand.vmem [shape: f32[1,784], index: 9, kind: input, shape index: {}]   ;;  %s9454_s10 = inlined_call_operand.hbm [shape: bf16[64,784], index: 10, kind: output, shape index: {0}]   ;;  %s9455_s11 = inlined_call_operand.vmem [shape: f32[64,40], index: 11, kind: output, shape index: {1}]  }
   0x1   :  { %9459 = sst [smem:[#allocation8_spill]] %s9444_s0 }
   0x2   :  { %17 = vsyncpa [#allocation3], 0 }
   0x3   :  { %19 = vsyncpa [#allocation3 + $0x1], 0  ;;  %s6715_s17 = smov 0   ;;  %s6717_s18 = smov 0  }
   0x4   :  { %s6719_s19 = smov 0   ;;  %s6721_s20 = smov 0  }
   0x5 LB: > { %9460 = sst [smem:[#allocation5_spill]] %s6646_s19  ;;  %s6736_s21 = sadd.s32 4294967295, %s6650_s20   ;;  %s6650_s20 = sphi %s6721_s20, %s9476_s20   ;;  %s6646_s19 = sphi %s6719_s19, %s9478_s19   ;;  %s6642_s18 = sphi %s6717_s18, %s9480_s18   ;;  %s6638_s17 = sphi %s6715_s17, %s9479_s17  }
   0x6   : > { %s4402_s22 = sadd.s32 4294967294, %s6650_s20   ;;  %s6740_s23 = sadd.s32 1, %s6650_s20  }
   0x7   : > { %9461 = sst [smem:[#allocation6_spill]] %s6740_s23  ;;  %s252_s24 = sadd.s32 1, %s6646_s19 }
   0x8   : > { %s249_s25 = ssub.s32 %s6650_s20, %s6740_s23  ;;  %p262_p0 = scmp.ne.s32.totalorder %s6646_s19, %s6642_s18 }
   0x9   : > { %p250_p1 = scmp.eq.s32.totalorder %s249_s25, 0  ;;  %p263_p2 = scmp.eq.s32.totalorder %s6736_s21, 3 }
   0xa   : > { %p268_p3 = scmp.ne.s32.totalorder %s6642_s18, %s6638_s17  ;;  %p269_p4 = scmp.eq.s32.totalorder %s4402_s22, 3 }
   0xb   : > { %s6751_s26 = scalar_select %p250_p1, %s6646_s19, %s252_s24  }
   0xc   : > { %p6753_p5 = por %p263_p2, %p262_p0  ;;  %p6757_p6 = por %p269_p4, %p268_p3 }
   0xd   : > { %9462 = sst [smem:[#allocation7_spill]] %s6751_s26  ;;  %p4405_p7 = scmp.ge.s32.totalorder %s6650_s20, 1 }
   0xe   : > { %p356_p8 = scmp.lt.s32.totalorder %s6650_s20, 5 }
  0x10   : > { %p357_p9 = pnand %p4405_p7, %p356_p8 }
  0x11   : > { %s4406_s19 = sshll.u32 (!%p357_p9), %s6736_s21, 1  ;;  %s9465_s0 = sld [smem:[#allocation8_spill]] (!%p357_p9) }
  0x12   : > { %360 = sbr.rel (%p357_p9) target bundleno = 1101 (0x44d), region = 60  ;;  %p408_p10 = scmp.lt.s32.totalorder (!%p357_p9), %s4406_s19, 7 }
  0x13   : > { %s6652_s12 = smov (!%p357_p9), 108   ;;  %s6484_s16 = smul.u32 (!%p357_p9), 56, %s6736_s21 }
  0x15   : > { %s4295_s23 = scalar_lea.hbm (!%p357_p9), %s9454_s10, %s6484_s16 }
  0x17   : > { %v4554_v0 = vld [vmem:[%s9446_s2 + $0xe0] sm:$0xf]  ;;  %v6112_v1 = vld [vmem:[%s9446_s2 + $0xec] sm:$0xf0]  ;;  %s9482_s19 = smov (!%p408_p10, %s4406_s19), 7  ;;  %vm1657_vm0 = vcmask 130048  }
  0x18   : > { %v4682_v2 = vld [vmem:[%s9446_s2 + $0x1e0] sm:$0xf]  ;;  %v4555_v3 = vor.u32 %v6112_v1, %v4554_v0  ;;  %v6144_v4 = vld [vmem:[%s9446_s2 + $0x1ec] sm:$0xf0]  ;;  %s6483_s29 = smul.u32 28, %s9482_s19  ;;  %s4409_s26 = sshll.u32 %s9482_s19, 3 }
  0x19   : > { %v4810_v5 = vld [vmem:[%s9446_s2 + $0x2e0] sm:$0xf]  ;;  %v6176_v6 = vld [vmem:[%s9446_s2 + $0x2ec] sm:$0xf0]  ;;  %v4683_v7 = vor.u32 %v6144_v4, %v4682_v2  ;;  %s425_s30 = scalar_lea.vmem %s9455_s11, %s4409_s26  ;;  %vm4274_vm1 = vcmask 326656   ;;  %vm2399_vm2 = vcmask 1041408   ;;  %s418_s15 = scalar_lea.vmem %s9445_s1, %s4409_s26 }
  0x1a   : > { %v4811_v8 = vor.u32 %v6176_v6, %v4810_v5  ;;  %v4938_v9 = vld [vmem:[%s9446_s2 + $0x3e0] sm:$0xf]  ;;  %v6208_v10 = vld [vmem:[%s9446_s2 + $0x3ec] sm:$0xf0]  ;;  %1661 = vmatpush.bf16.msra.mxu0 %v4555_v3  ;;  %s7001_s13 = scalar_lea.vmem %s9465_s0, %s6483_s29  ;;  %vm2395_vm3 = vcmask 162816   ;;  %s4298_s29 = sshll.u32 %s4295_s23, 4  ;;  %s4299_s29 = int_to_ptr.hbm [resolvable:$true] %s4298_s29 }
  0x1b   : > { %v4538_v11 = vld [vmem:[%s9446_s2 + $0xc0] sm:$0xf]  ;;  %v4939_v12 = vor.u32 %v6208_v10, %v4938_v9  ;;  %v6108_v13 = vld [vmem:[%s9446_s2 + $0xcc] sm:$0xf0]  ;;  %1675 = vmatpush.bf16.msra.mxu1 %v4683_v7  ;;  %s6602_s19 = sshra.s32 %s4299_s29, 4  ;;  %s6603_s19 = int_to_ptr.hbm [resolvable:$true] %s6602_s19 }
  0x1c   : > { %v4666_v14 = vld [vmem:[%s9446_s2 + $0x1c0] sm:$0xf]  ;;  %v6140_v15 = vld [vmem:[%s9446_s2 + $0x1cc] sm:$0xf0]  ;;  %1689 = vmatpush.bf16.msra.mxu2 %v4811_v8  ;;  %v4539_v16 = vor.u32 %v6108_v13, %v4538_v11  ;;  %s6604_s25 = scalar_lea.hbm %s6603_s19, 56  ;;  %p6609_p0 = scmp.lt.s32.totalorder %s6603_s19, %s9454_s10 }
  0x1d   : > { %v4667_v17 = vor.u32 %v6140_v15, %v4666_v14  ;;  %v4794_v18 = vld [vmem:[%s9446_s2 + $0x2c0] sm:$0xf]  ;;  %v6172_v19 = vld [vmem:[%s9446_s2 + $0x2cc] sm:$0xf0]  ;;  %1703 = vmatpush.bf16.msra.mxu3 %v4939_v12  ;;  %p6605_p11 = scmp.ne.s32.totalorder %s6603_s19, %s6604_s25 }
  0x1e   : > { %v4922_v20 = vld [vmem:[%s9446_s2 + $0x3c0] sm:$0xf]  ;;  %v4795_v21 = vor.u32 %v6172_v19, %v4794_v18  ;;  %v6204_v22 = vld [vmem:[%s9446_s2 + $0x3cc] sm:$0xf0]  ;;  %1662 = vmatpush.bf16.msra.mxu0 %v4539_v16 }
  0x1f   : > { %v4522_v23 = vld [vmem:[%s9446_s2 + $0xa0] sm:$0xf]  ;;  %v6104_v24 = vld [vmem:[%s9446_s2 + $0xac] sm:$0xf0]  ;;  %v4923_v25 = vor.u32 %v6204_v22, %v4922_v20  ;;  %1676 = vmatpush.bf16.msra.mxu1 %v4667_v17  ;;  %p6606_p12 = pnand %p6605_p11, %p6753_p5 }
  0x20   : > { %v4650_v26 = vld [vmem:[%s9446_s2 + $0x1a0] sm:$0xf]  ;;  %v6136_v27 = vld [vmem:[%s9446_s2 + $0x1ac] sm:$0xf0]  ;;  %v4523_v29 = vor.u32 %v6104_v24, %v4522_v23  ;;  %1690 = vmatpush.bf16.msra.mxu2 %v4795_v21 }
  0x21   : > { %v4778_v28 = vld [vmem:[%s9446_s2 + $0x2a0] sm:$0xf]  ;;  %v6168_v30 = vld [vmem:[%s9446_s2 + $0x2ac] sm:$0xf0]  ;;  %v4651_v33 = vor.u32 %v6136_v27, %v4650_v26  ;;  %1704 = vmatpush.bf16.msra.mxu3 %v4923_v25  ;;  %p6607_p13 = pneg %p6606_p12 }
  0x22   : > { %v4906_v31 = vld [vmem:[%s9446_s2 + $0x3a0] sm:$0xf]  ;;  %v6200_v32 = vld [vmem:[%s9446_s2 + $0x3ac] sm:$0xf0]  ;;  %v4779_v34 = vor.u32 %v6168_v30, %v4778_v28  ;;  %1663 = vmatpush.bf16.msra.mxu0 %v4523_v29 }
  0x23   : > { %v4506_v35 = vld [vmem:[%s9446_s2 + $0x80] sm:$0xf]  ;;  %v6100_v36 = vld [vmem:[%s9446_s2 + $0x8c] sm:$0xf0]  ;;  %v4907_v38 = vor.u32 %v6200_v32, %v4906_v31  ;;  %1677 = vmatpush.bf16.msra.mxu1 %v4651_v33  ;;  %v6110_v32 = vld [vmem:[%s9446_s2 + $0xe4] sm:$0xf] }
  0x24   : > { %v4634_v37 = vld [vmem:[%s9446_s2 + $0x180] sm:$0xf]  ;;  %v6132_v39 = vld [vmem:[%s9446_s2 + $0x18c] sm:$0xf0]  ;;  %v4507_v44 = vor.u32 %v6100_v36, %v4506_v35  ;;  %1691 = vmatpush.bf16.msra.mxu2 %v4779_v34  ;;  %v4556_v34 = vld [vmem:[%s9446_s2 + $0xf0] sm:$0xf0] }
  0x25   : > { %v4762_v40 = vld [vmem:[%s9446_s2 + $0x280] sm:$0xf]  ;;  %v6164_v41 = vld [vmem:[%s9446_s2 + $0x28c] sm:$0xf0]  ;;  %v4635_v45 = vor.u32 %v6132_v39, %v4634_v37  ;;  %1705 = vmatpush.bf16.msra.mxu3 %v4907_v38  ;;  %v6142_v39 = vld [vmem:[%s9446_s2 + $0x1e4] sm:$0xf] }
  0x26   : > { %v4890_v42 = vld [vmem:[%s9446_s2 + $0x380] sm:$0xf]  ;;  %v6196_v43 = vld [vmem:[%s9446_s2 + $0x38c] sm:$0xf0]  ;;  %v4763_v46 = vor.u32 %v6164_v41, %v4762_v40  ;;  %1664 = vmatpush.bf16.msra.mxu0 %v4507_v44  ;;  %v4684_v40 = vld [vmem:[%s9446_s2 + $0x1f0] sm:$0xf0] }
  0x27   : > { %v4490_v47 = vld [vmem:[%s9446_s2 + $0x60] sm:$0xf]  ;;  %v6096_v48 = vld [vmem:[%s9446_s2 + $0x6c] sm:$0xf0]  ;;  %v4891_v50 = vor.u32 %v6196_v43, %v4890_v42  ;;  %1678 = vmatpush.bf16.msra.mxu1 %v4635_v45 }
  0x28   : > { %v4618_v49 = vld [vmem:[%s9446_s2 + $0x160] sm:$0xf]  ;;  %v6128_v51 = vld [vmem:[%s9446_s2 + $0x16c] sm:$0xf0]  ;;  %v4491_v56 = vor.u32 %v6096_v48, %v4490_v47  ;;  %1692 = vmatpush.bf16.msra.mxu2 %v4763_v46  ;;  %v4559_v47 = vor.u32 %v6110_v32, %v4556_v34  ;;  %v6094_v34 = vld [vmem:[%s9446_s2 + $0x64] sm:$0xf] }
  0x29   : > { %v4746_v52 = vld [vmem:[%s9446_s2 + $0x260] sm:$0xf]  ;;  %v6160_v53 = vld [vmem:[%s9446_s2 + $0x26c] sm:$0xf0]  ;;  %v4619_v57 = vor.u32 %v6128_v51, %v4618_v49  ;;  %1706 = vmatpush.bf16.msra.mxu3 %v4891_v50  ;;  %v6106_v49 = vld [vmem:[%s9446_s2 + $0xc4] sm:$0xf] }
  0x2a   : > { %v4874_v54 = vld [vmem:[%s9446_s2 + $0x360] sm:$0xf]  ;;  %v6192_v55 = vld [vmem:[%s9446_s2 + $0x36c] sm:$0xf0]  ;;  %v4747_v58 = vor.u32 %v6160_v53, %v4746_v52  ;;  %1665 = vmatpush.bf16.msra.mxu0 %v4491_v56  ;;  %v4540_v50 = vld [vmem:[%s9446_s2 + $0xd0] sm:$0xf0]  ;;  %v4687_v56 = vor.u32 %v6142_v39, %v4684_v40 }
  0x2b   : > { %v4474_v59 = vld [vmem:[%s9446_s2 + $0x40] sm:$0xf]  ;;  %v6092_v60 = vld [vmem:[%s9446_s2 + $0x4c] sm:$0xf0]  ;;  %v4875_v62 = vor.u32 %v6192_v55, %v4874_v54  ;;  %1679 = vmatpush.bf16.msra.mxu1 %v4619_v57  ;;  %v4422_v51 = vld [vmem:[%s7001_s13 + $0x8] sm:$0xf] }
  0x2c   : > { %v4602_v61 = vld [vmem:[%s9446_s2 + $0x140] sm:$0xf]  ;;  %v6124_v63 = vld [vmem:[%s9446_s2 + $0x14c] sm:$0xf0]  ;;  %v4475_v4 = vor.u32 %v6092_v60, %v4474_v59  ;;  %1693 = vmatpush.bf16.msra.mxu2 %v4747_v58  ;;  %v6079_v52 = vld [vmem:[%s7001_s13 + $0x20] sm:$0xf0] }
  0x2d   : > { %v4730_v0 = vld [vmem:[%s9446_s2 + $0x240] sm:$0xf]  ;;  %v6156_v1 = vld [vmem:[%s9446_s2 + $0x24c] sm:$0xf0]  ;;  %v4603_v6 = vor.u32 %v6124_v63, %v4602_v61  ;;  %1707 = vmatpush.bf16.msra.mxu3 %v4875_v62  ;;  %v7015_v54 = vor.u32 %v6079_v52, %v4422_v51  ;;  %v6078_v57 = vld [vmem:[%s7001_s13 + $0x18] sm:$0xf0] }
  0x2e   : > { %v4858_v2 = vld [vmem:[%s9446_s2 + $0x340] sm:$0xf]  ;;  %v6188_v3 = vld [vmem:[%s9446_s2 + $0x34c] sm:$0xf0]  ;;  %v4731_v7 = vor.u32 %v6156_v1, %v4730_v0  ;;  %1666 = vmatpush.bf16.msra.mxu0 %v4475_v4  ;;  %v6076_v58 = vld [vmem:[%s7001_s13 + $0xc] sm:$0xf]  ;;  %v4543_v4 = vor.u32 %v6106_v49, %v4540_v50 }
  0x2f   : > { %v4458_v5 = vld [vmem:[%s9446_s2 + $0x20] sm:$0xf]  ;;  %v6088_v8 = vld [vmem:[%s9446_s2 + $0x2c] sm:$0xf0]  ;;  %v4859_v11 = vor.u32 %v6188_v3, %v4858_v2  ;;  %1680 = vmatpush.bf16.msra.mxu1 %v4603_v6  ;;  %v4424_v59 = vld [vmem:[%s7001_s13 + $0x24] sm:$0xf0] }
  0x30   : > { %v4586_v9 = vld [vmem:[%s9446_s2 + $0x120] sm:$0xf]  ;;  %v6120_v10 = vld [vmem:[%s9446_s2 + $0x12c] sm:$0xf0]  ;;  %v4459_v18 = vor.u32 %v6088_v8, %v4458_v5  ;;  %1694 = vmatpush.bf16.msra.mxu2 %v4731_v7  ;;  %v6138_v60 = vld [vmem:[%s9446_s2 + $0x1c4] sm:$0xf]  ;;  %v7025_v62 = vor.u32 %v6076_v58, %v4424_v59 }
  0x31   : > { %v4714_v12 = vld [vmem:[%s9446_s2 + $0x220] sm:$0xf]  ;;  %v6152_v13 = vld [vmem:[%s9446_s2 + $0x22c] sm:$0xf0]  ;;  %v4587_v23 = vor.u32 %v6120_v10, %v4586_v9  ;;  %1708 = vmatpush.bf16.msra.mxu3 %v4859_v11  ;;  %v6075_v0 = vld [vmem:[%s7001_s13 + $0x4] sm:$0xf] }
  0x32   : > { %v4842_v14 = vld [vmem:[%s9446_s2 + $0x320] sm:$0xf]  ;;  %v6184_v15 = vld [vmem:[%s9446_s2 + $0x32c] sm:$0xf0]  ;;  %v4715_v24 = vor.u32 %v6152_v13, %v4714_v12  ;;  %1667 = vmatpush.bf16.msra.mxu0 %v4459_v18  ;;  %v4668_v2 = vld [vmem:[%s9446_s2 + $0x1d0] sm:$0xf0] }
  0x33   : > { %v4442_v16 = vld [vmem:[%s9446_s2] sm:$0xf]  ;;  %v6084_v17 = vld [vmem:[%s9446_s2 + $0xc] sm:$0xf0]  ;;  %v4843_v27 = vor.u32 %v6184_v15, %v4842_v14  ;;  %1681 = vmatpush.bf16.msra.mxu1 %v4587_v23  ;;  %v6102_v10 = vld [vmem:[%s9446_s2 + $0xa4] sm:$0xf]  ;;  %v4671_v12 = vor.u32 %v6138_v60, %v4668_v2 }
  0x34   : > { %v4570_v19 = vld [vmem:[%s9446_s2 + $0x100] sm:$0xf]  ;;  %v6116_v20 = vld [vmem:[%s9446_s2 + $0x10c] sm:$0xf0]  ;;  %v4443_v33 = vor.u32 %v6084_v17, %v4442_v16  ;;  %1695 = vmatpush.bf16.msra.mxu2 %v4715_v24  ;;  %v4524_v11 = vld [vmem:[%s9446_s2 + $0xb0] sm:$0xf0] }
  0x35   : > { %v4698_v21 = vld [vmem:[%s9446_s2 + $0x200] sm:$0xf]  ;;  %v6148_v22 = vld [vmem:[%s9446_s2 + $0x20c] sm:$0xf0]  ;;  %v4571_v37 = vor.u32 %v6116_v20, %v4570_v19  ;;  %1709 = vmatpush.bf16.msra.mxu3 %v4843_v27  ;;  %v6134_v14 = vld [vmem:[%s9446_s2 + $0x1a4] sm:$0xf]  ;;  %v4527_v17 = vor.u32 %v6102_v10, %v4524_v11 }
  0x36   : > { %v4826_v25 = vld [vmem:[%s9446_s2 + $0x300] sm:$0xf]  ;;  %v6180_v26 = vld [vmem:[%s9446_s2 + $0x30c] sm:$0xf0]  ;;  %v4699_v38 = vor.u32 %v6148_v22, %v4698_v21  ;;  %1668 = vmatpush.bf16.msra.mxu0 %v4443_v33  ;;  %v4652_v15 = vld [vmem:[%s9446_s2 + $0x1b0] sm:$0xf0] }
  0x37   : > { %v5066_v28 = vld [vmem:[%s9446_s2 + $0x4e0] sm:$0xf]  ;;  %v6240_v29 = vld [vmem:[%s9446_s2 + $0x4ec] sm:$0xf0]  ;;  %v4827_v41 = vor.u32 %v6180_v26, %v4826_v25  ;;  %1682 = vmatpush.bf16.msra.mxu1 %v4571_v37  ;;  %v6098_v22 = vld [vmem:[%s9446_s2 + $0x84] sm:$0xf]  ;;  %v4655_v24 = vor.u32 %v6134_v14, %v4652_v15 }
  0x38   : > { %v5194_v30 = vld [vmem:[%s9446_s2 + $0x5e0] sm:$0xf]  ;;  %v6272_v31 = vld [vmem:[%s9446_s2 + $0x5ec] sm:$0xf0]  ;;  %v5067_v42 = vor.u32 %v6240_v29, %v5066_v28  ;;  %1696 = vmatpush.bf16.msra.mxu2 %v4699_v38  ;;  %v4508_v23 = vld [vmem:[%s9446_s2 + $0x90] sm:$0xf0] }
  0x39   : > { %v5210_v35 = vld [vmem:[%s9446_s2 + $0x600] sm:$0xf]  ;;  %v6276_v36 = vld [vmem:[%s9446_s2 + $0x60c] sm:$0xf0]  ;;  %v5195_v46 = vor.u32 %v6272_v31, %v5194_v30  ;;  %1710 = vmatpush.bf16.msra.mxu3 %v4827_v41  ;;  %v6130_v26 = vld [vmem:[%s9446_s2 + $0x184] sm:$0xf]  ;;  %v4511_v29 = vor.u32 %v6098_v22, %v4508_v23 }
  0x3a   : > { %v5050_v43 = vld [vmem:[%s9446_s2 + $0x4c0] sm:$0xf]  ;;  %v6236_v44 = vld [vmem:[%s9446_s2 + $0x4cc] sm:$0xf0]  ;;  %v5211_v55 = vor.u32 %v6276_v36, %v5210_v35  ;;  %1717 = vmatpush.bf16.msrb.mxu0 %v5067_v42  ;;  %v4636_v27 = vld [vmem:[%s9446_s2 + $0x190] sm:$0xf0] }
  0x3b   : > { %v5178_v45 = vld [vmem:[%s9446_s2 + $0x5c0] sm:$0xf]  ;;  %v6268_v48 = vld [vmem:[%s9446_s2 + $0x5cc] sm:$0xf0]  ;;  %v5051_v63 = vor.u32 %v6236_v44, %v5050_v43  ;;  %1731 = vmatpush.bf16.msrb.mxu1 %v5195_v46  ;;  %1697 = vmatmul.bf16.vlgmr.msra.gmra.mxu2 %v7015_v54  ;;  %v4492_v35 = vld [vmem:[%s9446_s2 + $0x70] sm:$0xf0]  ;;  %v4639_v38 = vor.u32 %v6130_v26, %v4636_v27 }
  0x3c   : > { %v4414_v53 = vld [vmem:[%s7001_s13] sm:$0xf]  ;;  %v5179_v3 = vor.u32 %v6268_v48, %v5178_v45  ;;  %v6232_v6 = vld [vmem:[%s9446_s2 + $0x4ac] sm:$0xf0]  ;;  %1752 = vmatpush.bf16.msrb.mxu2 %v5211_v55  ;;  %1711 = vmatmul.bf16.vlgmr.msra.gmra.mxu3 %v7025_v62  ;;  %v4438_v36 = vld [vmem:[%s7001_s13 + $0x18] sm:$0xf]  ;;  %v4495_v43 = vor.u32 %v6094_v34, %v4492_v35 }
  0x3d   : > { %v7023_v61 = vor.u32 %v6078_v57, %v4414_v53  ;;  %v4416_v1 = vld [vmem:[%s7001_s13 + $0x1c] sm:$0xf0]  ;;  %1759 = vmatpush.bf16.msrb.mxu3 %v4559_v47  ;;  %v6264_v9 = vld [vmem:[%s9446_s2 + $0x5ac] sm:$0xf0]  ;;  %v6081_v37 = vld [vmem:[%s7001_s13 + $0x30] sm:$0xf0] }
  0x3e   : > { %v5034_v5 = vld [vmem:[%s9446_s2 + $0x4a0] sm:$0xf]  ;;  %v7043_v8 = vor.u32 %v6075_v0, %v4416_v1  ;;  %1718 = vmatpush.bf16.msrb.mxu0 %v5051_v63  ;;  %v6228_v19 = vld [vmem:[%s9446_s2 + $0x48c] sm:$0xf0]  ;;  %v6126_v40 = vld [vmem:[%s9446_s2 + $0x164] sm:$0xf]  ;;  %v7130_v50 = vor.u32 %v6081_v37, %v4438_v36 }
  0x3f   : > { %v5162_v7 = vld [vmem:[%s9446_s2 + $0x5a0] sm:$0xf]  ;;  %1669 = vmatmul.bf16.vlgmr.msra.gmra.mxu0 %v7023_v61  ;;  %v5035_v13 = vor.u32 %v6232_v6, %v5034_v5  ;;  %1732 = vmatpush.bf16.msrb.mxu1 %v5179_v3  ;;  %v6260_v21 = vld [vmem:[%s9446_s2 + $0x58c] sm:$0xf0]  ;;  %v4620_v41 = vld [vmem:[%s9446_s2 + $0x170] sm:$0xf0] }
  0x40   : > { %1773 = vmatpush.bf16.msra.mxu2 %v4687_v56  ;;  %v5163_v16 = vor.u32 %v6264_v9, %v5162_v7  ;;  %v5018_v18 = vld [vmem:[%s9446_s2 + $0x480] sm:$0xf]  ;;  %1683 = vmatmul.bf16.vlgmr.msra.gmra.mxu1 %v7043_v8  ;;  %v6224_v31 = vld [vmem:[%s9446_s2 + $0x46c] sm:$0xf0]  ;;  %v6090_v48 = vld [vmem:[%s9446_s2 + $0x44] sm:$0xf]  ;;  %v4623_v51 = vor.u32 %v6126_v40, %v4620_v41 }
  0x41   : > { %1760 = vmatpush.bf16.msrb.mxu3 %v4543_v4  ;;  %v5146_v20 = vld [vmem:[%s9446_s2 + $0x580] sm:$0xf]  ;;  %v5019_v25 = vor.u32 %v6228_v19, %v5018_v18  ;;  %v6256_v33 = vld [vmem:[%s9446_s2 + $0x56c] sm:$0xf0]  ;;  %v4476_v49 = vld [vmem:[%s9446_s2 + $0x50] sm:$0xf0] }
  0x42   : > { %1719 = vmatpush.bf16.msrb.mxu0 %v5035_v13  ;;  %v5147_v28 = vor.u32 %v6260_v21, %v5146_v20  ;;  %v5002_v30 = vld [vmem:[%s9446_s2 + $0x460] sm:$0xf]  ;;  %v6220_v45 = vld [vmem:[%s9446_s2 + $0x44c] sm:$0xf0]  ;;  %v6122_v53 = vld [vmem:[%s9446_s2 + $0x144] sm:$0xf]  ;;  %v4479_v57 = vor.u32 %v6090_v48, %v4476_v49 }
  0x43   : > { %1733 = vmatpush.bf16.msrb.mxu1 %v5163_v16  ;;  %v5130_v32 = vld [vmem:[%s9446_s2 + $0x560] sm:$0xf]  ;;  %v5003_v39 = vor.u32 %v6224_v31, %v5002_v30  ;;  %v6252_v47 = vld [vmem:[%s9446_s2 + $0x54c] sm:$0xf0]  ;;  %v4604_v55 = vld [vmem:[%s9446_s2 + $0x150] sm:$0xf0] }
  0x44   : > { %1774 = vmatpush.bf16.msra.mxu2 %v4671_v12  ;;  %v5131_v42 = vor.u32 %v6256_v33, %v5130_v32  ;;  %v4986_v44 = vld [vmem:[%s9446_s2 + $0x440] sm:$0xf]  ;;  %v6216_v59 = vld [vmem:[%s9446_s2 + $0x42c] sm:$0xf0]  ;;  %v6086_v0 = vld [vmem:[%s9446_s2 + $0x24] sm:$0xf]  ;;  %v4607_v4 = vor.u32 %v6122_v53, %v4604_v55 }
  0x45   : > { %1761 = vmatpush.bf16.msrb.mxu3 %v4527_v17  ;;  %v5114_v46 = vld [vmem:[%s9446_s2 + $0x540] sm:$0xf]  ;;  %v4987_v52 = vor.u32 %v6220_v45, %v4986_v44  ;;  %v6248_v63 = vld [vmem:[%s9446_s2 + $0x52c] sm:$0xf0]  ;;  %v4460_v1 = vld [vmem:[%s9446_s2 + $0x30] sm:$0xf0] }
  0x46   : > { %1720 = vmatpush.bf16.msrb.mxu0 %v5019_v25  ;;  %v5115_v56 = vor.u32 %v6252_v47, %v5114_v46  ;;  %v4970_v58 = vld [vmem:[%s9446_s2 + $0x420] sm:$0xf]  ;;  %v6118_v2 = vld [vmem:[%s9446_s2 + $0x124] sm:$0xf]  ;;  %v4588_v3 = vld [vmem:[%s9446_s2 + $0x130] sm:$0xf0]  ;;  %v4463_v11 = vor.u32 %v6086_v0, %v4460_v1 }
  0x47   : > { %1734 = vmatpush.bf16.msrb.mxu1 %v5147_v28  ;;  %v5098_v60 = vld [vmem:[%s9446_s2 + $0x520] sm:$0xf]  ;;  %v4971_v5 = vor.u32 %v6216_v59, %v4970_v58  ;;  %v6212_v7 = vld [vmem:[%s9446_s2 + $0x40c] sm:$0xf0]  ;;  %v6082_v13 = vld [vmem:[%s9446_s2 + $0x4] sm:$0xf]  ;;  %v4591_v21 = vor.u32 %v6118_v2, %v4588_v3 }
  0x48   : > { %1775 = vmatpush.bf16.msra.mxu2 %v4655_v24  ;;  %v4954_v6 = vld [vmem:[%s9446_s2 + $0x400] sm:$0xf]  ;;  %v5099_v10 = vor.u32 %v6248_v63, %v5098_v60  ;;  %v6244_v12 = vld [vmem:[%s9446_s2 + $0x50c] sm:$0xf0]  ;;  %v4444_v14 = vld [vmem:[%s9446_s2 + $0x10] sm:$0xf0] }
  0x49   : > { %1762 = vmatpush.bf16.msrb.mxu3 %v4511_v29  ;;  %v5082_v9 = vld [vmem:[%s9446_s2 + $0x500] sm:$0xf]  ;;  %v6174_v15 = vld [vmem:[%s9446_s2 + $0x2e4] sm:$0xf]  ;;  %v4812_v16 = vld [vmem:[%s9446_s2 + $0x2f0] sm:$0xf0]  ;;  %v4955_v22 = vor.u32 %v6212_v7, %v4954_v6  ;;  %v4447_v27 = vor.u32 %v6082_v13, %v4444_v14 }
  0x4a   : > { %1721 = vmatpush.bf16.msrb.mxu0 %v5003_v39  ;;  %v6206_v17 = vld [vmem:[%s9446_s2 + $0x3e4] sm:$0xf]  ;;  %v4940_v18 = vld [vmem:[%s9446_s2 + $0x3f0] sm:$0xf0]  ;;  %v4430_v23 = vld [vmem:[%s7001_s13 + $0x10] sm:$0xf]  ;;  %v5083_v26 = vor.u32 %v6244_v12, %v5082_v9  ;;  %v4815_v31 = vor.u32 %v6174_v15, %v4812_v16 }
  0x4b   : > { %1735 = vmatpush.bf16.msrb.mxu1 %v5131_v42  ;;  %5224 = vmatmul.msk.bf16.vlgmr.msrb.gmra.mxu2 %vm1657_vm0, %v7130_v50  ;;  %v6238_v19 = vld [vmem:[%s9446_s2 + $0x4e4] sm:$0xf]  ;;  %v5068_v20 = vld [vmem:[%s9446_s2 + $0x4f0] sm:$0xf0]  ;;  %v6080_v24 = vld [vmem:[%s7001_s13 + $0x28] sm:$0xf0]  ;;  %v4943_v32 = vor.u32 %v6206_v17, %v4940_v18 }
  0x4c   : > { %1776 = vmatpush.bf16.msra.mxu2 %v4639_v38  ;;  %v6114_v25 = vld [vmem:[%s9446_s2 + $0x104] sm:$0xf]  ;;  %v4572_v28 = vld [vmem:[%s9446_s2 + $0x110] sm:$0xf0]  ;;  %v4432_v30 = vld [vmem:[%s7001_s13 + $0x2c] sm:$0xf0]  ;;  %v5071_v36 = vor.u32 %v6238_v19, %v5068_v20  ;;  %v7219_v37 = vor.u32 %v6080_v24, %v4430_v23 }
  0x4d   : > { %1763 = vmatpush.bf16.msrb.mxu3 %v4495_v43  ;;  %v6077_v29 = vld [vmem:[%s7001_s13 + $0x14] sm:$0xf]  ;;  %v6270_v33 = vld [vmem:[%s9446_s2 + $0x5e4] sm:$0xf]  ;;  %v4575_v41 = vor.u32 %v6114_v25, %v4572_v28 }
  0x4e   : > { %1722 = vmatpush.bf16.msrb.mxu0 %v4987_v52  ;;  %v5196_v34 = vld [vmem:[%s9446_s2 + $0x5f0] sm:$0xf0]  ;;  %v6170_v35 = vld [vmem:[%s9446_s2 + $0x2c4] sm:$0xf]  ;;  %v7230_v42 = vor.u32 %v6077_v29, %v4432_v30 }
  0x4f   : > { %1736 = vmatpush.bf16.msrb.mxu1 %v5115_v56  ;;  %v4796_v38 = vld [vmem:[%s9446_s2 + $0x2d0] sm:$0xf0]  ;;  %v6202_v39 = vld [vmem:[%s9446_s2 + $0x3c4] sm:$0xf]  ;;  %v5199_v45 = vor.u32 %v6270_v33, %v5196_v34 }
  0x50   : > { %1777 = vmatpush.bf16.msra.mxu2 %v4623_v51  ;;  %v4924_v40 = vld [vmem:[%s9446_s2 + $0x3d0] sm:$0xf0]  ;;  %v6234_v43 = vld [vmem:[%s9446_s2 + $0x4c4] sm:$0xf]  ;;  %v4799_v46 = vor.u32 %v6170_v35, %v4796_v38 }
  0x51   : > { %1764 = vmatpush.bf16.msrb.mxu3 %v4479_v57  ;;  %v5052_v44 = vld [vmem:[%s9446_s2 + $0x4d0] sm:$0xf0]  ;;  %v4927_v47 = vor.u32 %v6202_v39, %v4924_v40  ;;  %v6266_v48 = vld [vmem:[%s9446_s2 + $0x5c4] sm:$0xf] }
  0x52   : > { %1723 = vmatpush.bf16.msrb.mxu0 %v4971_v5  ;;  %v5180_v49 = vld [vmem:[%s9446_s2 + $0x5d0] sm:$0xf0]  ;;  %v6166_v51 = vld [vmem:[%s9446_s2 + $0x2a4] sm:$0xf]  ;;  %v5055_v52 = vor.u32 %v6234_v43, %v5052_v44 }
  0x53   : > { %1737 = vmatpush.bf16.msrb.mxu1 %v5099_v10  ;;  %v4780_v53 = vld [vmem:[%s9446_s2 + $0x2b0] sm:$0xf0]  ;;  %v6198_v55 = vld [vmem:[%s9446_s2 + $0x3a4] sm:$0xf]  ;;  %v5183_v59 = vor.u32 %v6266_v48, %v5180_v49 }
  0x54   : > { %1778 = vmatpush.bf16.msra.mxu2 %v4607_v4  ;;  %v4908_v56 = vld [vmem:[%s9446_s2 + $0x3b0] sm:$0xf0]  ;;  %v6230_v57 = vld [vmem:[%s9446_s2 + $0x4a4] sm:$0xf]  ;;  %v4783_v60 = vor.u32 %v6166_v51, %v4780_v53 }
  0x55   : > { %1765 = vmatpush.bf16.msrb.mxu3 %v4463_v11  ;;  %v5036_v58 = vld [vmem:[%s9446_s2 + $0x4b0] sm:$0xf0]  ;;  %v4911_v63 = vor.u32 %v6198_v55, %v4908_v56  ;;  %v6262_v0 = vld [vmem:[%s9446_s2 + $0x5a4] sm:$0xf] }
  0x56   : > { %1724 = vmatpush.bf16.msrb.mxu0 %v4955_v22  ;;  %v5164_v1 = vld [vmem:[%s9446_s2 + $0x5b0] sm:$0xf0]  ;;  %v6162_v2 = vld [vmem:[%s9446_s2 + $0x284] sm:$0xf]  ;;  %v5039_v3 = vor.u32 %v6230_v57, %v5036_v58 }
  0x57   : > { %1738 = vmatpush.bf16.msrb.mxu1 %v5083_v26  ;;  %v4764_v4 = vld [vmem:[%s9446_s2 + $0x290] sm:$0xf0]  ;;  %v6194_v5 = vld [vmem:[%s9446_s2 + $0x384] sm:$0xf]  ;;  %v5167_v10 = vor.u32 %v6262_v0, %v5164_v1  ;;  %v4562_v0 = vld [vmem:[%s9446_s2 + $0xe8] sm:$0xf] }
  0x58   : > { %1779 = vmatpush.bf16.msra.mxu2 %v4591_v21  ;;  %v4892_v6 = vld [vmem:[%s9446_s2 + $0x390] sm:$0xf0]  ;;  %v6226_v7 = vld [vmem:[%s9446_s2 + $0x484] sm:$0xf]  ;;  %v4767_v11 = vor.u32 %v6162_v2, %v4764_v4  ;;  %v6113_v1 = vld [vmem:[%s9446_s2 + $0xf4] sm:$0xf0] }
  0x59   : > { %1766 = vmatpush.bf16.msrb.mxu3 %v4447_v27  ;;  %1725 = vmatmul.bf16.vlgmr.msrb.gmra.mxu0 %v7219_v37  ;;  %v5020_v9 = vld [vmem:[%s9446_s2 + $0x490] sm:$0xf0]  ;;  %v4895_v12 = vor.u32 %v6194_v5, %v4892_v6  ;;  %v6258_v13 = vld [vmem:[%s9446_s2 + $0x584] sm:$0xf]  ;;  %v4690_v2 = vld [vmem:[%s9446_s2 + $0x1e8] sm:$0xf] }
  0x5a   : > { %1787 = vmatpush.bf16.msra.mxu0 %v4815_v31  ;;  %1739 = vmatmul.bf16.vlgmr.msrb.gmra.mxu1 %v7230_v42  ;;  %v5148_v14 = vld [vmem:[%s9446_s2 + $0x590] sm:$0xf0]  ;;  %v6158_v15 = vld [vmem:[%s9446_s2 + $0x264] sm:$0xf]  ;;  %v5023_v16 = vor.u32 %v6226_v7, %v5020_v9  ;;  %v6145_v4 = vld [vmem:[%s9446_s2 + $0x1f4] sm:$0xf0] }
  0x5b   : > { %1801 = vmatpush.bf16.msra.mxu1 %v4943_v32  ;;  %v4748_v17 = vld [vmem:[%s9446_s2 + $0x270] sm:$0xf0]  ;;  %v6190_v18 = vld [vmem:[%s9446_s2 + $0x364] sm:$0xf]  ;;  %v5151_v22 = vor.u32 %v6258_v13, %v5148_v14  ;;  %v4563_v13 = vor.u32 %v6113_v1, %v4562_v0  ;;  %v4818_v14 = vld [vmem:[%s9446_s2 + $0x2e8] sm:$0xf] }
  0x5c   : > { %1780 = vmatpush.bf16.msra.mxu2 %v4575_v41  ;;  %1767 = vmatmul.bf16.vlgmr.msrb.gmra.mxu3 %v7023_v61  ;;  %v4876_v19 = vld [vmem:[%s9446_s2 + $0x370] sm:$0xf0]  ;;  %v6222_v20 = vld [vmem:[%s9446_s2 + $0x464] sm:$0xf]  ;;  %v4751_v23 = vor.u32 %v6158_v15, %v4748_v17  ;;  %v6177_v15 = vld [vmem:[%s9446_s2 + $0x2f4] sm:$0xf0]  ;;  %v4691_v17 = vor.u32 %v6145_v4, %v4690_v2 }
  0x5d   : > { %1815 = vmatpush.bf16.msra.mxu3 %v5071_v36  ;;  %v5004_v21 = vld [vmem:[%s9446_s2 + $0x470] sm:$0xf0]  ;;  %v4879_v24 = vor.u32 %v6190_v18, %v4876_v19  ;;  %v6254_v25 = vld [vmem:[%s9446_s2 + $0x564] sm:$0xf]  ;;  %v6209_v19 = vld [vmem:[%s9446_s2 + $0x3f4] sm:$0xf0] }
  0x5e   : > { %1788 = vmatpush.bf16.msra.mxu0 %v4799_v46  ;;  %v5132_v26 = vld [vmem:[%s9446_s2 + $0x570] sm:$0xf0]  ;;  %v6154_v27 = vld [vmem:[%s9446_s2 + $0x244] sm:$0xf]  ;;  %v5007_v28 = vor.u32 %v6222_v20, %v5004_v21  ;;  %v4546_v20 = vld [vmem:[%s9446_s2 + $0xc8] sm:$0xf] }
  0x5f   : > { %1802 = vmatpush.bf16.msra.mxu1 %v4927_v47  ;;  %1781 = vmatmul.bf16.vlgmr.msra.gmra.mxu2 %v7043_v8  ;;  %v4732_v29 = vld [vmem:[%s9446_s2 + $0x250] sm:$0xf0]  ;;  %v6186_v30 = vld [vmem:[%s9446_s2 + $0x344] sm:$0xf]  ;;  %v5135_v34 = vor.u32 %v6254_v25, %v5132_v26  ;;  %v6109_v21 = vld [vmem:[%s9446_s2 + $0xd4] sm:$0xf0]  ;;  %v4819_v25 = vor.u32 %v6177_v15, %v4818_v14 }
  0x60   : > { %1829 = vmatpush.bf16.msrb.mxu2 %v5199_v45  ;;  %v4860_v31 = vld [vmem:[%s9446_s2 + $0x350] sm:$0xf0]  ;;  %v6218_v32 = vld [vmem:[%s9446_s2 + $0x444] sm:$0xf]  ;;  %v4735_v35 = vor.u32 %v6154_v27, %v4732_v29  ;;  %v4547_v27 = vor.u32 %v6109_v21, %v4546_v20  ;;  %v6173_v29 = vld [vmem:[%s9446_s2 + $0x2d4] sm:$0xf0] }
  0x61   : > { %1816 = vmatpush.bf16.msra.mxu3 %v5055_v52  ;;  %v4988_v33 = vld [vmem:[%s9446_s2 + $0x450] sm:$0xf0]  ;;  %v4863_v36 = vor.u32 %v6186_v30, %v4860_v31  ;;  %v6250_v38 = vld [vmem:[%s9446_s2 + $0x544] sm:$0xf]  ;;  %v4930_v30 = vld [vmem:[%s9446_s2 + $0x3c8] sm:$0xf] }
  0x62   : > { %1789 = vmatpush.bf16.msra.mxu0 %v4783_v60  ;;  %v5116_v39 = vld [vmem:[%s9446_s2 + $0x550] sm:$0xf0]  ;;  %v6150_v40 = vld [vmem:[%s9446_s2 + $0x224] sm:$0xf]  ;;  %v4991_v41 = vor.u32 %v6218_v32, %v4988_v33  ;;  %v6205_v32 = vld [vmem:[%s9446_s2 + $0x3d4] sm:$0xf0] }
  0x63   : > { %1803 = vmatpush.bf16.msra.mxu1 %v4911_v63  ;;  %v4716_v43 = vld [vmem:[%s9446_s2 + $0x230] sm:$0xf0]  ;;  %v6182_v44 = vld [vmem:[%s9446_s2 + $0x324] sm:$0xf]  ;;  %v5119_v48 = vor.u32 %v6250_v38, %v5116_v39  ;;  %v4530_v33 = vld [vmem:[%s9446_s2 + $0xa8] sm:$0xf]  ;;  %v4931_v39 = vor.u32 %v6205_v32, %v4930_v30 }
  0x64   : > { %1830 = vmatpush.bf16.msrb.mxu2 %v5183_v59  ;;  %v4844_v45 = vld [vmem:[%s9446_s2 + $0x330] sm:$0xf0]  ;;  %v6214_v46 = vld [vmem:[%s9446_s2 + $0x424] sm:$0xf]  ;;  %v4719_v52 = vor.u32 %v6150_v40, %v4716_v43  ;;  %v6169_v43 = vld [vmem:[%s9446_s2 + $0x2b4] sm:$0xf0] }
  0x65   : > { %1817 = vmatpush.bf16.msra.mxu3 %v5039_v3  ;;  %v4972_v47 = vld [vmem:[%s9446_s2 + $0x430] sm:$0xf0]  ;;  %v6246_v49 = vld [vmem:[%s9446_s2 + $0x524] sm:$0xf]  ;;  %v4847_v53 = vor.u32 %v6182_v44, %v4844_v45  ;;  %v4914_v44 = vld [vmem:[%s9446_s2 + $0x3a8] sm:$0xf] }
  0x66   : > { %1790 = vmatpush.bf16.msra.mxu0 %v4767_v11  ;;  %v5100_v51 = vld [vmem:[%s9446_s2 + $0x530] sm:$0xf0]  ;;  %v6146_v55 = vld [vmem:[%s9446_s2 + $0x204] sm:$0xf]  ;;  %v4975_v58 = vor.u32 %v6214_v46, %v4972_v47  ;;  %v6201_v46 = vld [vmem:[%s9446_s2 + $0x3b4] sm:$0xf0] }
  0x67   : > { %1804 = vmatpush.bf16.msra.mxu1 %v4895_v12  ;;  %v4700_v56 = vld [vmem:[%s9446_s2 + $0x210] sm:$0xf0]  ;;  %v6178_v57 = vld [vmem:[%s9446_s2 + $0x304] sm:$0xf]  ;;  %v5103_v3 = vor.u32 %v6246_v49, %v5100_v51  ;;  %v4514_v47 = vld [vmem:[%s9446_s2 + $0x88] sm:$0xf] }
  0x68   : > { %1831 = vmatpush.bf16.msrb.mxu2 %v5167_v10  ;;  %v4828_v59 = vld [vmem:[%s9446_s2 + $0x310] sm:$0xf0]  ;;  %v6210_v60 = vld [vmem:[%s9446_s2 + $0x404] sm:$0xf]  ;;  %v4703_v7 = vor.u32 %v6146_v55, %v4700_v56  ;;  %v4642_v49 = vld [vmem:[%s9446_s2 + $0x188] sm:$0xf] }
  0x69   : > { %1818 = vmatpush.bf16.msra.mxu3 %v5023_v16  ;;  %v4956_v63 = vld [vmem:[%s9446_s2 + $0x410] sm:$0xf0]  ;;  %v6274_v5 = vld [vmem:[%s9446_s2 + $0x604] sm:$0xf]  ;;  %v4831_v9 = vor.u32 %v6178_v57, %v4828_v59  ;;  %v4946_v16 = vld [vmem:[%s9446_s2 + $0x3e8] sm:$0xf] }
  0x6a   : > { %1791 = vmatpush.bf16.msra.mxu0 %v4751_v23  ;;  %v5212_v6 = vld [vmem:[%s9446_s2 + $0x610] sm:$0xf0]  ;;  %v6242_v10 = vld [vmem:[%s9446_s2 + $0x504] sm:$0xf]  ;;  %v4959_v12 = vor.u32 %v6210_v60, %v4956_v63  ;;  %v4674_v23 = vld [vmem:[%s9446_s2 + $0x1c8] sm:$0xf]  ;;  %v4947_v26 = vor.u32 %v6209_v19, %v4946_v16 }
  0x6b   : > { %1805 = vmatpush.bf16.msra.mxu1 %v4879_v24  ;;  %v5084_v11 = vld [vmem:[%s9446_s2 + $0x510] sm:$0xf0]  ;;  %v5215_v18 = vor.u32 %v6274_v5, %v5212_v6  ;;  %v6141_v24 = vld [vmem:[%s9446_s2 + $0x1d4] sm:$0xf0]  ;;  %v4770_v56 = vld [vmem:[%s9446_s2 + $0x288] sm:$0xf] }
  0x6c   : > { %1832 = vmatpush.bf16.msrb.mxu2 %v5151_v22  ;;  %v5087_v22 = vor.u32 %v6242_v10, %v5084_v11  ;;  %v4675_v31 = vor.u32 %v6141_v24, %v4674_v23  ;;  %v6133_v51 = vld [vmem:[%s9446_s2 + $0x194] sm:$0xf0]  ;;  %v4498_v63 = vld [vmem:[%s9446_s2 + $0x68] sm:$0xf] }
  0x6d   : > { %1819 = vmatpush.bf16.msra.mxu3 %v5007_v28  ;;  %v4802_v28 = vld [vmem:[%s9446_s2 + $0x2c8] sm:$0xf]  ;;  %v6165_v57 = vld [vmem:[%s9446_s2 + $0x294] sm:$0xf0]  ;;  %v4643_v59 = vor.u32 %v6133_v51, %v4642_v49 }
  0x6e   : > { %1792 = vmatpush.bf16.msra.mxu0 %v4735_v35  ;;  %v4658_v35 = vld [vmem:[%s9446_s2 + $0x1a8] sm:$0xf]  ;;  %v4803_v38 = vor.u32 %v6173_v29, %v4802_v28  ;;  %v6197_v60 = vld [vmem:[%s9446_s2 + $0x394] sm:$0xf0] }
  0x6f   : > { %1806 = vmatpush.bf16.msra.mxu1 %v4863_v36  ;;  %v6137_v36 = vld [vmem:[%s9446_s2 + $0x1b4] sm:$0xf0]  ;;  %v4626_v1 = vld [vmem:[%s9446_s2 + $0x168] sm:$0xf] }
  0x70   : > { %1833 = vmatpush.bf16.msrb.mxu2 %v5135_v34  ;;  %v6105_v34 = vld [vmem:[%s9446_s2 + $0xb4] sm:$0xf0]  ;;  %v4659_v45 = vor.u32 %v6137_v36, %v4658_v35  ;;  %v4754_v4 = vld [vmem:[%s9446_s2 + $0x268] sm:$0xf] }
  0x71   : > { %1820 = vmatpush.bf16.msra.mxu3 %v4991_v41  ;;  %v4531_v40 = vor.u32 %v6105_v34, %v4530_v33  ;;  %v4786_v41 = vld [vmem:[%s9446_s2 + $0x2a8] sm:$0xf]  ;;  %v6097_v0 = vld [vmem:[%s9446_s2 + $0x74] sm:$0xf0] }
  0x72   : > { %1793 = vmatpush.bf16.msra.mxu0 %v4719_v52  ;;  %v4787_v52 = vor.u32 %v6169_v43, %v4786_v41  ;;  %v6129_v2 = vld [vmem:[%s9446_s2 + $0x174] sm:$0xf0]  ;;  %v4499_v6 = vor.u32 %v6097_v0, %v4498_v63  ;;  %v4610_v14 = vld [vmem:[%s9446_s2 + $0x148] sm:$0xf] }
  0x73   : > { %1807 = vmatpush.bf16.msra.mxu1 %v4847_v53  ;;  %v4915_v53 = vor.u32 %v6201_v46, %v4914_v44  ;;  %v4627_v10 = vor.u32 %v6129_v2, %v4626_v1  ;;  %v6193_v11 = vld [vmem:[%s9446_s2 + $0x374] sm:$0xf0]  ;;  %v4738_v19 = vld [vmem:[%s9446_s2 + $0x248] sm:$0xf] }
  0x74   : > { %1834 = vmatpush.bf16.msrb.mxu2 %v5119_v48  ;;  %v6101_v48 = vld [vmem:[%s9446_s2 + $0x94] sm:$0xf0]  ;;  %v4866_v21 = vld [vmem:[%s9446_s2 + $0x348] sm:$0xf] }
  0x75   : > { %1821 = vmatpush.bf16.msra.mxu3 %v4975_v58  ;;  %v4515_v55 = vor.u32 %v6101_v48, %v4514_v47  ;;  %v4898_v58 = vld [vmem:[%s9446_s2 + $0x388] sm:$0xf]  ;;  %v6125_v15 = vld [vmem:[%s9446_s2 + $0x154] sm:$0xf0] }
  0x76   : > { %1794 = vmatpush.bf16.msra.mxu0 %v4703_v7  ;;  %v4899_v5 = vor.u32 %v6197_v60, %v4898_v58  ;;  %v6161_v7 = vld [vmem:[%s9446_s2 + $0x274] sm:$0xf0]  ;;  %v4466_v24 = vld [vmem:[%s9446_s2 + $0x28] sm:$0xf]  ;;  %v4564_v58 = vld [vmem:[%s9446_s2 + $0xf8] sm:$0xf0] }
  0x77   : > { %1808 = vmatpush.bf16.msra.mxu1 %v4831_v9  ;;  %v4882_v9 = vld [vmem:[%s9446_s2 + $0x368] sm:$0xf]  ;;  %v4755_v16 = vor.u32 %v6161_v7, %v4754_v4  ;;  %v6157_v20 = vld [vmem:[%s9446_s2 + $0x254] sm:$0xf0] }
  0x78   : > { %1835 = vmatpush.bf16.msrb.mxu2 %v5103_v3  ;;  %v4771_v3 = vor.u32 %v6165_v57, %v4770_v56  ;;  %v6189_v23 = vld [vmem:[%s9446_s2 + $0x354] sm:$0xf0]  ;;  %v4739_v28 = vor.u32 %v6157_v20, %v4738_v19  ;;  %v4722_v29 = vld [vmem:[%s9446_s2 + $0x228] sm:$0xf]  ;;  %v6111_v57 = vld [vmem:[%s9446_s2 + $0xec] sm:$0xf] }
  0x79   : > { %1822 = vmatpush.bf16.msra.mxu3 %v4959_v12  ;;  %1795 = vmatmul.bf16.vlgmr.msra.gmra.mxu0 %v7015_v54  ;;  %v4482_v12 = vld [vmem:[%s9446_s2 + $0x48] sm:$0xf]  ;;  %v4867_v30 = vor.u32 %v6189_v23, %v4866_v21  ;;  %v6153_v32 = vld [vmem:[%s9446_s2 + $0x234] sm:$0xf0]  ;;  %v4676_v23 = vld [vmem:[%s9446_s2 + $0x1d8] sm:$0xf0] }
  0x7a   : > { %1850 = vmatpush.bf16.msrb.mxu0 %v5215_v18  ;;  %1809 = vmatmul.bf16.vlgmr.msra.gmra.mxu1 %v7025_v62  ;;  %v4850_v33 = vld [vmem:[%s9446_s2 + $0x328] sm:$0xf]  ;;  %v6185_v34 = vld [vmem:[%s9446_s2 + $0x334] sm:$0xf0]  ;;  %v4723_v44 = vor.u32 %v6153_v32, %v4722_v29 }
  0x7b   : > { %1857 = vmatpush.bf16.msrb.mxu1 %v4563_v13  ;;  %v6093_v13 = vld [vmem:[%s9446_s2 + $0x54] sm:$0xf0]  ;;  %v4450_v36 = vld [vmem:[%s9446_s2 + $0x8] sm:$0xf]  ;;  %v4851_v47 = vor.u32 %v6185_v34, %v4850_v33  ;;  %v6135_v34 = vld [vmem:[%s9446_s2 + $0x1ac] sm:$0xf] }
  0x7c   : > { %1836 = vmatpush.bf16.msrb.mxu2 %v5087_v22  ;;  %1823 = vmatmul.bf16.vlgmr.msra.gmra.mxu3 %v7219_v37  ;;  %v4483_v18 = vor.u32 %v6093_v13, %v4482_v12  ;;  %v4611_v22 = vor.u32 %v6125_v15, %v4610_v14  ;;  %v5074_v41 = vld [vmem:[%s9446_s2 + $0x4e8] sm:$0xf]  ;;  %v6241_v43 = vld [vmem:[%s9446_s2 + $0x4f4] sm:$0xf0]  ;;  %v4548_v14 = vld [vmem:[%s9446_s2 + $0xd8] sm:$0xf0] }
  0x7d   : > { %1871 = vmatpush.bf16.msrb.mxu3 %v4691_v17  ;;  %v4883_v17 = vor.u32 %v6193_v11, %v4882_v9  ;;  %v6273_v46 = vld [vmem:[%s9446_s2 + $0x5f4] sm:$0xf0]  ;;  %v4706_v49 = vld [vmem:[%s9446_s2 + $0x208] sm:$0xf]  ;;  %v6143_v9 = vld [vmem:[%s9446_s2 + $0x1ec] sm:$0xf] }
  0x7e   : > { %1885 = vmatpush.bf16.msra.mxu0 %v4819_v25  ;;  %v6089_v25 = vld [vmem:[%s9446_s2 + $0x34] sm:$0xf0]  ;;  %v5058_v60 = vld [vmem:[%s9446_s2 + $0x4c8] sm:$0xf]  ;;  %v6107_v11 = vld [vmem:[%s9446_s2 + $0xcc] sm:$0xf] }
  0x7f   : > { %1858 = vmatpush.bf16.msrb.mxu1 %v4547_v27  ;;  %1837 = vmatmul.bf16.vlgmr.msrb.gmra.mxu2 %v7230_v42  ;;  %v6121_v27 = vld [vmem:[%s9446_s2 + $0x134] sm:$0xf0]  ;;  %v5186_v0 = vld [vmem:[%s9446_s2 + $0x5c8] sm:$0xf]  ;;  %v4551_v20 = vor.u32 %v6107_v11, %v4548_v14  ;;  %v6123_v11 = vld [vmem:[%s9446_s2 + $0x14c] sm:$0xf] }
  0x80   : > { %1899 = vmatpush.bf16.msra.mxu2 %v4947_v26  ;;  %v4594_v26 = vld [vmem:[%s9446_s2 + $0x128] sm:$0xf]  ;;  %v6149_v51 = vld [vmem:[%s9446_s2 + $0x214] sm:$0xf0]  ;;  %v4612_v14 = vld [vmem:[%s9446_s2 + $0x158] sm:$0xf0] }
  0x81   : > { %1872 = vmatpush.bf16.msrb.mxu3 %v4675_v31  ;;  %v4467_v31 = vor.u32 %v6089_v25, %v4466_v24  ;;  %v4595_v35 = vor.u32 %v6121_v27, %v4594_v26  ;;  %v6181_v56 = vld [vmem:[%s9446_s2 + $0x314] sm:$0xf0]  ;;  %v4707_v1 = vor.u32 %v6149_v51, %v4706_v49  ;;  %v5042_v15 = vld [vmem:[%s9446_s2 + $0x4a8] sm:$0xf]  ;;  %v6103_v24 = vld [vmem:[%s9446_s2 + $0xac] sm:$0xf] }
  0x82   : > { %1886 = vmatpush.bf16.msra.mxu0 %v4803_v38  ;;  %v6085_v38 = vld [vmem:[%s9446_s2 + $0x14] sm:$0xf0]  ;;  %v4532_v26 = vld [vmem:[%s9446_s2 + $0xb8] sm:$0xf0]  ;;  %v5026_v27 = vld [vmem:[%s9446_s2 + $0x488] sm:$0xf] }
  0x83   : > { %1859 = vmatpush.bf16.msrb.mxu1 %v4531_v40  ;;  %v6117_v40 = vld [vmem:[%s9446_s2 + $0x114] sm:$0xf0]  ;;  %v4451_v48 = vor.u32 %v6085_v38, %v4450_v36  ;;  %v5154_v29 = vld [vmem:[%s9446_s2 + $0x588] sm:$0xf]  ;;  %v4535_v32 = vor.u32 %v6103_v24, %v4532_v26  ;;  %v6099_v36 = vld [vmem:[%s9446_s2 + $0x8c] sm:$0xf]  ;;  %v4615_v24 = vor.u32 %v6123_v11, %v4612_v14 }
  0x84   : > { %1900 = vmatpush.bf16.msra.mxu2 %v4931_v39  ;;  %v4578_v39 = vld [vmem:[%s9446_s2 + $0x108] sm:$0xf]  ;;  %v6237_v63 = vld [vmem:[%s9446_s2 + $0x4d4] sm:$0xf0]  ;;  %v4644_v49 = vld [vmem:[%s9446_s2 + $0x198] sm:$0xf0] }
  0x85   : > { %1873 = vmatpush.bf16.msrb.mxu3 %v4659_v45  ;;  %v5202_v45 = vld [vmem:[%s9446_s2 + $0x5e8] sm:$0xf]  ;;  %v6269_v2 = vld [vmem:[%s9446_s2 + $0x5d4] sm:$0xf0]  ;;  %v5059_v7 = vor.u32 %v6237_v63, %v5058_v60  ;;  %v6095_v51 = vld [vmem:[%s9446_s2 + $0x6c] sm:$0xf] }
  0x86   : > { %1887 = vmatpush.bf16.msra.mxu0 %v4787_v52  ;;  %v4834_v52 = vld [vmem:[%s9446_s2 + $0x308] sm:$0xf]  ;;  %v6277_v4 = vld [vmem:[%s9446_s2 + $0x614] sm:$0xf0]  ;;  %v5187_v12 = vor.u32 %v6269_v2, %v5186_v0  ;;  %v6127_v0 = vld [vmem:[%s9446_s2 + $0x16c] sm:$0xf] }
  0x87   : > { %1860 = vmatpush.bf16.msrb.mxu1 %v4515_v55  ;;  %v5075_v55 = vor.u32 %v6241_v43, %v5074_v41  ;;  %v6225_v41 = vld [vmem:[%s9446_s2 + $0x474] sm:$0xf0]  ;;  %v5138_v43 = vld [vmem:[%s9446_s2 + $0x568] sm:$0xf]  ;;  %v6091_v2 = vld [vmem:[%s9446_s2 + $0x4c] sm:$0xf] }
  0x88   : > { %1901 = vmatpush.bf16.msra.mxu2 %v4915_v53  ;;  %v4579_v53 = vor.u32 %v6117_v40, %v4578_v39  ;;  %v4516_v39 = vld [vmem:[%s9446_s2 + $0x98] sm:$0xf0]  ;;  %v5010_v40 = vld [vmem:[%s9446_s2 + $0x468] sm:$0xf]  ;;  %v6195_v11 = vld [vmem:[%s9446_s2 + $0x38c] sm:$0xf] }
  0x89   : > { %1874 = vmatpush.bf16.msrb.mxu3 %v4643_v59  ;;  %5225 = vmatmul.msk.bf16.vlgmr.msrb.gmra.mxu0 %vm1657_vm0, %v7130_v50  ;;  %v5203_v59 = vor.u32 %v6273_v46, %v5202_v45  ;;  %v4519_v46 = vor.u32 %v6099_v36, %v4516_v39  ;;  %v4948_v26 = vld [vmem:[%s9446_s2 + $0x3f8] sm:$0xf0]  ;;  %v6171_v39 = vld [vmem:[%s9446_s2 + $0x2cc] sm:$0xf] }
  0x8a   : > { %1888 = vmatpush.bf16.msra.mxu0 %v4771_v3  ;;  %v5218_v3 = vld [vmem:[%s9446_s2 + $0x608] sm:$0xf] }
  0x8b   : > { %1861 = vmatpush.bf16.msrb.mxu1 %v4499_v6  ;;  %v4567_v6 = vor.u32 %v6111_v57, %v4564_v58  ;;  %v5219_v13 = vor.u32 %v6277_v4, %v5218_v3  ;;  %v5122_v57 = vld [vmem:[%s9446_s2 + $0x548] sm:$0xf]  ;;  %v6253_v58 = vld [vmem:[%s9446_s2 + $0x554] sm:$0xf0]  ;;  %v4484_v4 = vld [vmem:[%s9446_s2 + $0x58] sm:$0xf0] }
  0x8c   : > { %1902 = vmatpush.bf16.msra.mxu2 %v4899_v5  ;;  %v4835_v5 = vor.u32 %v6181_v56, %v4834_v52  ;;  %v6221_v56 = vld [vmem:[%s9446_s2 + $0x454] sm:$0xf0]  ;;  %v5123_v3 = vor.u32 %v6253_v58, %v5122_v57  ;;  %v6167_v57 = vld [vmem:[%s9446_s2 + $0x2ac] sm:$0xf]  ;;  %v4788_v58 = vld [vmem:[%s9446_s2 + $0x2b8] sm:$0xf0] }
  0x8d   : > { %1875 = vmatpush.bf16.msrb.mxu3 %v4627_v10  ;;  %v4692_v10 = vld [vmem:[%s9446_s2 + $0x1f8] sm:$0xf0] }
  0x8e   : > { %1889 = vmatpush.bf16.msra.mxu0 %v4755_v16  ;;  %v6233_v16 = vld [vmem:[%s9446_s2 + $0x4b4] sm:$0xf0]  ;;  %v4695_v19 = vor.u32 %v6143_v9, %v4692_v10 }
  0x8f   : > { %1862 = vmatpush.bf16.msrb.mxu1 %v4483_v18  ;;  %v6265_v18 = vld [vmem:[%s9446_s2 + $0x5b4] sm:$0xf0]  ;;  %v5043_v21 = vor.u32 %v6233_v16, %v5042_v15  ;;  %v6087_v15 = vld [vmem:[%s9446_s2 + $0x2c] sm:$0xf]  ;;  %v4468_v16 = vld [vmem:[%s9446_s2 + $0x38] sm:$0xf0] }
  0x90   : > { %1903 = vmatpush.bf16.msra.mxu2 %v4883_v17  ;;  %v5170_v17 = vld [vmem:[%s9446_s2 + $0x5a8] sm:$0xf]  ;;  %v6249_v9 = vld [vmem:[%s9446_s2 + $0x534] sm:$0xf0] }
  0x91   : > { %1876 = vmatpush.bf16.msrb.mxu3 %v4611_v22  ;;  %v6139_v22 = vld [vmem:[%s9446_s2 + $0x1cc] sm:$0xf]  ;;  %v5171_v25 = vor.u32 %v6265_v18, %v5170_v17  ;;  %v4962_v18 = vld [vmem:[%s9446_s2 + $0x408] sm:$0xf] }
  0x92   : > { %1890 = vmatpush.bf16.msra.mxu0 %v4739_v28  ;;  %v6229_v28 = vld [vmem:[%s9446_s2 + $0x494] sm:$0xf0] }
  0x93   : > { %1863 = vmatpush.bf16.msrb.mxu1 %v4467_v31  ;;  %v4679_v31 = vor.u32 %v6139_v22, %v4676_v23  ;;  %v5027_v33 = vor.u32 %v6229_v28, %v5026_v27  ;;  %v6175_v22 = vld [vmem:[%s9446_s2 + $0x2ec] sm:$0xf]  ;;  %v4820_v23 = vld [vmem:[%s9446_s2 + $0x2f8] sm:$0xf0]  ;;  %v4471_v27 = vor.u32 %v6087_v15, %v4468_v16 }
  0x94   : > { %1904 = vmatpush.bf16.msra.mxu2 %v4867_v30  ;;  %v6261_v30 = vld [vmem:[%s9446_s2 + $0x594] sm:$0xf0]  ;;  %v6263_v16 = vld [vmem:[%s9446_s2 + $0x5ac] sm:$0xf] }
  0x95   : > { %1877 = vmatpush.bf16.msrb.mxu3 %v4595_v35  ;;  %v4660_v35 = vld [vmem:[%s9446_s2 + $0x1b8] sm:$0xf0]  ;;  %v5155_v38 = vor.u32 %v6261_v30, %v5154_v29  ;;  %v6119_v29 = vld [vmem:[%s9446_s2 + $0x12c] sm:$0xf] }
  0x96   : > { %1891 = vmatpush.bf16.msra.mxu0 %v4723_v44  ;;  %v6257_v44 = vld [vmem:[%s9446_s2 + $0x574] sm:$0xf0]  ;;  %v4663_v45 = vor.u32 %v6135_v34, %v4660_v35  ;;  %v4596_v30 = vld [vmem:[%s9446_s2 + $0x138] sm:$0xf0]  ;;  %v6239_v35 = vld [vmem:[%s9446_s2 + $0x4ec] sm:$0xf] }
  0x97   : > { %1864 = vmatpush.bf16.msrb.mxu1 %v4451_v48  ;;  %v6131_v48 = vld [vmem:[%s9446_s2 + $0x18c] sm:$0xf]  ;;  %v5139_v52 = vor.u32 %v6257_v44, %v5138_v43  ;;  %v4452_v34 = vld [vmem:[%s9446_s2 + $0x18] sm:$0xf0] }
  0x98   : > { %1905 = vmatpush.bf16.msra.mxu2 %v4851_v47  ;;  %v5011_v47 = vor.u32 %v6225_v41, %v5010_v40  ;;  %v4804_v40 = vld [vmem:[%s9446_s2 + $0x2d8] sm:$0xf0]  ;;  %v4599_v41 = vor.u32 %v6119_v29, %v4596_v30  ;;  %v6203_v43 = vld [vmem:[%s9446_s2 + $0x3cc] sm:$0xf] }
  0x99   : > { %1878 = vmatpush.bf16.msrb.mxu3 %v4579_v53  ;;  %v4500_v53 = vld [vmem:[%s9446_s2 + $0x78] sm:$0xf0] }
  0x9a   : > { %1892 = vmatpush.bf16.msra.mxu0 %v4707_v1  ;;  %1865 = vmatmul.bf16.vlgmr.msrb.gmra.mxu1 %v7023_v61  ;;  %v4503_v60 = vor.u32 %v6095_v51, %v4500_v53  ;;  %v4628_v1 = vld [vmem:[%s9446_s2 + $0x178] sm:$0xf0]  ;;  %v6271_v51 = vld [vmem:[%s9446_s2 + $0x5ec] sm:$0xf] }
  0x9b   : > { %1913 = vmatpush.bf16.msra.mxu1 %v5075_v55  ;;  %v4994_v55 = vld [vmem:[%s9446_s2 + $0x448] sm:$0xf]  ;;  %v4631_v10 = vor.u32 %v6127_v0, %v4628_v1  ;;  %v4932_v44 = vld [vmem:[%s9446_s2 + $0x3d8] sm:$0xf0]  ;;  %v6235_v53 = vld [vmem:[%s9446_s2 + $0x4cc] sm:$0xf] }
  0x9c   : > { %1879 = vmatmul.bf16.vlgmr.msrb.gmra.mxu3 %v7043_v8  ;;  %1906 = vmatpush.bf16.msra.mxu2 %v4835_v5  ;;  %v4995_v63 = vor.u32 %v6221_v56, %v4994_v55  ;;  %v4978_v5 = vld [vmem:[%s9446_s2 + $0x428] sm:$0xf]  ;;  %v4935_v55 = vor.u32 %v6203_v43, %v4932_v44  ;;  %v5060_v56 = vld [vmem:[%s9446_s2 + $0x4d8] sm:$0xf0] }
  0x9d   : > { %1927 = vmatpush.bf16.msra.mxu3 %v5203_v59  ;;  %1893 = vmatmul.bf16.vlgmr.msra.gmra.mxu0 %v7015_v54  ;;  %v4647_v59 = vor.u32 %v6131_v48, %v4644_v49  ;;  %v4807_v49 = vor.u32 %v6171_v39, %v4804_v40  ;;  %v5063_v1 = vor.u32 %v6235_v53, %v5060_v56  ;;  %v5012_v30 = vld [vmem:[%s9446_s2 + $0x478] sm:$0xf0]  ;;  %v6255_v39 = vld [vmem:[%s9446_s2 + $0x56c] sm:$0xf] }
  0x9e   : > { %1948 = vmatpush.bf16.msrb.mxu0 %v5219_v13  ;;  %v5140_v40 = vld [vmem:[%s9446_s2 + $0x578] sm:$0xf0] }
  0x9f   : > { %1914 = vmatpush.bf16.msra.mxu1 %v5059_v7  ;;  %1907 = vmatmul.bf16.vlgmr.msra.gmra.mxu2 %v7025_v62  ;;  %v5106_v7 = vld [vmem:[%s9446_s2 + $0x528] sm:$0xf]  ;;  %v4996_v44 = vld [vmem:[%s9446_s2 + $0x458] sm:$0xf0] }
  0xa0   : > { %1955 = vmatpush.bf16.msrb.mxu2 %v4567_v6  ;;  %v6217_v6 = vld [vmem:[%s9446_s2 + $0x434] sm:$0xf0]  ;;  %v5107_v17 = vor.u32 %v6249_v9, %v5106_v7  ;;  %v5044_v7 = vld [vmem:[%s9446_s2 + $0x4b8] sm:$0xf0]  ;;  %v6163_v9 = vld [vmem:[%s9446_s2 + $0x28c] sm:$0xf] }
  0xa1   : > { %1928 = vmatpush.bf16.msra.mxu3 %v5187_v12  ;;  %v4487_v12 = vor.u32 %v6091_v2, %v4484_v4  ;;  %v4979_v13 = vor.u32 %v6217_v6, %v4978_v5  ;;  %v4791_v2 = vor.u32 %v6167_v57, %v4788_v58  ;;  %v5188_v4 = vld [vmem:[%s9446_s2 + $0x5d8] sm:$0xf0]  ;;  %v6231_v5 = vld [vmem:[%s9446_s2 + $0x4ac] sm:$0xf] }
  0xa2   : > { %1969 = vmatpush.bf16.msra.mxu0 %v4695_v19  ;;  %v6213_v19 = vld [vmem:[%s9446_s2 + $0x414] sm:$0xf0]  ;;  %v5047_v14 = vor.u32 %v6231_v5, %v5044_v7  ;;  %v5124_v56 = vld [vmem:[%s9446_s2 + $0x558] sm:$0xf0]  ;;  %v6215_v57 = vld [vmem:[%s9446_s2 + $0x42c] sm:$0xf] }
  0xa3   : > { %1915 = vmatpush.bf16.msra.mxu1 %v5043_v21  ;;  %v6245_v21 = vld [vmem:[%s9446_s2 + $0x514] sm:$0xf0]  ;;  %v4963_v28 = vor.u32 %v6213_v19, %v4962_v18  ;;  %v6227_v18 = vld [vmem:[%s9446_s2 + $0x48c] sm:$0xf]  ;;  %v5028_v19 = vld [vmem:[%s9446_s2 + $0x498] sm:$0xf0] }
  0xa4   : > { %1956 = vmatpush.bf16.msrb.mxu2 %v4551_v20  ;;  %v5090_v20 = vld [vmem:[%s9446_s2 + $0x508] sm:$0xf]  ;;  %v4980_v58 = vld [vmem:[%s9446_s2 + $0x438] sm:$0xf0] }
  0xa5   : > { %1929 = vmatpush.bf16.msra.mxu3 %v5171_v25  ;;  %v6207_v25 = vld [vmem:[%s9446_s2 + $0x3ec] sm:$0xf]  ;;  %v5220_v5 = vld [vmem:[%s9446_s2 + $0x618] sm:$0xf0] }
  0xa6   : > { %1970 = vmatpush.bf16.msra.mxu0 %v4679_v31  ;;  %v5091_v31 = vor.u32 %v6245_v21, %v5090_v20  ;;  %v4951_v36 = vor.u32 %v6207_v25, %v4948_v26  ;;  %v6159_v20 = vld [vmem:[%s9446_s2 + $0x26c] sm:$0xf]  ;;  %v4756_v21 = vld [vmem:[%s9446_s2 + $0x278] sm:$0xf0]  ;;  %v5031_v25 = vor.u32 %v6227_v18, %v5028_v19 }
  0xa7   : > { %1916 = vmatpush.bf16.msra.mxu1 %v5027_v33  ;;  %v6083_v33 = vld [vmem:[%s9446_s2 + $0xc] sm:$0xf]  ;;  %v4759_v26 = vor.u32 %v6159_v20, %v4756_v21  ;;  %v6285_v18 = vld [vmem:[%s9448_s4 + $0x38] sm:$0xff] }
  0xa8   : > { %1957 = vmatpush.bf16.msrb.mxu2 %v4535_v32  ;;  %v4823_v32 = vor.u32 %v6175_v22, %v4820_v23  ;;  %v6191_v22 = vld [vmem:[%s9446_s2 + $0x36c] sm:$0xf]  ;;  %v4884_v23 = vld [vmem:[%s9446_s2 + $0x378] sm:$0xf0] }
  0xa9   : > { %1930 = vmatpush.bf16.msra.mxu3 %v5155_v38  ;;  %v5076_v38 = vld [vmem:[%s9446_s2 + $0x4f8] sm:$0xf0]  ;;  %v4887_v29 = vor.u32 %v6191_v22, %v4884_v23  ;;  %v6243_v20 = vld [vmem:[%s9446_s2 + $0x50c] sm:$0xf]  ;;  %v6284_v23 = vld [vmem:[%s9448_s4 + $0x30] sm:$0xff] }
  0xaa   : > { %1971 = vmatpush.bf16.msra.mxu0 %v4663_v45  ;;  %v4455_v45 = vor.u32 %v6083_v33, %v4452_v34  ;;  %v5079_v48 = vor.u32 %v6239_v35, %v5076_v38  ;;  %v6187_v33 = vld [vmem:[%s9446_s2 + $0x34c] sm:$0xf]  ;;  %v4868_v34 = vld [vmem:[%s9446_s2 + $0x358] sm:$0xf0] }
  0xab   : > { %1917 = vmatpush.bf16.msra.mxu1 %v5011_v47  ;;  %v4580_v47 = vld [vmem:[%s9446_s2 + $0x118] sm:$0xf0]  ;;  %v4871_v43 = vor.u32 %v6187_v33, %v4868_v34 }
  0xac   : > { %1958 = vmatpush.bf16.msrb.mxu2 %v4519_v46  ;;  %v6115_v46 = vld [vmem:[%s9446_s2 + $0x10c] sm:$0xf]  ;;  %v5092_v21 = vld [vmem:[%s9446_s2 + $0x518] sm:$0xf0] }
  0xad   : > { %1931 = vmatpush.bf16.msra.mxu3 %v5139_v52  ;;  %5226 = vmatmul.msk.bf16.vlgmr.msrb.gmra.mxu0 %vm1657_vm0, %v7130_v50  ;;  %v5204_v52 = vld [vmem:[%s9446_s2 + $0x5f8] sm:$0xf0] }
  0xae   : > { %1972 = vmatpush.bf16.msra.mxu0 %v4647_v59  ;;  %v4583_v59 = vor.u32 %v6115_v46, %v4580_v47  ;;  %v5207_v0 = vor.u32 %v6271_v51, %v5204_v52  ;;  %v4724_v46 = vld [vmem:[%s9446_s2 + $0x238] sm:$0xf0]  ;;  %v6183_v47 = vld [vmem:[%s9446_s2 + $0x32c] sm:$0xf]  ;;  %v7960_v52 = vld [vmem:[%s9447_s3] sm:$0xf] }
  0xaf   : > { %1918 = vmatpush.bf16.msra.mxu1 %v4995_v63  ;;  %v4916_v63 = vld [vmem:[%s9446_s2 + $0x3b8] sm:$0xf0]  ;;  %v6251_v51 = vld [vmem:[%s9446_s2 + $0x54c] sm:$0xf] }
  0xb0   : > { %1959 = vmatpush.bf16.msrb.mxu2 %v4503_v60  ;;  %v6199_v60 = vld [vmem:[%s9446_s2 + $0x3ac] sm:$0xf]  ;;  %v5127_v7 = vor.u32 %v6251_v51, %v5124_v56 }
  0xb1   : > { %1932 = vmatpush.bf16.msra.mxu3 %v5123_v3  ;;  %v6267_v3 = vld [vmem:[%s9446_s2 + $0x5cc] sm:$0xf]  ;;  %v4919_v6 = vor.u32 %v6199_v60, %v4916_v63 }
  0xb2   : > { %1973 = vmatpush.bf16.msra.mxu0 %v4631_v10  ;;  %v4772_v10 = vld [vmem:[%s9446_s2 + $0x298] sm:$0xf0]  ;;  %v6147_v63 = vld [vmem:[%s9446_s2 + $0x20c] sm:$0xf] }
  0xb3   : > { %1919 = vmatpush.bf16.msra.mxu1 %v4979_v13  ;;  %v5191_v13 = vor.u32 %v6267_v3, %v5188_v4  ;;  %v4775_v15 = vor.u32 %v6163_v9, %v4772_v10  ;;  %v4836_v3 = vld [vmem:[%s9446_s2 + $0x318] sm:$0xf0]  ;;  %v6275_v4 = vld [vmem:[%s9446_s2 + $0x60c] sm:$0xf]  ;;  %v4983_v9 = vor.u32 %v6215_v57, %v4980_v58 }
  0xb4   : > { %1960 = vmatpush.bf16.msrb.mxu2 %v4487_v12  ;;  %v4900_v12 = vld [vmem:[%s9446_s2 + $0x398] sm:$0xf0] }
  0xb5   : > { %1933 = vmatpush.bf16.msra.mxu3 %v5107_v17  ;;  %v5172_v17 = vld [vmem:[%s9446_s2 + $0x5b8] sm:$0xf0] }
  0xb6   : > { %1974 = vmatpush.bf16.msra.mxu0 %v4615_v24  ;;  %v5175_v24 = vor.u32 %v6263_v16, %v5172_v17  ;;  %v4964_v16 = vld [vmem:[%s9446_s2 + $0x418] sm:$0xf0]  ;;  %v5223_v17 = vor.u32 %v6275_v4, %v5220_v5  ;;  %v635_v4 = vperm.slane %v7960_v52, 1  ;;  %v6286_v5 = vld [vmem:[%s9448_s4 + $0x40] sm:$0xff] }
  0xb7   : > { %1920 = vmatpush.bf16.msra.mxu1 %v4963_v28  ;;  %v6223_v28 = vld [vmem:[%s9446_s2 + $0x46c] sm:$0xf] }
  0xb8   : > { %1961 = vmatpush.bf16.msrb.mxu2 %v4471_v27  ;;  %v6259_v27 = vld [vmem:[%s9446_s2 + $0x58c] sm:$0xf] }
  0xb9   : > { %1934 = vmatpush.bf16.msra.mxu3 %v5091_v31  ;;  %v6155_v31 = vld [vmem:[%s9446_s2 + $0x24c] sm:$0xf] }
  0xba   : > { %1975 = vmatpush.bf16.msra.mxu0 %v4599_v41  ;;  %1921 = vmatmul.bf16.vlgmr.msra.gmra.mxu1 %v7219_v37  ;;  %v6219_v41 = vld [vmem:[%s9446_s2 + $0x44c] sm:$0xf] }
  0xbb   : > { %1983 = vmatpush.bf16.msrb.mxu1 %v4823_v32  ;;  %v4740_v32 = vld [vmem:[%s9446_s2 + $0x258] sm:$0xf0]  ;;  %v4999_v53 = vor.u32 %v6219_v41, %v4996_v44  ;;  %v6291_v41 = vld [vmem:[%s9448_s4 + $0x68] sm:$0xff]  ;;  %v6280_v44 = vld [vmem:[%s9448_s4 + $0x10] sm:$0xff] }
  0xbc   : > { %1935 = vmatmul.bf16.vlgmr.msra.gmra.mxu3 %v7230_v42  ;;  %1962 = vmatpush.bf16.msrb.mxu2 %v4455_v45  ;;  %v4743_v38 = vor.u32 %v6155_v31, %v4740_v32  ;;  %v6151_v45 = vld [vmem:[%s9446_s2 + $0x22c] sm:$0xf] }
  0xbd   : > { %1997 = vmatpush.bf16.msrb.mxu3 %v4951_v36  ;;  %v5015_v36 = vor.u32 %v6223_v28, %v5012_v30  ;;  %v6283_v30 = vld [vmem:[%s9448_s4 + $0x28] sm:$0xff] }
  0xbe   : > { %1976 = vmatpush.bf16.msra.mxu0 %v4583_v59  ;;  %v1670_v59 = vpop.f32.mrf.mxu0 }
  0xbf   : > { %1984 = vmatpush.bf16.msrb.mxu1 %v4807_v49  ;;  %1963 = vmatmul.bf16.vlgmr.msrb.gmra.mxu2 %v7023_v61  ;;  %v4903_v61 = vor.u32 %v6195_v11, %v4900_v12  ;;  %v5143_v49 = vor.u32 %v6255_v39, %v5140_v40  ;;  %v6247_v11 = vld [vmem:[%s9446_s2 + $0x52c] sm:$0xf]  ;;  %v5108_v12 = vld [vmem:[%s9446_s2 + $0x538] sm:$0xf0] }
  0xc0   : > { %2011 = vmatpush.bf16.msra.mxu2 %v5079_v48  ;;  %v4852_v48 = vld [vmem:[%s9446_s2 + $0x338] sm:$0xf0] }
  0xc1   : > { %1998 = vmatpush.bf16.msrb.mxu3 %v4935_v55  ;;  %1977 = vmatmul.bf16.vlgmr.msra.gmra.mxu0 %v7043_v8  ;;  %v5156_v8 = vld [vmem:[%s9446_s2 + $0x598] sm:$0xf0]  ;;  %v4727_v55 = vor.u32 %v6151_v45, %v4724_v46  ;;  %v4855_v60 = vor.u32 %v6183_v47, %v4852_v48 }
  0xc2   : > { %2025 = vmatpush.bf16.msrb.mxu0 %v5207_v0  ;;  %v5159_v35 = vor.u32 %v6259_v27, %v5156_v8  ;;  %v4708_v0 = vld [vmem:[%s9446_s2 + $0x218] sm:$0xf0]  ;;  %v1712_v8 = vpop.f32.mrf.mxu3 }
  0xc3   : > { %1985 = vmatpush.bf16.msrb.mxu1 %v4791_v2  ;;  %v1684_v2 = vpop.f32.mrf.mxu1  ;;  %v4711_v10 = vor.u32 %v6147_v63, %v4708_v0  ;;  %v6288_v0 = vld [vmem:[%s9448_s4 + $0x50] sm:$0xff] }
  0xc4   : > { %2012 = vmatpush.bf16.msra.mxu2 %v5063_v1  ;;  %v6179_v1 = vld [vmem:[%s9446_s2 + $0x30c] sm:$0xf] }
  0xc5   : > { %1999 = vmatpush.bf16.msrb.mxu3 %v4919_v6  ;;  %v1698_v6 = vpop.f32.mrf.mxu2 }
  0xc6   : > { %2026 = vmatpush.bf16.msrb.mxu0 %v5191_v13  ;;  %v634_v13 = vperm.slane %v7960_v52, 0 }
  0xc7   : > { %1986 = vmatpush.bf16.msrb.mxu1 %v4775_v15  ;;  %v6211_v15 = vld [vmem:[%s9446_s2 + $0x40c] sm:$0xf] }
  0xc8   : > { %2013 = vmatpush.bf16.msra.mxu2 %v5047_v14  ;;  %v4839_v14 = vor.u32 %v6179_v1, %v4836_v3  ;;  %v4967_v19 = vor.u32 %v6211_v15, %v4964_v16  ;;  %v1671_v22 = vadd.f32 %v1670_v59, %v634_v13  ;;  %v6278_v59 = vld [vmem:[%s9448_s4] sm:$0xff]  ;;  %v6287_v3 = vld [vmem:[%s9448_s4 + $0x48] sm:$0xff] }
  0xc9   : > { %2000 = vmatpush.bf16.msrb.mxu3 %v4903_v61  ;;  %v5111_v61 = vor.u32 %v6247_v11, %v5108_v12 }
  0xca   : > { %2027 = vmatpush.bf16.msrb.mxu0 %v5175_v24  ;;  %v1672_v24 = vpop.f32.mrf.mxu0  ;;  %v1685_v27 = vadd.f32 %v1684_v2, %v1671_v22  ;;  %v1714_v39 = vpop.f32.mrf.mxu3 }
  0xcb   : > { %1987 = vmatpush.bf16.msrb.mxu1 %v4759_v26  ;;  %v1686_v26 = vpop.f32.mrf.mxu1 }
  0xcc   : > { %2014 = vmatpush.bf16.msra.mxu2 %v5031_v25  ;;  %v5095_v25 = vor.u32 %v6243_v20, %v5092_v21  ;;  %v1699_v31 = vadd.f32 %v1698_v6, %v1685_v27 }
  0xcd   : > { %2001 = vmatpush.bf16.msrb.mxu3 %v4887_v29  ;;  %v1700_v28 = vpop.f32.mrf.mxu2  ;;  %v1673_v29 = vadd.f32 %v1672_v24, %v634_v13 }
  0xce   : > { %2028 = vmatpush.bf16.msrb.mxu0 %v5159_v35  ;;  %v1713_v35 = vadd.f32 %v1712_v8, %v1699_v31  ;;  %v6300_v8 = vld [vmem:[%s9448_s4 + $0xb0] sm:$0xff] }
  0xcf   : > { %1988 = vmatpush.bf16.msrb.mxu1 %v4743_v38  ;;  %v1687_v32 = vadd.f32 %v1686_v26, %v1673_v29 }
  0xd0   : > { %2015 = vmatpush.bf16.msra.mxu2 %v5015_v36 }
  0xd1   : > { %2002 = vmatpush.bf16.msrb.mxu3 %v4871_v43  ;;  %v1701_v38 = vadd.f32 %v1700_v28, %v1687_v32  ;;  %v6299_v32 = vld [vmem:[%s9448_s4 + $0xa8] sm:$0xff] }
  0xd2   : > { %2029 = vmatpush.bf16.msrb.mxu0 %v5143_v49  ;;  %v6290_v49 = vld [vmem:[%s9448_s4 + $0x60] sm:$0xff] }
  0xd3   : > { %1989 = vmatpush.bf16.msrb.mxu1 %v4727_v55  ;;  %v1715_v43 = vadd.f32 %v1714_v39, %v1701_v38  ;;  %v6295_v39 = vld [vmem:[%s9448_s4 + $0x88] sm:$0xff] }
  0xd4   : > { %2016 = vmatpush.bf16.msra.mxu2 %v4999_v53  ;;  %v6279_v53 = vld [vmem:[%s9448_s4 + $0x8] sm:$0xff] }
  0xd5   : > { %2003 = vmatpush.bf16.msrb.mxu3 %v4855_v60  ;;  %v1754_v36 = vpop.f32.mrf.mxu2 }
  0xd6   : > { %2030 = vmatpush.bf16.msrb.mxu0 %v5127_v7  ;;  %v1726_v33 = vpop.f32.mrf.mxu0 }
  0xd7   : > { %1990 = vmatpush.bf16.msrb.mxu1 %v4711_v10  ;;  %v1740_v34 = vpop.f32.mrf.mxu1  ;;  %v1727_v40 = vadd.f32 %v1726_v33, %v1713_v35  ;;  %v6297_v35 = vld [vmem:[%s9448_s4 + $0x98] sm:$0xff] }
  0xd8   : > { %2017 = vmatpush.bf16.msra.mxu2 %v4983_v9 }
  0xd9   : > { %2004 = vmatpush.bf16.msrb.mxu3 %v4839_v14  ;;  %v1741_v45 = vadd.f32 %v1740_v34, %v1727_v40  ;;  %v6298_v34 = vld [vmem:[%s9448_s4 + $0xa0] sm:$0xff] }
  0xda   : > { %2031 = vmatpush.bf16.msrb.mxu0 %v5111_v61  ;;  %1991 = vmatmul.bf16.vlgmr.msrb.gmra.mxu1 %v7015_v54  ;;  %v6293_v54 = vld [vmem:[%s9448_s4 + $0x78] sm:$0xff]  ;;  %v6294_v40 = vld [vmem:[%s9448_s4 + $0x80] sm:$0xff] }
  0xdb   : > { %2046 = vmatpush.bf16.msra.mxu1 %v5223_v17  ;;  %v1755_v55 = vadd.f32 %v1754_v36, %v1741_v45  ;;  %v6296_v36 = vld [vmem:[%s9448_s4 + $0x90] sm:$0xff] }
  0xdc   : > { %2005 = vmatmul.bf16.vlgmr.msrb.gmra.mxu3 %v7025_v62  ;;  %2018 = vmatpush.bf16.msra.mxu2 %v4967_v19  ;;  %v6282_v62 = vld [vmem:[%s9448_s4 + $0x20] sm:$0xff] }
  0xdd   : > { %2272 = vmatpush.bf16.msra.mxu3 %v6285_v18  ;;  %v1756_v56 = vpop.f32.mrf.mxu2  ;;  %v2053_v60 = vmax.f32 %v1755_v55, 0.0 }
  0xde   : > { %2032 = vmatpush.bf16.msrb.mxu0 %v5095_v25  ;;  %v1728_v46 = vpop.f32.mrf.mxu0  ;;  %v6301_v25 = vld [vmem:[%s9448_s4 + $0xb8] sm:$0xff] }
  0xdf   : > { %2019 = vmatmul.bf16.vlgmr.msra.gmra.mxu2 %v7219_v37  ;;  %2286 = vmatpush.bf16.msrb.mxu1 %v6293_v54  ;;  %v6292_v37 = vld [vmem:[%s9448_s4 + $0x70] sm:$0xff]  ;;  %v1729_v47 = vadd.f32 %v1728_v46, %v1715_v43  ;;  %v1742_v48 = vpop.f32.mrf.mxu1  ;;  %v1768_v63 = vpop.f32.mrf.mxu3  ;;  %v636_v43 = vperm.slane %v7960_v52, 2 }
  0xe0   : > { %v1769_v7 = vadd.f32 %v1768_v63, %v635_v4  ;;  %2300 = vmatpush.bf16.msrb.mxu2 %v6301_v25 }
  0xe1   : > { %2273 = vmatpush.bf16.msra.mxu3 %v6284_v23  ;;  %2033 = vmatmul.bf16.vlgmr.msrb.gmra.mxu0 %v7230_v42  ;;  %v6281_v42 = vld [vmem:[%s9448_s4 + $0x18] sm:$0xff]  ;;  %v1743_v51 = vadd.f32 %v1742_v48, %v1729_v47 }
  0xe3   : > { %2287 = vmatpush.bf16.msrb.mxu1 %v6292_v37  ;;  %v1757_v57 = vadd.f32 %v1756_v56, %v1743_v51 }
  0xe4   : > { %2301 = vmatpush.bf16.msrb.mxu2 %v6300_v8 }
  0xe5   : > { %2274 = vmatpush.bf16.msra.mxu3 %v6283_v30  ;;  %v2057_v58 = vmax.f32 %v1757_v57, 0.0  ;;  %v1782_v2 = vpop.f32.mrf.mxu2 }
  0xe6   : > { %v1783_v11 = vadd.f32 %v1782_v2, %v1769_v7 }
  0xe7   : > { %2288 = vmatpush.bf16.msrb.mxu1 %v6291_v41  ;;  %v2061_v1 = vpack.c.bf16 %v2057_v58, %v2053_v60  ;;  %v1770_v6 = vpop.f32.mrf.mxu3 }
  0xe8   : > { %v1771_v12 = vadd.f32 %v1770_v6, %v635_v4  ;;  %2302 = vmatpush.bf16.msrb.mxu2 %v6299_v32 }
  0xe9   : > { %2275 = vmatpush.bf16.msra.mxu3 %v6282_v62 }
  0xea   : > { %5227 = vmatmul.msk.bf16.vlgmr.msra.gmra.mxu1 %vm1657_vm0, %v7130_v50  ;;  %v6289_v50 = vld [vmem:[%s9448_s4 + $0x58] sm:$0xff] }
  0xeb   : > { %2289 = vmatpush.bf16.msrb.mxu1 %v6290_v49 }
  0xec   : > { %2303 = vmatpush.bf16.msrb.mxu2 %v6298_v34 }
  0xed   : > { %2276 = vmatpush.bf16.msra.mxu3 %v6281_v42  ;;  %v1784_v10 = vpop.f32.mrf.mxu2 }
  0xee   : > { %v1785_v15 = vadd.f32 %v1784_v10, %v1771_v12 }
  0xef   : > { %2290 = vmatpush.bf16.msrb.mxu1 %v6289_v50 }
  0xf0   : > { %2304 = vmatpush.bf16.msrb.mxu2 %v6297_v35 }
  0xf1   : > { %2277 = vmatpush.bf16.msra.mxu3 %v6280_v44 }
  0xf3   : > { %2291 = vmatpush.bf16.msrb.mxu1 %v6288_v0 }
  0xf4   : > { %2305 = vmatpush.bf16.msrb.mxu2 %v6296_v36 }
  0xf5   : > { %2278 = vmatpush.bf16.msra.mxu3 %v6279_v53 }
  0xf6   : > { %v1796_v9 = vpop.f32.mrf.mxu0 }
  0xf7   : > { %2292 = vmatpush.bf16.msrb.mxu1 %v6287_v3  ;;  %v1810_v13 = vpop.f32.mrf.mxu1  ;;  %v1797_v14 = vadd.f32 %v1796_v9, %v1783_v11 }
  0xf8   : > { %2306 = vmatpush.bf16.msrb.mxu2 %v6295_v39 }
  0xf9   : > { %2279 = vmatpush.bf16.msra.mxu3 %v6278_v59  ;;  %v1811_v61 = vadd.f32 %v1810_v13, %v1797_v14 }
  0xfb   : > { %2293 = vmatpush.bf16.msrb.mxu1 %v6286_v5 }
  0xfc   : > { %2280 = vmatmul.bf16.vlgmr.msra.gmra.mxu3 %v2061_v1  ;;  %2307 = vmatpush.bf16.msrb.mxu2 %v6294_v40 }
  0xfe   : > { %v1798_v17 = vpop.f32.mrf.mxu0 }
  0xff   : > { %v1824_v16 = vpop.f32.mrf.mxu3  ;;  %v1799_v19 = vadd.f32 %v1798_v17, %v1785_v15  ;;  %v1812_v20 = vpop.f32.mrf.mxu1  ;;  %v6302_v15 = vld [vmem:[%s9448_s4 + $0xc0] sm:$0xff] }
 0x100   : > { %v1825_v21 = vadd.f32 %v1824_v16, %v1811_v61  ;;  %2321 = vmatpush.bf16.msra.mxu0 %v6302_v15  ;;  %v637_v16 = vperm.slane %v7960_v52, 3 }
 0x101   : > { %v1813_v22 = vadd.f32 %v1812_v20, %v1799_v19 }
 0x102   : > { %v1838_v18 = vpop.f32.mrf.mxu2 }
 0x103   : > { %v1839_v26 = vadd.f32 %v1838_v18, %v1825_v21 }
 0x106   : > { %v1852_v24 = vpop.f32.mrf.mxu0 }
 0x107   : > { %v1826_v23 = vpop.f32.mrf.mxu3  ;;  %v1853_v29 = vadd.f32 %v1852_v24, %v1839_v26 }
 0x108   : > { %v1827_v27 = vadd.f32 %v1826_v23, %v1813_v22 }
 0x109   : > { %v2054_v62 = vmax.f32 %v1853_v29, 0.0 }
 0x10a   : > { %v1840_v28 = vpop.f32.mrf.mxu2 }
 0x10b   : > { %v1841_v30 = vadd.f32 %v1840_v28, %v1827_v27 }
 0x10e   : > { %v1854_v54 = vpop.f32.mrf.mxu0 }
 0x10f   : > { %v1855_v31 = vadd.f32 %v1854_v54, %v1841_v30 }
 0x111   : > { %v2058_v33 = vmax.f32 %v1855_v31, 0.0 }
 0x113   : > { %v2062_v37 = vpack.c.bf16 %v2058_v33, %v2054_v62 }
 0x115   : > { %2294 = vmatmul.bf16.vlgmr.msrb.gmra.mxu1 %v2062_v37 }
 0x117   : > { %v1866_v38 = vpop.f32.mrf.mxu1 }
 0x118   : > { %v1867_v46 = vadd.f32 %v1866_v38, %v636_v43 }
 0x11a   : > { %v1894_v42 = vpop.f32.mrf.mxu0 }
 0x11f   : > { %v1880_v41 = vpop.f32.mrf.mxu3  ;;  %v1868_v44 = vpop.f32.mrf.mxu1 }
 0x120   : > { %v1881_v49 = vadd.f32 %v1880_v41, %v1867_v46  ;;  %v1869_v51 = vadd.f32 %v1868_v44, %v636_v43  ;;  %v6527_v41 = vld [vmem:[%s9449_s5] ss:$0 sm:$0xff] }
 0x122   : > { %v1896_v45 = vpop.f32.mrf.mxu0  ;;  %v1908_v47 = vpop.f32.mrf.mxu2  ;;  %v1895_v56 = vadd.f32 %v1894_v42, %v1881_v49 }
 0x124   : > { %v1909_v58 = vadd.f32 %v1908_v47, %v1895_v56 }
 0x127   : > { %v1882_v48 = vpop.f32.mrf.mxu3 }
 0x128   : > { %v1883_v57 = vadd.f32 %v1882_v48, %v1869_v51 }
 0x12a   : > { %v1950_v55 = vpop.f32.mrf.mxu0  ;;  %v1897_v59 = vadd.f32 %v1896_v45, %v1883_v57  ;;  %v1910_v60 = vpop.f32.mrf.mxu2 }
 0x12c   : > { %v1911_v2 = vadd.f32 %v1910_v60, %v1897_v59 }
 0x132   : > { %v1952_v1 = vpop.f32.mrf.mxu0 }
 0x137   : > { %v1922_v53 = vpop.f32.mrf.mxu1 }
 0x138   : > { %v1923_v63 = vadd.f32 %v1922_v53, %v1909_v58 }
 0x13e   : > { %v1978_v13 = vpop.f32.mrf.mxu0 }
 0x13f   : > { %v1936_v50 = vpop.f32.mrf.mxu3  ;;  %v1924_v0 = vpop.f32.mrf.mxu1 }
 0x140   : > { %v1937_v3 = vadd.f32 %v1936_v50, %v1923_v63  ;;  %v1925_v4 = vadd.f32 %v1924_v0, %v1911_v2 }
 0x142   : > { %v1951_v6 = vadd.f32 %v1950_v55, %v1937_v3  ;;  %v1964_v12 = vpop.f32.mrf.mxu2 }
 0x143   : > { %v1965_v19 = vadd.f32 %v1964_v12, %v637_v16 }
 0x144   : > { %v2055_v10 = vmax.f32 %v1951_v6, 0.0 }
 0x145   : > { %v1979_v20 = vadd.f32 %v1978_v13, %v1965_v19  ;;  %v6305_v19 = vld [vmem:[%s9450_s6 + $0xc] sm:$0xf0] }
 0x146   : > { %v1980_v61 = vpop.f32.mrf.mxu0 }
 0x147   : > { %v1938_v5 = vpop.f32.mrf.mxu3 }
 0x148   : > { %v1939_v7 = vadd.f32 %v1938_v5, %v1925_v4  ;;  %v2353_v4 = vld [vmem:[%s9450_s6 + $0x20] sm:$0x33]  ;;  %v2354_v5 = vld [vmem:[%s9450_s6 + $0x28] sm:$0x33] }
 0x149   : > { %v2379_v6 = vunpack.c.l.b16 %v2353_v4 }
 0x14a   : > { %v1953_v9 = vadd.f32 %v1952_v1, %v1939_v7  ;;  %v1966_v18 = vpop.f32.mrf.mxu2  ;;  %v2380_v7 = vunpack.c.h.b16 %v2353_v4 }
 0x14b   : > { %v1967_v22 = vadd.f32 %v1966_v18, %v637_v16 }
 0x14c   : > { %v2059_v11 = vmax.f32 %v1953_v9, 0.0  ;;  %v2381_v9 = vunpack.c.l.b16 %v2354_v5  ;;  %v2388_v12 = vpack.c.b16 %v2380_v7, %v2380_v7 }
 0x14d   : > { %v1981_v26 = vadd.f32 %v1980_v61, %v1967_v22  ;;  %v5331_v61 = vld [vmem:[%s9450_s6] sm:$0xf]  ;;  %v5333_v22 = vld [vmem:[%s9450_s6 + $0x10] sm:$0xf0] }
 0x14e   : > { %v2063_v14 = vpack.c.bf16 %v2059_v11, %v2055_v10  ;;  %v2382_v10 = vunpack.c.h.b16 %v2354_v5  ;;  %v2387_v11 = vpack.c.b16 %v2379_v6, %v2379_v6  ;;  %v2389_v13 = vpack.c.b16 %v2381_v9, %v2381_v9  ;;  %v5659_v5 = vld [vmem:[%s9452_s8 + $0x268] sm:$0xf]  ;;  %v6387_v6 = vld [vmem:[%s9452_s8 + $0x280] sm:$0xf0] }
 0x14f   : > { %v2404_v16 = vsel %vm2399_vm2, %v2388_v12, 0 }
 0x150   : > { %2308 = vmatmul.bf16.vlgmr.msrb.gmra.mxu2 %v2063_v14  ;;  %v2390_v14 = vpack.c.b16 %v2382_v10, %v2382_v10  ;;  %v2401_v15 = vsel %vm2399_vm2, %v2387_v11, 0  ;;  %2432 = vmatpush.bf16.msrb.mxu0 %v2404_v16  ;;  %v5911_v10 = vld [vmem:[%s9452_s8 + $0x460] sm:$0xf]  ;;  %v6450_v11 = vld [vmem:[%s9452_s8 + $0x478] sm:$0xf0] }
 0x151   : > { %2418 = vmatpush.bf16.msrb.mxu3 %v2401_v15  ;;  %v5660_v15 = vor.u32 %v6387_v6, %v5659_v5  ;;  %v5631_v16 = vld [vmem:[%s9452_s8 + $0x230] sm:$0xf]  ;;  %v6335_v5 = vld [vmem:[%s9452_s8 + $0xe4] sm:$0xf]  ;;  %v5465_v6 = vld [vmem:[%s9452_s8 + $0xfc] sm:$0xf0] }
 0x152   : > { %v2410_v18 = vsel %vm2399_vm2, %v2390_v14, 0  ;;  %v6324_v14 = vld [vmem:[%s9452_s8 + $0x88] sm:$0xf0] }
 0x153   : > { %2460 = vmatpush.bf16.msra.mxu2 %v2410_v18  ;;  %v5912_v18 = vor.u32 %v6450_v11, %v5911_v10  ;;  %v6391_v10 = vld [vmem:[%s9452_s8 + $0x2a4] sm:$0xf]  ;;  %v5689_v11 = vld [vmem:[%s9452_s8 + $0x2bc] sm:$0xf0] }
 0x157   : > { %v1992_v17 = vpop.f32.mrf.mxu1 }
 0x158   : > { %v1993_v25 = vadd.f32 %v1992_v17, %v1979_v20  ;;  %v2407_v17 = vsel %vm2399_vm2, %v2389_v13, 0  ;;  %v6303_v20 = vld [vmem:[%s9450_s6 + $0x4] sm:$0xf]  ;;  %v5407_v13 = vld [vmem:[%s9452_s8 + $0x70] sm:$0xf] }
 0x159   : > { %2446 = vmatpush.bf16.msra.mxu1 %v2407_v17  ;;  %v6380_v17 = vld [vmem:[%s9452_s8 + $0x248] sm:$0xf0] }
 0x15e   : > { %v2034_v27 = vpop.f32.mrf.mxu0 }
 0x15f   : > { %v2006_v21 = vpop.f32.mrf.mxu3  ;;  %v1994_v23 = vpop.f32.mrf.mxu1 }
 0x160   : > { %v2007_v8 = vadd.f32 %v2006_v21, %v1993_v25  ;;  %v1995_v28 = vadd.f32 %v1994_v23, %v1981_v26  ;;  %v5332_v21 = vor.u32 %v6305_v19, %v5331_v61  ;;  %v5339_v23 = vld [vmem:[%s9450_s6 + $0x8] sm:$0xf]  ;;  %v5336_v25 = vor.u32 %v6303_v20, %v5333_v22  ;;  %v6443_v20 = vld [vmem:[%s9452_s8 + $0x440] sm:$0xf0]  ;;  %v5379_v22 = vld [vmem:[%s9452_s8 + $0x38] sm:$0xf] }
 0x161   : > { %v5408_v61 = vor.u32 %v6324_v14, %v5407_v13  ;;  %v5883_v19 = vld [vmem:[%s9452_s8 + $0x428] sm:$0xf]  ;;  %v5827_v13 = vld [vmem:[%s9452_s8 + $0x3b8] sm:$0xf]  ;;  %v6429_v14 = vld [vmem:[%s9452_s8 + $0x3d0] sm:$0xf0] }
 0x162   : > { %v2020_v24 = vpop.f32.mrf.mxu2  ;;  %2419 = vmatpush.bf16.msrb.mxu3 %v5332_v21  ;;  %2433 = vmatpush.bf16.msrb.mxu0 %v5336_v25  ;;  %v2328_v21 = vld [vmem:[%s418_s15] sm:$0xff]  ;;  %v5603_v25 = vld [vmem:[%s9452_s8 + $0x1f8] sm:$0xf] }
 0x163   : > { %v2021_v31 = vadd.f32 %v2020_v24, %v2007_v8  ;;  %v6306_v24 = vld [vmem:[%s9450_s6 + $0x14] sm:$0xf0]  ;;  %v5341_v8 = vld [vmem:[%s9450_s6 + $0x18] sm:$0xf0] }
 0x164   : > { %v5340_v26 = vor.u32 %v6306_v24, %v5339_v23  ;;  %v6317_v23 = vld [vmem:[%s9452_s8 + $0x50] sm:$0xf0]  ;;  %v5632_v24 = vor.u32 %v6380_v17, %v5631_v16  ;;  %v5828_v16 = vor.u32 %v6429_v14, %v5827_v13  ;;  %v5941_v17 = vld [vmem:[%s9452_s8 + $0x4b4] sm:$0xf0]  ;;  %v6031_v13 = vld [vmem:[%s9452_s8 + $0x548] sm:$0xf] }
 0x165   : > { %v2035_v62 = vadd.f32 %v2034_v27, %v2021_v31  ;;  %v6304_v27 = vld [vmem:[%s9450_s6 + $0xc] sm:$0xf]  ;;  %v6479_v14 = vld [vmem:[%s9452_s8 + $0x560] sm:$0xf0] }
 0x166   : > { %v2036_v33 = vpop.f32.mrf.mxu0  ;;  %2447 = vmatpush.bf16.msra.mxu1 %v5340_v26  ;;  %v6373_v26 = vld [vmem:[%s9452_s8 + $0x210] sm:$0xf0] }
 0x167   : > { %v2008_v29 = vpop.f32.mrf.mxu3  ;;  %v2048_v54 = vpop.f32.mrf.mxu1 }
 0x168   : > { %v2009_v30 = vadd.f32 %v2008_v29, %v1995_v28  ;;  %v2049_v34 = vadd.f32 %v2048_v54, %v2035_v62  ;;  %v5344_v28 = vor.u32 %v6304_v27, %v5341_v8  ;;  %v5547_v29 = vld [vmem:[%s9452_s8 + $0x188] sm:$0xf]  ;;  %v5519_v54 = vld [vmem:[%s9452_s8 + $0x150] sm:$0xf]  ;;  %v6415_v62 = vld [vmem:[%s9452_s8 + $0x360] sm:$0xf0]  ;;  %v5884_v8 = vor.u32 %v6443_v20, %v5883_v19 }
 0x169   : > { %v2329_v27 = vld [vmem:[%s418_s15 + $0x8] sm:$0xff] }
 0x16a   : > { %v2022_v32 = vpop.f32.mrf.mxu2  ;;  %v2056_v38 = vmax.f32 %v2049_v34, 0.0  ;;  %2461 = vmatpush.bf16.msra.mxu2 %v5344_v28  ;;  %v5743_v34 = vld [vmem:[%s9452_s8 + $0x310] sm:$0xf]  ;;  %v5437_v19 = vld [vmem:[%s9452_s8 + $0xc4] sm:$0xf0] }
 0x16b   : > { %v2023_v52 = vadd.f32 %v2022_v32, %v2009_v30  ;;  %v6359_v30 = vld [vmem:[%s9452_s8 + $0x1a0] sm:$0xf0]  ;;  %v6352_v32 = vld [vmem:[%s9452_s8 + $0x168] sm:$0xf0] }
 0x16c   : > { %v5548_v31 = vor.u32 %v6359_v30, %v5547_v29  ;;  %v5380_v29 = vor.u32 %v6317_v23, %v5379_v22  ;;  %v6384_v20 = vld [vmem:[%s9452_s8 + $0x26c] sm:$0xf] }
 0x16d   : > { %v2037_v37 = vadd.f32 %v2036_v33, %v2023_v52  ;;  %v5771_v52 = vld [vmem:[%s9452_s8 + $0x348] sm:$0xf] }
 0x16e   : > { %v5772_v33 = vor.u32 %v6415_v62, %v5771_v52  ;;  %3599 = vmatpush.bf16.msra.mxu3 %v5548_v31  ;;  %v6310_v52 = vld [vmem:[%s9452_s8 + $0x18] sm:$0xf0]  ;;  %v6356_v62 = vld [vmem:[%s9452_s8 + $0x18c] sm:$0xf] }
 0x16f   : > { %v2050_v35 = vpop.f32.mrf.mxu1 }
 0x170   : > { %v2051_v36 = vadd.f32 %v2050_v35, %v2037_v37  ;;  %v5520_v37 = vor.u32 %v6352_v32, %v5519_v54  ;;  %v6408_v35 = vld [vmem:[%s9452_s8 + $0x328] sm:$0xf0]  ;;  %v5604_v54 = vor.u32 %v6373_v26, %v5603_v25  ;;  %v5351_v32 = vld [vmem:[%s9452_s8] sm:$0xf]  ;;  %v6422_v25 = vld [vmem:[%s9452_s8 + $0x398] sm:$0xf0] }
 0x171   : > { %v6447_v26 = vld [vmem:[%s9452_s8 + $0x464] sm:$0xf] }
 0x172   : > { %v2060_v42 = vmax.f32 %v2051_v36, 0.0  ;;  %v5491_v36 = vld [vmem:[%s9452_s8 + $0x118] sm:$0xf]  ;;  %3600 = vmatpush.bf16.msra.mxu3 %v5520_v37 }
 0x174   : > { %v2064_v39 = vpack.c.bf16 %v2060_v42, %v2056_v38  ;;  %v6345_v38 = vld [vmem:[%s9452_s8 + $0x130] sm:$0xf0]  ;;  %v5744_v42 = vor.u32 %v6408_v35, %v5743_v34  ;;  %v6412_v34 = vld [vmem:[%s9452_s8 + $0x34c] sm:$0xf] }
 0x176   : > { %5328 = vmatmul.msk.bf16.vlgmr.msra.gmra.mxu0 %vm1657_vm0, %v2064_v39  ;;  %v5715_v39 = vld [vmem:[%s9452_s8 + $0x2d8] sm:$0xf] }
 0x177   : > { %3613 = vmatpush.bf16.msra.mxu0 %v5772_v33  ;;  %v5549_v33 = vld [vmem:[%s9452_s8 + $0x1a4] sm:$0xf0] }
 0x17b   : > { %3614 = vmatpush.bf16.msra.mxu0 %v5744_v42  ;;  %v6366_v42 = vld [vmem:[%s9452_s8 + $0x1d8] sm:$0xf0] }
 0x17f   : > { %v2281_v40 = vpop.f32.mrf.mxu3 }
 0x180   : > { %v2282_v45 = vadd.f32 %v6527_v41, %v2281_v40  ;;  %v6401_v40 = vld [vmem:[%s9452_s8 + $0x2f0] sm:$0xf0] }
 0x187   : > { %v2283_v48 = vpop.f32.mrf.mxu3 }
 0x188   : > { %v2284_v55 = vadd.f32 %v6527_v41, %v2283_v48  ;;  %v5995_v41 = vld [vmem:[%s9452_s8 + $0x508] sm:$0xf] }
 0x192   : > { %v2295_v43 = vpop.f32.mrf.mxu1 }
 0x193   : > { %v2296_v46 = vadd.f32 %v2295_v43, %v2282_v45  ;;  %v5492_v43 = vor.u32 %v6345_v38, %v5491_v36  ;;  %v5463_v45 = vld [vmem:[%s9452_s8 + $0xe0] sm:$0xf]  ;;  %v5773_v36 = vld [vmem:[%s9452_s8 + $0x364] sm:$0xf0] }
 0x194   : > { %v5575_v38 = vld [vmem:[%s9452_s8 + $0x1c0] sm:$0xf] }
 0x195   : > { %3601 = vmatpush.bf16.msra.mxu3 %v5492_v43  ;;  %v5776_v43 = vor.u32 %v6412_v34, %v5773_v36 }
 0x19a   : > { %v2297_v53 = vpop.f32.mrf.mxu1 }
 0x19b   : > { %v2298_v50 = vadd.f32 %v2297_v53, %v2284_v55  ;;  %v5687_v53 = vld [vmem:[%s9452_s8 + $0x2a0] sm:$0xf]  ;;  %v6394_v55 = vld [vmem:[%s9452_s8 + $0x2b8] sm:$0xf0] }
 0x1d3   : > { %v2309_v44 = vpop.f32.mrf.mxu2 }
 0x1d4   : > { %v2310_v47 = vadd.f32 %v2309_v44, %v2296_v46  ;;  %v6471_v44 = vld [vmem:[%s9452_s8 + $0x520] sm:$0xf0]  ;;  %v6338_v46 = vld [vmem:[%s9452_s8 + $0xf8] sm:$0xf0] }
 0x1d5   : > { %v5996_v48 = vor.u32 %v6471_v44, %v5995_v41  ;;  %v5552_v41 = vor.u32 %v6356_v62, %v5549_v33  ;;  %v6349_v44 = vld [vmem:[%s9452_s8 + $0x154] sm:$0xf]  ;;  %v6475_v62 = vld [vmem:[%s9452_s8 + $0x544] sm:$0xf]  ;;  %v6025_v33 = vld [vmem:[%s9452_s8 + $0x55c] sm:$0xf0] }
 0x1d6   : > { %v6028_v34 = vor.u32 %v6475_v62, %v6025_v33  ;;  %v5779_v62 = vld [vmem:[%s9452_s8 + $0x350] sm:$0xf]  ;;  %v6416_v33 = vld [vmem:[%s9452_s8 + $0x368] sm:$0xf0] }
 0x1d7   : > { %3627 = vmatpush.bf16.msrb.mxu1 %v5996_v48  ;;  %v5745_v48 = vld [vmem:[%s9452_s8 + $0x32c] sm:$0xf0] }
 0x1db   : > { %v2311_v57 = vpop.f32.mrf.mxu2 }
 0x1dc   : > { %v2312_v59 = vadd.f32 %v2311_v57, %v2298_v50  ;;  %v5939_v50 = vld [vmem:[%s9452_s8 + $0x498] sm:$0xf] }
 0x1f3   : > { %v2323_v49 = vpop.f32.mrf.mxu0 }
 0x1f4   : > { %v8102_v51 = vadd.f32 %v2323_v49, %v2310_v47  ;;  %v5716_v47 = vor.u32 %v6401_v40, %v5715_v39  ;;  %v5967_v49 = vld [vmem:[%s9452_s8 + $0x4d0] sm:$0xf]  ;;  %v5352_v40 = vor.u32 %v6310_v52, %v5351_v32 }
 0x1f5   : > { %v5633_v32 = vld [vmem:[%s9452_s8 + $0x24c] sm:$0xf0] }
 0x1f6   : > { %v2330_v56 = vmul.f32 0.5, %v8102_v51  ;;  %4275 = vst.msk [vmem:[%s425_s30] sm:$0xff] %vm4274_vm1, %v8102_v51  ;;  %3615 = vmatpush.bf16.msra.mxu0 %v5716_v47  ;;  %v6405_v47 = vld [vmem:[%s9452_s8 + $0x314] sm:$0xf] }
 0x1f8   : > { %v2332_v58 = vmul.f32 1.442695, %v2330_v56  ;;  %v6464_v56 = vld [vmem:[%s9452_s8 + $0x4e8] sm:$0xf0] }
 0x1f9   : > { %v5968_v57 = vor.u32 %v6464_v56, %v5967_v49  ;;  %v6342_v56 = vld [vmem:[%s9452_s8 + $0x11c] sm:$0xf] }
 0x1fa   : > { %6528 = vpow2.f32 %v2332_v58  ;;  %v5464_v58 = vor.u32 %v6338_v46, %v5463_v45  ;;  %v5521_v45 = vld [vmem:[%s9452_s8 + $0x16c] sm:$0xf0]  ;;  %v5576_v46 = vor.u32 %v6366_v42, %v5575_v38  ;;  %v6314_v38 = vld [vmem:[%s9452_s8 + $0x3c] sm:$0xf]  ;;  %v5381_v42 = vld [vmem:[%s9452_s8 + $0x54] sm:$0xf0] }
 0x1fb   : > { %v2325_v60 = vpop.f32.mrf.mxu0  ;;  %3628 = vmatpush.bf16.msrb.mxu1 %v5968_v57  ;;  %v5493_v57 = vld [vmem:[%s9452_s8 + $0x134] sm:$0xf0] }
 0x1fc   : > { %v8106_v63 = vadd.f32 %v2325_v60, %v2312_v59  ;;  %v6457_v59 = vld [vmem:[%s9452_s8 + $0x4b0] sm:$0xf0]  ;;  %v6023_v60 = vld [vmem:[%s9452_s8 + $0x540] sm:$0xf]  ;;  %3602 = vmatpush.bf16.msra.mxu3 %v5464_v58  ;;  %v5496_v58 = vor.u32 %v6342_v56, %v5493_v57  ;;  %v5829_v56 = vld [vmem:[%s9452_s8 + $0x3d4] sm:$0xf0] }
 0x1fd   : > { %v5940_v7 = vor.u32 %v6457_v59, %v5939_v50  ;;  %v6398_v50 = vld [vmem:[%s9452_s8 + $0x2dc] sm:$0xf]  ;;  %v5717_v59 = vld [vmem:[%s9452_s8 + $0x2f4] sm:$0xf0] }
 0x1fe   : > { %v2331_v0 = vmul.f32 0.5, %v8106_v63  ;;  %4276 = vst.msk [vmem:[%s425_s30 + $0x8] sm:$0xff] %vm4274_vm1, %v8106_v63  ;;  %s6608_s30 = scalar_lea.hbm %s9454_s10, 224 }
 0x1ff   : > { %3629 = vmatpush.bf16.msrb.mxu1 %v5940_v7  ;;  %p6610_p1 = scmp.lt.s32.totalorder %s6608_s30, %s6604_s25 }
 0x200   : > { %v6529_v1 = vpop.eup %6528  ;;  %v2334_v2 = vmul.f32 1.442695, %v2331_v0  ;;  %v6478_v0 = vld [vmem:[%s9452_s8 + $0x558] sm:$0xf0] }
 0x201   : > { %2338 = vrot.lane.b32.xlu0 %v6529_v1, %s6652_s12  ;;  %v5435_v1 = vld [vmem:[%s9452_s8 + $0xa8] sm:$0xf]  ;;  %v6024_v4 = vor.u32 %v6478_v0, %v6023_v60  ;;  %v5720_v60 = vor.u32 %v6398_v50, %v5717_v59  ;;  %v5855_v0 = vld [vmem:[%s9452_s8 + $0x3f0] sm:$0xf]  ;;  %v6419_v50 = vld [vmem:[%s9452_s8 + $0x384] sm:$0xf]  ;;  %p6611_p2 = por %p6610_p1, %p6609_p0 }
 0x202   : > { %6530 = vpow2.f32 %v2334_v2  ;;  %v6331_v2 = vld [vmem:[%s9452_s8 + $0xc0] sm:$0xf0] }
 0x203   : > { %3648 = vmatpush.bf16.msrb.mxu2 %v6024_v4  ;;  %v5436_v9 = vor.u32 %v6331_v2, %v5435_v1  ;;  %3630 = vmatpush.bf16.msrb.mxu1 %v5912_v18  ;;  %v6436_v1 = vld [vmem:[%s9452_s8 + $0x408] sm:$0xf0]  ;;  %v6461_v2 = vld [vmem:[%s9452_s8 + $0x4d4] sm:$0xf]  ;;  %v5969_v4 = vld [vmem:[%s9452_s8 + $0x4ec] sm:$0xf0]  ;;  %p6612_p3 = pnand %p6611_p2, %p6607_p13 }
 0x204   : > { %v5972_v7 = vor.u32 %v6461_v2, %v5969_v4  ;;  %v6328_v18 = vld [vmem:[%s9452_s8 + $0xac] sm:$0xf] }
 0x205   : > { %3603 = vmatpush.bf16.msra.mxu3 %v5436_v9  ;;  %v5468_v9 = vor.u32 %v6335_v5, %v5465_v6  ;;  %v5440_v22 = vor.u32 %v6328_v18, %v5437_v19  ;;  %v6360_v18 = vld [vmem:[%s9452_s8 + $0x1a8] sm:$0xf0] }
 0x207   : > { %3631 = vmatpush.bf16.msrb.mxu1 %v5884_v8  ;;  %v5913_v8 = vld [vmem:[%s9452_s8 + $0x47c] sm:$0xf0] }
 0x208   : > { %v6531_v3 = vpop.eup %6530 }
 0x209   : > { %2340 = vrot.lane.b32.xlu0 %v6531_v3, %s6652_s12  ;;  %v5688_v3 = vor.u32 %v6394_v55, %v5687_v53  ;;  %3604 = vmatpush.bf16.msra.mxu3 %v5408_v61  ;;  %v5524_v53 = vor.u32 %v6349_v44, %v5521_v45  ;;  %v5748_v55 = vor.u32 %v6405_v47, %v5745_v48  ;;  %v6307_v45 = vld [vmem:[%s9452_s8 + $0x4] sm:$0xf]  ;;  %s397_s12 = sand.u32 1, %s6642_s18  }
 0x20a   : > { %v6363_v48 = vld [vmem:[%s9452_s8 + $0x1c4] sm:$0xf]  ;;  %s6482_s14 = smul.u32 56, %s397_s12  ;;  %s4278_s13 = scalar_lea.sflag [#allocation3], %s397_s12 }
 0x20b   : > { %3616 = vmatpush.bf16.msra.mxu0 %v5688_v3  ;;  %v5856_v3 = vor.u32 %v6436_v1, %v5855_v0 }
 0x20c   : > { %s9300_s0 = scalar_lea.vmem [#allocation2], %s6482_s14 }
 0x20d   : > { %3605 = vmatpush.bf16.msra.mxu3 %v5380_v29  ;;  %3632 = vmatpush.bf16.msrb.mxu1 %v5856_v3  ;;  %v5409_v29 = vld [vmem:[%s9452_s8 + $0x8c] sm:$0xf0]  ;;  %s4296_s21 = sshll.u32 %s9300_s0, 4  ;;  %s4297_s21 = int_to_ptr.vmem [resolvable:$true] %s4296_s21 }
 0x20f   : > { %3617 = vmatpush.bf16.msra.mxu0 %v5660_v15  ;;  %v6454_v15 = vld [vmem:[%s9452_s8 + $0x49c] sm:$0xf] }
 0x210   : > { %v5944_v61 = vor.u32 %v6454_v15, %v5941_v17  ;;  %v5555_v17 = vld [vmem:[%s9452_s8 + $0x190] sm:$0xf] }
 0x211   : > { %3606 = vmatpush.bf16.msra.mxu3 %v5352_v40  ;;  %3633 = vmatpush.bf16.msrb.mxu1 %v5828_v16 }
 0x213   : > { %3618 = vmatpush.bf16.msra.mxu0 %v5632_v24  ;;  %v5799_v24 = vld [vmem:[%s9452_s8 + $0x380] sm:$0xf] }
 0x217   : > { %3619 = vmatpush.bf16.msra.mxu0 %v5604_v54 }
 0x21b   : > { %3620 = vmatpush.bf16.msra.mxu0 %v5576_v46  ;;  %v5353_v46 = vld [vmem:[%s9452_s8 + $0x1c] sm:$0xf0] }
 0x21c   : > { %v5356_v47 = vor.u32 %v6307_v45, %v5353_v46  ;;  %v5751_v45 = vld [vmem:[%s9452_s8 + $0x318] sm:$0xf]  ;;  %v6409_v46 = vld [vmem:[%s9452_s8 + $0x330] sm:$0xf0] }
 0x273   : > { %v2339_v12 = vpop.permute.xlu0 %2338 }
 0x274   : > { %v2344_v28 = vmul.f32 %v2339_v12, %v2328_v21  ;;  %v5692_v12 = vor.u32 %v6391_v10, %v5689_v11  ;;  %v5661_v21 = vld [vmem:[%s9452_s8 + $0x284] sm:$0xf0] }
 0x275   : > { %v5664_v23 = vor.u32 %v6384_v20, %v5661_v21 }
 0x276   : > { %v2346_v37 = vadd.f32 %v2344_v28, %v8102_v51  ;;  %v6468_v51 = vld [vmem:[%s9452_s8 + $0x50c] sm:$0xf]  ;;  %v6321_v28 = vld [vmem:[%s9452_s8 + $0x74] sm:$0xf] }
 0x277   : > { %v5412_v54 = vor.u32 %v6321_v28, %v5409_v29  ;;  %v5527_v28 = vld [vmem:[%s9452_s8 + $0x158] sm:$0xf]  ;;  %v6353_v29 = vld [vmem:[%s9452_s8 + $0x170] sm:$0xf0] }
 0x27b   : > { %v2341_v30 = vpop.permute.xlu0 %2340 }
 0x27c   : > { %v2345_v31 = vmul.f32 %v2341_v30, %v2329_v27  ;;  %v5800_v27 = vor.u32 %v6422_v25, %v5799_v24  ;;  %v5916_v30 = vor.u32 %v6447_v26, %v5913_v8  ;;  %v5556_v25 = vor.u32 %v6360_v18, %v5555_v17  ;;  %v5891_v18 = vld [vmem:[%s9452_s8 + $0x430] sm:$0xf] }
 0x27e   : > { %v2347_v35 = vadd.f32 %v2345_v31, %v8106_v63  ;;  %v5997_v63 = vld [vmem:[%s9452_s8 + $0x524] sm:$0xf0]  ;;  %v6377_v31 = vld [vmem:[%s9452_s8 + $0x234] sm:$0xf]  ;;  %3634 = vmatpush.bf16.msrb.mxu1 %v5800_v27 }
 0x27f   : > { %v6000_v49 = vor.u32 %v6468_v51, %v5997_v63  ;;  %v5636_v52 = vor.u32 %v6377_v31, %v5633_v32  ;;  %v6370_v51 = vld [vmem:[%s9452_s8 + $0x1fc] sm:$0xf]  ;;  %v5384_v63 = vor.u32 %v6314_v38, %v5381_v42  ;;  %v6003_v31 = vld [vmem:[%s9452_s8 + $0x510] sm:$0xf]  ;;  %v6472_v32 = vld [vmem:[%s9452_s8 + $0x528] sm:$0xf0] }
 0x280   : > { %v2348_v39 = vpack.c.bf16 %v2347_v35, %v2346_v37  ;;  %v6440_v37 = vld [vmem:[%s9452_s8 + $0x42c] sm:$0xf]  ;;  %v5885_v35 = vld [vmem:[%s9452_s8 + $0x444] sm:$0xf0]  ;;  %v6004_v42 = vor.u32 %v6472_v32, %v6003_v31  ;;  %v5639_v32 = vld [vmem:[%s9452_s8 + $0x238] sm:$0xf] }
 0x281   : > { %v5888_v36 = vor.u32 %v6440_v37, %v5885_v35  ;;  %v5528_v35 = vor.u32 %v6353_v29, %v5527_v28  ;;  %v6318_v28 = vld [vmem:[%s9452_s8 + $0x58] sm:$0xf0] }
 0x282   : > { %5345 = vmatmul.msk.bf16.vlgmr.msrb.gmra.mxu3 %vm2395_vm3, %v2348_v39  ;;  %5346 = vmatmul.msk.bf16.vlgmr.msrb.gmra.mxu0 %vm2395_vm3, %v2348_v39 }
 0x283   : > { %5347 = vmatmul.msk.bf16.vlgmr.msra.gmra.mxu1 %vm2395_vm3, %v2348_v39  ;;  %5348 = vmatmul.msk.bf16.vlgmr.msra.gmra.mxu2 %vm2395_vm3, %v2348_v39  ;;  %v5605_v39 = vld [vmem:[%s9452_s8 + $0x214] sm:$0xf0] }
 0x284   : > { %3655 = vmatpush.bf16.msra.mxu2 %v5552_v41  ;;  %3669 = vmatpush.bf16.msrb.mxu3 %v5776_v43  ;;  %v5608_v40 = vor.u32 %v6370_v51, %v5605_v39  ;;  %v6433_v41 = vld [vmem:[%s9452_s8 + $0x3f4] sm:$0xf]  ;;  %v5857_v43 = vld [vmem:[%s9452_s8 + $0x40c] sm:$0xf0]  ;;  %v5499_v51 = vld [vmem:[%s9452_s8 + $0x120] sm:$0xf] }
 0x285   : > { %3683 = vmatpush.bf16.msrb.mxu0 %v6000_v49  ;;  %3704 = vmatpush.bf16.msra.mxu1 %v6028_v34  ;;  %v5860_v44 = vor.u32 %v6433_v41, %v5857_v43  ;;  %v5577_v49 = vld [vmem:[%s9452_s8 + $0x1dc] sm:$0xf0]  ;;  %v5975_v41 = vld [vmem:[%s9452_s8 + $0x4d8] sm:$0xf]  ;;  %v6465_v43 = vld [vmem:[%s9452_s8 + $0x4f0] sm:$0xf0] }
 0x288   : > { %3656 = vmatpush.bf16.msra.mxu2 %v5524_v53  ;;  %3670 = vmatpush.bf16.msrb.mxu3 %v5748_v55  ;;  %v5580_v53 = vor.u32 %v6363_v48, %v5577_v49  ;;  %v6426_v55 = vld [vmem:[%s9452_s8 + $0x3bc] sm:$0xf]  ;;  %v5976_v48 = vor.u32 %v6465_v43, %v5975_v41  ;;  %v5471_v49 = vld [vmem:[%s9452_s8 + $0xe8] sm:$0xf]  ;;  %v5611_v43 = vld [vmem:[%s9452_s8 + $0x200] sm:$0xf] }
 0x289   : > { %3684 = vmatpush.bf16.msrb.mxu0 %v5972_v7  ;;  %v5832_v57 = vor.u32 %v6426_v55, %v5829_v56  ;;  %v5752_v55 = vor.u32 %v6409_v46, %v5751_v45  ;;  %v5947_v56 = vld [vmem:[%s9452_s8 + $0x4a0] sm:$0xf]  ;;  %v6374_v45 = vld [vmem:[%s9452_s8 + $0x218] sm:$0xf0] }
 0x28c   : > { %3657 = vmatpush.bf16.msra.mxu2 %v5496_v58  ;;  %3671 = vmatpush.bf16.msrb.mxu3 %v5720_v60  ;;  %v5801_v58 = vld [vmem:[%s9452_s8 + $0x39c] sm:$0xf0] }
 0x28d   : > { %3685 = vmatpush.bf16.msrb.mxu0 %v5944_v61  ;;  %v5804_v59 = vor.u32 %v6419_v50, %v5801_v58  ;;  %v2355_v60 = vld [vmem:[%s9451_s7] sm:$0xf]  ;;  %v6402_v58 = vld [vmem:[%s9452_s8 + $0x2f8] sm:$0xf0] }
 0x28e   : > { %v2358_v2 = vperm.slane %v2355_v60, 1  ;;  %v2359_v3 = vperm.slane %v2355_v60, 2  ;;  %v2357_v10 = vperm.slane %v2355_v60, 0  ;;  %v2360_v15 = vperm.slane %v2355_v60, 3  ;;  %v5723_v50 = vld [vmem:[%s9452_s8 + $0x2e0] sm:$0xf] }
 0x28f   : > { %v6357_v60 = vld [vmem:[%s9452_s8 + $0x194] sm:$0xf] }
 0x290   : > { %3658 = vmatpush.bf16.msra.mxu2 %v5468_v9  ;;  %3672 = vmatpush.bf16.msrb.mxu3 %v5692_v12 }
 0x291   : > { %3686 = vmatpush.bf16.msrb.mxu0 %v5916_v30 }
 0x294   : > { %3659 = vmatpush.bf16.msra.mxu2 %v5440_v22  ;;  %3673 = vmatpush.bf16.msrb.mxu3 %v5664_v23  ;;  %v6032_v22 = vor.u32 %v6479_v14, %v6031_v13  ;;  %v5529_v13 = vld [vmem:[%s9452_s8 + $0x174] sm:$0xf0] }
 0x295   : > { %3687 = vmatpush.bf16.msrb.mxu0 %v5888_v36 }
 0x298   : > { %3660 = vmatpush.bf16.msra.mxu2 %v5412_v54  ;;  %3674 = vmatpush.bf16.msrb.mxu3 %v5636_v52 }
 0x299   : > { %3688 = vmatpush.bf16.msrb.mxu0 %v5860_v44 }
 0x29c   : > { %3661 = vmatpush.bf16.msra.mxu2 %v5384_v63  ;;  %3675 = vmatpush.bf16.msrb.mxu3 %v5608_v40  ;;  %v6346_v63 = vld [vmem:[%s9452_s8 + $0x138] sm:$0xf0]  ;;  %v5780_v40 = vor.u32 %v6416_v33, %v5779_v62  ;;  %v6336_v33 = vld [vmem:[%s9452_s8 + $0xec] sm:$0xf] }
 0x29d   : > { %3689 = vmatpush.bf16.msrb.mxu0 %v5832_v57  ;;  %v6458_v57 = vld [vmem:[%s9452_s8 + $0x4b8] sm:$0xf0] }
 0x2a0   : > { %3662 = vmatpush.bf16.msra.mxu2 %v5356_v47  ;;  %3676 = vmatpush.bf16.msrb.mxu3 %v5580_v53  ;;  %v5500_v47 = vor.u32 %v6346_v63, %v5499_v51  ;;  %v6339_v53 = vld [vmem:[%s9452_s8 + $0x100] sm:$0xf0]  ;;  %v5781_v51 = vld [vmem:[%s9452_s8 + $0x36c] sm:$0xf0]  ;;  %v5835_v63 = vld [vmem:[%s9452_s8 + $0x3c0] sm:$0xf] }
 0x2a1   : > { %3690 = vmatpush.bf16.msrb.mxu0 %v5804_v59  ;;  %v5472_v59 = vor.u32 %v6339_v53, %v5471_v49 }
 0x2ff   : > { %v2435_v0 = vpop.f32.mrf.mxu0 }
 0x300   : > { %v2449_v1 = vpop.f32.mrf.mxu1  ;;  %v2436_v5 = vadd.f32 %v2435_v0, %v2358_v2  ;;  %v5557_v0 = vld [vmem:[%s9452_s8 + $0x1ac] sm:$0xf0] }
 0x301   : > { %v2450_v7 = vadd.f32 %v2449_v1, %v2359_v3  ;;  %v5948_v1 = vor.u32 %v6458_v57, %v5947_v56  ;;  %v5753_v56 = vld [vmem:[%s9452_s8 + $0x334] sm:$0xf0]  ;;  %v5583_v57 = vld [vmem:[%s9452_s8 + $0x1c8] sm:$0xf] }
 0x302   : > { %v2469_v61 = vmax.f32 %v2436_v5, 0.0  ;;  %v5919_v5 = vld [vmem:[%s9452_s8 + $0x468] sm:$0xf] }
 0x303   : > { %v2470_v20 = vmax.f32 %v2450_v7, 0.0  ;;  %v5560_v7 = vor.u32 %v6357_v60, %v5557_v0  ;;  %v6423_v60 = vld [vmem:[%s9452_s8 + $0x3a0] sm:$0xf0] }
 0x305   : > { %v2421_v4 = vpop.f32.mrf.mxu3 }
 0x306   : > { %v2463_v6 = vpop.f32.mrf.mxu2  ;;  %v2422_v23 = vadd.f32 %v2421_v4, %v2357_v10  ;;  %v5724_v4 = vor.u32 %v6402_v58, %v5723_v50  ;;  %v5612_v50 = vor.u32 %v6374_v45, %v5611_v43  ;;  %v6367_v58 = vld [vmem:[%s9452_s8 + $0x1e0] sm:$0xf0]  ;;  %v5759_v45 = vld [vmem:[%s9452_s8 + $0x320] sm:$0xf] }
 0x307   : > { %v2437_v9 = vpop.f32.mrf.mxu0  ;;  %v2464_v26 = vadd.f32 %v2463_v6, %v2360_v15  ;;  %v6451_v6 = vld [vmem:[%s9452_s8 + $0x480] sm:$0xf0] }
 0x308   : > { %v2438_v11 = vadd.f32 %v2437_v9, %v2358_v2  ;;  %v2451_v12 = vpop.f32.mrf.mxu1  ;;  %v2468_v34 = vmax.f32 %v2422_v23, 0.0  ;;  %v5443_v2 = vld [vmem:[%s9452_s8 + $0xb0] sm:$0xf]  ;;  %v5695_v9 = vld [vmem:[%s9452_s8 + $0x2a8] sm:$0xf]  ;;  %v5920_v14 = vor.u32 %v6451_v6, %v5919_v5 }
 0x309   : > { %v2452_v16 = vadd.f32 %v2451_v12, %v2359_v3  ;;  %v2471_v36 = vmax.f32 %v2464_v26, 0.0  ;;  %v6332_v3 = vld [vmem:[%s9452_s8 + $0xc8] sm:$0xf0]  ;;  %v6350_v12 = vld [vmem:[%s9452_s8 + $0x15c] sm:$0xf] }
 0x30a   : > { %v2473_v19 = vmax.f32 %v2438_v11, 0.0  ;;  %v5444_v11 = vor.u32 %v6332_v3, %v5443_v2  ;;  %v6343_v23 = vld [vmem:[%s9452_s8 + $0x124] sm:$0xf]  ;;  %v6476_v2 = vld [vmem:[%s9452_s8 + $0x54c] sm:$0xf] }
 0x30b   : > { %v2474_v21 = vmax.f32 %v2452_v16, 0.0  ;;  %v6325_v16 = vld [vmem:[%s9452_s8 + $0x90] sm:$0xf0]  ;;  %v6033_v3 = vld [vmem:[%s9452_s8 + $0x564] sm:$0xf0] }
 0x30c   : > { %v8466_v24 = vpack.c.bf16 %v2473_v19, %v2469_v61  ;;  %v6444_v61 = vld [vmem:[%s9452_s8 + $0x448] sm:$0xf0]  ;;  %v5532_v19 = vor.u32 %v6350_v12, %v5529_v13  ;;  %v6322_v5 = vld [vmem:[%s9452_s8 + $0x7c] sm:$0xf]  ;;  %v5417_v6 = vld [vmem:[%s9452_s8 + $0x94] sm:$0xf0]  ;;  %v6036_v13 = vor.u32 %v6476_v2, %v6033_v3 }
 0x30d   : > { %v8468_v27 = vpack.c.bf16 %v2474_v21, %v2470_v20  ;;  %v2423_v8 = vpop.f32.mrf.mxu3  ;;  %v5667_v20 = vld [vmem:[%s9452_s8 + $0x270] sm:$0xf]  ;;  %v6388_v21 = vld [vmem:[%s9452_s8 + $0x288] sm:$0xf0]  ;;  %v5892_v26 = vor.u32 %v6444_v61, %v5891_v18  ;;  %v5725_v12 = vld [vmem:[%s9452_s8 + $0x2fc] sm:$0xf0] }
 0x30e   : > { %v2424_v30 = vadd.f32 %v2423_v8, %v2357_v10  ;;  %v2465_v54 = vpop.f32.mrf.mxu2  ;;  %3621 = vmatmul.bf16.vlgmr.msra.gmra.mxu0 %v8466_v24  ;;  %v6395_v10 = vld [vmem:[%s9452_s8 + $0x2c0] sm:$0xf0]  ;;  %v5387_v8 = vld [vmem:[%s9452_s8 + $0x40] sm:$0xf]  ;;  %v5668_v29 = vor.u32 %v6388_v21, %v5667_v20  ;;  %v6462_v18 = vld [vmem:[%s9452_s8 + $0x4dc] sm:$0xf] }
 0x30f   : > { %v2466_v52 = vadd.f32 %v2465_v54, %v2360_v15  ;;  %3635 = vmatmul.bf16.vlgmr.msrb.gmra.mxu1 %v8468_v27  ;;  %3760 = vmatpush.bf16.msra.mxu0 %v6032_v22  ;;  %v5415_v15 = vld [vmem:[%s9452_s8 + $0x78] sm:$0xf]  ;;  %v5696_v17 = vor.u32 %v6395_v10, %v5695_v9  ;;  %v6437_v54 = vld [vmem:[%s9452_s8 + $0x410] sm:$0xf0]  ;;  %v5388_v62 = vor.u32 %v6318_v28, %v5387_v8  ;;  %v5389_v20 = vld [vmem:[%s9452_s8 + $0x5c] sm:$0xf0] }
 0x310   : > { %v2472_v37 = vmax.f32 %v2424_v30, 0.0  ;;  %3711 = vmatpush.bf16.msrb.mxu1 %v5556_v25  ;;  %v5416_v22 = vor.u32 %v6325_v16, %v5415_v15  ;;  %v5501_v25 = vld [vmem:[%s9452_s8 + $0x13c] sm:$0xf0]  ;;  %v5863_v30 = vld [vmem:[%s9452_s8 + $0x3f8] sm:$0xf]  ;;  %v5584_v10 = vor.u32 %v6367_v58, %v5583_v57  ;;  %v5420_v15 = vor.u32 %v6322_v5, %v5417_v6 }
 0x311   : > { %v2475_v38 = vmax.f32 %v2466_v52, 0.0  ;;  %v5504_v31 = vor.u32 %v6343_v23, %v5501_v25  ;;  %v6381_v52 = vld [vmem:[%s9452_s8 + $0x250] sm:$0xf0]  ;;  %v5563_v16 = vld [vmem:[%s9452_s8 + $0x198] sm:$0xf] }
 0x312   : > { %v8496_v39 = vpack.c.bf16 %v2472_v37, %v2468_v34  ;;  %v5473_v34 = vld [vmem:[%s9452_s8 + $0x104] sm:$0xf0]  ;;  %v5864_v37 = vor.u32 %v6437_v54, %v5863_v30  ;;  %v5977_v61 = vld [vmem:[%s9452_s8 + $0x4f4] sm:$0xf0]  ;;  %v6392_v23 = vld [vmem:[%s9452_s8 + $0x2ac] sm:$0xf] }
 0x313   : > { %v8504_v44 = vpack.c.bf16 %v2475_v38, %v2471_v36  ;;  %v6311_v36 = vld [vmem:[%s9452_s8 + $0x20] sm:$0xf0]  ;;  %v6413_v38 = vld [vmem:[%s9452_s8 + $0x354] sm:$0xf]  ;;  %v5476_v41 = vor.u32 %v6336_v33, %v5473_v34  ;;  %v5697_v25 = vld [vmem:[%s9452_s8 + $0x2c4] sm:$0xf0] }
 0x314   : > { %3712 = vmatpush.bf16.msrb.mxu1 %v5528_v35  ;;  %3607 = vmatmul.bf16.vlgmr.msra.gmra.mxu3 %v8496_v39  ;;  %v5359_v35 = vld [vmem:[%s9452_s8 + $0x8] sm:$0xf]  ;;  %v5784_v49 = vor.u32 %v6413_v38, %v5781_v51  ;;  %v5535_v28 = vld [vmem:[%s9452_s8 + $0x160] sm:$0xf]  ;;  %v6455_v30 = vld [vmem:[%s9452_s8 + $0x4a4] sm:$0xf] }
 0x315   : > { %6049 = vmatmul.msk.bf16.vlgmr.msrb.gmra.mxu2 %vm1657_vm0, %v8504_v44  ;;  %3739 = vmatpush.bf16.msra.mxu3 %v6004_v42  ;;  %v5640_v42 = vor.u32 %v6381_v52, %v5639_v32  ;;  %v5360_v46 = vor.u32 %v6311_v36, %v5359_v35  ;;  %v5949_v54 = vld [vmem:[%s9452_s8 + $0x4bc] sm:$0xf0]  ;;  %v5361_v32 = vld [vmem:[%s9452_s8 + $0x24] sm:$0xf0]  ;;  %v5700_v52 = vor.u32 %v6392_v23, %v5697_v25  ;;  %v6417_v33 = vld [vmem:[%s9452_s8 + $0x370] sm:$0xf0] }
 0x316   : > { %3725 = vmatpush.bf16.msrb.mxu2 %v5780_v40  ;;  %v6430_v40 = vld [vmem:[%s9452_s8 + $0x3d8] sm:$0xf0]  ;;  %v5669_v35 = vld [vmem:[%s9452_s8 + $0x28c] sm:$0xf0]  ;;  %v5952_v36 = vor.u32 %v6455_v30, %v5949_v54  ;;  %v6347_v51 = vld [vmem:[%s9452_s8 + $0x140] sm:$0xf0] }
 0x317   : > { %v5836_v53 = vor.u32 %v6430_v40, %v5835_v63  ;;  %v6448_v40 = vld [vmem:[%s9452_s8 + $0x46c] sm:$0xf]  ;;  %v5893_v58 = vld [vmem:[%s9452_s8 + $0x44c] sm:$0xf0]  ;;  %v6371_v2 = vld [vmem:[%s9452_s8 + $0x204] sm:$0xf] }
 0x318   : > { %3713 = vmatpush.bf16.msrb.mxu1 %v5500_v47  ;;  %v6329_v47 = vld [vmem:[%s9452_s8 + $0xb4] sm:$0xf]  ;;  %v5613_v3 = vld [vmem:[%s9452_s8 + $0x21c] sm:$0xf0]  ;;  %v5451_v5 = vld [vmem:[%s9452_s8 + $0xb8] sm:$0xf] }
 0x319   : > { %3740 = vmatpush.bf16.msra.mxu3 %v5976_v48  ;;  %v5445_v48 = vld [vmem:[%s9452_s8 + $0xcc] sm:$0xf0]  ;;  %v6333_v6 = vld [vmem:[%s9452_s8 + $0xd0] sm:$0xf0]  ;;  %v5837_v23 = vld [vmem:[%s9452_s8 + $0x3dc] sm:$0xf0] }
 0x31a   : > { %3726 = vmatpush.bf16.msrb.mxu2 %v5752_v55  ;;  %v6406_v55 = vld [vmem:[%s9452_s8 + $0x31c] sm:$0xf]  ;;  %v5448_v0 = vor.u32 %v6329_v47, %v5445_v48  ;;  %v5395_v30 = vld [vmem:[%s9452_s8 + $0x48] sm:$0xf] }
 0x31b   : > { %v6378_v48 = vld [vmem:[%s9452_s8 + $0x23c] sm:$0xf] }
 0x31c   : > { %3714 = vmatpush.bf16.msrb.mxu1 %v5472_v59  ;;  %v5807_v59 = vld [vmem:[%s9452_s8 + $0x388] sm:$0xf] }
 0x31d   : > { %3741 = vmatpush.bf16.msra.mxu3 %v5948_v1  ;;  %v6469_v1 = vld [vmem:[%s9452_s8 + $0x514] sm:$0xf]  ;;  %v5808_v9 = vor.u32 %v6423_v60, %v5807_v59  ;;  %v5731_v60 = vld [vmem:[%s9452_s8 + $0x2e8] sm:$0xf] }
 0x31e   : > { %3727 = vmatpush.bf16.msrb.mxu2 %v5724_v4  ;;  %3691 = vmatmul.bf16.vlgmr.msrb.gmra.mxu0 %v8468_v27  ;;  %v6005_v4 = vld [vmem:[%s9452_s8 + $0x52c] sm:$0xf0] }
 0x31f   : > { %6050 = vmatmul.msk.bf16.vlgmr.msra.gmra.mxu1 %vm1657_vm0, %v8504_v44  ;;  %3767 = vmatpush.bf16.msrb.mxu0 %v5560_v7  ;;  %v5756_v7 = vor.u32 %v6406_v55, %v5753_v56  ;;  %v5479_v55 = vld [vmem:[%s9452_s8 + $0xf0] sm:$0xf]  ;;  %v6340_v56 = vld [vmem:[%s9452_s8 + $0x108] sm:$0xf0] }
 0x320   : > { %3715 = vmatpush.bf16.msrb.mxu1 %v5444_v11  ;;  %v6399_v11 = vld [vmem:[%s9452_s8 + $0x2e4] sm:$0xf] }
 0x321   : > { %3742 = vmatpush.bf16.msra.mxu3 %v5920_v14  ;;  %v6008_v14 = vor.u32 %v6469_v1, %v6005_v4  ;;  %v5728_v21 = vor.u32 %v6399_v11, %v5725_v12  ;;  %v5480_v1 = vor.u32 %v6340_v56, %v5479_v55  ;;  %v5616_v11 = vor.u32 %v6371_v2, %v5613_v3  ;;  %v5703_v12 = vld [vmem:[%s9452_s8 + $0x2b0] sm:$0xf]  ;;  %v5789_v55 = vld [vmem:[%s9452_s8 + $0x374] sm:$0xf0]  ;;  %v5619_v56 = vld [vmem:[%s9452_s8 + $0x208] sm:$0xf] }
 0x322   : > { %3728 = vmatpush.bf16.msrb.mxu2 %v5696_v17  ;;  %v6361_v17 = vld [vmem:[%s9452_s8 + $0x1b0] sm:$0xf0]  ;;  %v6351_v3 = vld [vmem:[%s9452_s8 + $0x164] sm:$0xf] }
 0x323   : > { %3768 = vmatpush.bf16.msrb.mxu0 %v5532_v19  ;;  %v6315_v19 = vld [vmem:[%s9452_s8 + $0x44] sm:$0xf] }
 0x324   : > { %3716 = vmatpush.bf16.msrb.mxu1 %v5416_v22  ;;  %3677 = vmatmul.bf16.vlgmr.msrb.gmra.mxu3 %v8466_v24  ;;  %v5564_v22 = vor.u32 %v6361_v17, %v5563_v16  ;;  %v5392_v8 = vor.u32 %v6315_v19, %v5389_v20  ;;  %v5585_v16 = vld [vmem:[%s9452_s8 + $0x1e4] sm:$0xf0]  ;;  %v5423_v17 = vld [vmem:[%s9452_s8 + $0x80] sm:$0xf]  ;;  %v6011_v19 = vld [vmem:[%s9452_s8 + $0x518] sm:$0xf] }
 0x325   : > { %3663 = vmatmul.bf16.vlgmr.msra.gmra.mxu2 %v8496_v39  ;;  %3743 = vmatpush.bf16.msra.mxu3 %v5892_v26  ;;  %v5980_v26 = vor.u32 %v6462_v18, %v5977_v61  ;;  %v6326_v61 = vld [vmem:[%s9452_s8 + $0x98] sm:$0xf0]  ;;  %v6473_v20 = vld [vmem:[%s9452_s8 + $0x530] sm:$0xf0] }
 0x326   : > { %3729 = vmatpush.bf16.msrb.mxu2 %v5668_v29  ;;  %v6354_v29 = vld [vmem:[%s9452_s8 + $0x178] sm:$0xf0] }
 0x327   : > { %3769 = vmatpush.bf16.msrb.mxu0 %v5504_v31  ;;  %v6308_v31 = vld [vmem:[%s9452_s8 + $0xc] sm:$0xf]  ;;  %v5536_v34 = vor.u32 %v6354_v29, %v5535_v28  ;;  %v5424_v28 = vor.u32 %v6326_v61, %v5423_v17  ;;  %v6012_v29 = vor.u32 %v6473_v20, %v6011_v19  ;;  %v6445_v17 = vld [vmem:[%s9452_s8 + $0x450] sm:$0xf0]  ;;  %v5509_v61 = vld [vmem:[%s9452_s8 + $0x144] sm:$0xf0] }
 0x328   : > { %3717 = vmatpush.bf16.msrb.mxu1 %v5388_v62  ;;  %v5787_v62 = vld [vmem:[%s9452_s8 + $0x358] sm:$0xf]  ;;  %v5364_v38 = vor.u32 %v6308_v31, %v5361_v32  ;;  %v6319_v31 = vld [vmem:[%s9452_s8 + $0x60] sm:$0xf0]  ;;  %v5983_v32 = vld [vmem:[%s9452_s8 + $0x4e0] sm:$0xf] }
 0x329   : > { %3744 = vmatpush.bf16.msra.mxu3 %v5864_v37  ;;  %v6385_v37 = vld [vmem:[%s9452_s8 + $0x274] sm:$0xf]  ;;  %v5788_v63 = vor.u32 %v6417_v33, %v5787_v62  ;;  %v6420_v33 = vld [vmem:[%s9452_s8 + $0x38c] sm:$0xf] }
 0x32a   : > { %3730 = vmatpush.bf16.msrb.mxu2 %v5640_v42  ;;  %v5507_v42 = vld [vmem:[%s9452_s8 + $0x128] sm:$0xf]  ;;  %v5672_v43 = vor.u32 %v6385_v37, %v5669_v35  ;;  %v5647_v37 = vld [vmem:[%s9452_s8 + $0x240] sm:$0xf]  ;;  %v6382_v35 = vld [vmem:[%s9452_s8 + $0x258] sm:$0xf0] }
 0x32b   : > { %3770 = vmatpush.bf16.msrb.mxu0 %v5476_v41  ;;  %v5921_v41 = vld [vmem:[%s9452_s8 + $0x484] sm:$0xf0]  ;;  %v5508_v47 = vor.u32 %v6347_v51, %v5507_v42  ;;  %v5396_v42 = vor.u32 %v6319_v31, %v5395_v30  ;;  %v6400_v20 = vld [vmem:[%s9452_s8 + $0x2ec] sm:$0xf]  ;;  %v6337_v30 = vld [vmem:[%s9452_s8 + $0xf4] sm:$0xf] }
 0x32c   : > { %3718 = vmatpush.bf16.msrb.mxu1 %v5360_v46  ;;  %v6410_v46 = vld [vmem:[%s9452_s8 + $0x338] sm:$0xf0] }
 0x32d   : > { %3745 = vmatpush.bf16.msra.mxu3 %v5836_v53  ;;  %v5924_v53 = vor.u32 %v6448_v40, %v5921_v41  ;;  %v5760_v57 = vor.u32 %v6410_v46, %v5759_v45  ;;  %v6312_v41 = vld [vmem:[%s9452_s8 + $0x28] sm:$0xf0]  ;;  %v6459_v45 = vld [vmem:[%s9452_s8 + $0x4c0] sm:$0xf0]  ;;  %v5648_v46 = vor.u32 %v6382_v35, %v5647_v37  ;;  %v5843_v35 = vld [vmem:[%s9452_s8 + $0x3c8] sm:$0xf] }
 0x32e   : > { %3731 = vmatpush.bf16.msrb.mxu2 %v5612_v50  ;;  %6051 = vmatmul.msk.bf16.vlgmr.msra.gmra.mxu0 %vm1657_vm0, %v8504_v44  ;;  %v6441_v50 = vld [vmem:[%s9452_s8 + $0x434] sm:$0xf] }
 0x32f   : > { %3719 = vmatmul.bf16.vlgmr.msrb.gmra.mxu1 %v8496_v39  ;;  %3771 = vmatpush.bf16.msrb.mxu0 %v5448_v0  ;;  %v6403_v0 = vld [vmem:[%s9452_s8 + $0x300] sm:$0xf0]  ;;  %v5896_v4 = vor.u32 %v6441_v50, %v5893_v58 }
 0x330   : > { %3781 = vmatpush.bf16.msra.mxu1 %v5784_v49  ;;  %v5641_v49 = vld [vmem:[%s9452_s8 + $0x254] sm:$0xf0] }
 0x331   : > { %3746 = vmatpush.bf16.msra.mxu3 %v5808_v9  ;;  %v5644_v59 = vor.u32 %v6378_v48, %v5641_v49  ;;  %v6434_v9 = vld [vmem:[%s9452_s8 + $0x3fc] sm:$0xf]  ;;  %v5565_v49 = vld [vmem:[%s9452_s8 + $0x1b4] sm:$0xf0] }
 0x332   : > { %3732 = vmatpush.bf16.msrb.mxu2 %v5584_v10  ;;  %v5865_v10 = vld [vmem:[%s9452_s8 + $0x414] sm:$0xf0]  ;;  %v6358_v48 = vld [vmem:[%s9452_s8 + $0x19c] sm:$0xf] }
 0x333   : > { %3772 = vmatpush.bf16.msrb.mxu0 %v5420_v15  ;;  %v6364_v15 = vld [vmem:[%s9452_s8 + $0x1cc] sm:$0xf]  ;;  %v5868_v18 = vor.u32 %v6434_v9, %v5865_v10  ;;  %v6470_v10 = vld [vmem:[%s9452_s8 + $0x51c] sm:$0xf] }
 0x334   : > { %3782 = vmatpush.bf16.msra.mxu1 %v5756_v7  ;;  %3747 = vmatmul.bf16.vlgmr.msra.gmra.mxu3 %v8468_v27  ;;  %v5732_v7 = vor.u32 %v6403_v0, %v5731_v60  ;;  %v5588_v25 = vor.u32 %v6364_v15, %v5585_v16  ;;  %v5927_v60 = vld [vmem:[%s9452_s8 + $0x470] sm:$0xf]  ;;  %v6452_v0 = vld [vmem:[%s9452_s8 + $0x488] sm:$0xf0] }
 0x335   : > { %3816 = vmatpush.bf16.msrb.mxu3 %v6036_v13  ;;  %3733 = vmatmul.bf16.vlgmr.msrb.gmra.mxu2 %v8466_v24  ;;  %v6396_v13 = vld [vmem:[%s9452_s8 + $0x2c8] sm:$0xf0] }
 0x336   : > { %3795 = vmatpush.bf16.msra.mxu2 %v6008_v14  ;;  %v5452_v14 = vor.u32 %v6333_v6, %v5451_v5  ;;  %v6407_v5 = vld [vmem:[%s9452_s8 + $0x324] sm:$0xf]  ;;  %v5761_v6 = vld [vmem:[%s9452_s8 + $0x33c] sm:$0xf0]  ;;  %v6368_v9 = vld [vmem:[%s9452_s8 + $0x1e8] sm:$0xf0] }
 0x337   : > { %3773 = vmatpush.bf16.msrb.mxu0 %v5392_v8  ;;  %v6389_v8 = vld [vmem:[%s9452_s8 + $0x290] sm:$0xf0]  ;;  %v5764_v15 = vor.u32 %v6407_v5, %v5761_v6 }
 0x338   : > { %3783 = vmatpush.bf16.msra.mxu1 %v5728_v21  ;;  %v5704_v21 = vor.u32 %v6396_v13, %v5703_v12  ;;  %v5928_v12 = vor.u32 %v6452_v0, %v5927_v60  ;;  %v6041_v60 = vld [vmem:[%s9452_s8 + $0x56c] sm:$0xf0]  ;;  %v6442_v0 = vld [vmem:[%s9452_s8 + $0x43c] sm:$0xf] }
 0x339   : > { %3823 = vmatpush.bf16.msra.mxu3 %v5564_v22  ;;  %v6427_v22 = vld [vmem:[%s9452_s8 + $0x3c4] sm:$0xf] }
 0x33a   : > { %3796 = vmatpush.bf16.msra.mxu2 %v5980_v26  ;;  %v5675_v26 = vld [vmem:[%s9452_s8 + $0x278] sm:$0xf]  ;;  %v5840_v54 = vor.u32 %v6427_v22, %v5837_v23  ;;  %v6463_v22 = vld [vmem:[%s9452_s8 + $0x4e4] sm:$0xf]  ;;  %v5985_v23 = vld [vmem:[%s9452_s8 + $0x4fc] sm:$0xf0] }
 0x33b   : > { %3774 = vmatpush.bf16.msrb.mxu0 %v5364_v38  ;;  %v5676_v62 = vor.u32 %v6389_v8, %v5675_v26  ;;  %v6480_v38 = vld [vmem:[%s9452_s8 + $0x568] sm:$0xf0]  ;;  %v5871_v8 = vld [vmem:[%s9452_s8 + $0x400] sm:$0xf]  ;;  %v5988_v31 = vor.u32 %v6463_v22, %v5985_v23  ;;  %v6365_v22 = vld [vmem:[%s9452_s8 + $0x1d4] sm:$0xf] }
 0x33c   : > { %3784 = vmatpush.bf16.msra.mxu1 %v5700_v52  ;;  %v6466_v52 = vld [vmem:[%s9452_s8 + $0x4f8] sm:$0xf0]  ;;  %v5593_v23 = vld [vmem:[%s9452_s8 + $0x1ec] sm:$0xf0] }
 0x33d   : > { %3824 = vmatpush.bf16.msra.mxu3 %v5536_v34  ;;  %v5809_v34 = vld [vmem:[%s9452_s8 + $0x3a4] sm:$0xf0]  ;;  %v5984_v51 = vor.u32 %v6466_v52, %v5983_v32  ;;  %v6393_v32 = vld [vmem:[%s9452_s8 + $0x2b4] sm:$0xf]  ;;  %v5705_v52 = vld [vmem:[%s9452_s8 + $0x2cc] sm:$0xf0] }
 0x33e   : > { %3797 = vmatpush.bf16.msra.mxu2 %v5952_v36  ;;  %3775 = vmatmul.bf16.vlgmr.msrb.gmra.mxu0 %v8496_v39  ;;  %v6039_v36 = vld [vmem:[%s9452_s8 + $0x550] sm:$0xf]  ;;  %v5812_v40 = vor.u32 %v6420_v33, %v5809_v34  ;;  %v5957_v33 = vld [vmem:[%s9452_s8 + $0x4c4] sm:$0xf0] }
 0x33f   : > { %3837 = vmatpush.bf16.msra.mxu0 %v5788_v63  ;;  %v5367_v63 = vld [vmem:[%s9452_s8 + $0x10] sm:$0xf] }
 0x340   : > { %3785 = vmatpush.bf16.msra.mxu1 %v5672_v43  ;;  %v5955_v43 = vld [vmem:[%s9452_s8 + $0x4a8] sm:$0xf]  ;;  %v5368_v50 = vor.u32 %v6312_v41, %v5367_v63  ;;  %v5677_v41 = vld [vmem:[%s9452_s8 + $0x294] sm:$0xf0] }
 0x341   : > { %3825 = vmatpush.bf16.msra.mxu3 %v5508_v47  ;;  %v6040_v47 = vor.u32 %v6480_v38, %v6039_v36  ;;  %v5956_v58 = vor.u32 %v6459_v45, %v5955_v43  ;;  %v5708_v36 = vor.u32 %v6393_v32, %v5705_v52  ;;  %v6431_v38 = vld [vmem:[%s9452_s8 + $0x3e0] sm:$0xf0]  ;;  %v6449_v43 = vld [vmem:[%s9452_s8 + $0x474] sm:$0xf]  ;;  %v5929_v45 = vld [vmem:[%s9452_s8 + $0x48c] sm:$0xf0]  ;;  %v5596_v52 = vor.u32 %v6365_v22, %v5593_v23 }
 0x342   : > { %3798 = vmatpush.bf16.msra.mxu2 %v5924_v53  ;;  %v6414_v53 = vld [vmem:[%s9452_s8 + $0x35c] sm:$0xf]  ;;  %v6383_v22 = vld [vmem:[%s9452_s8 + $0x260] sm:$0xf0]  ;;  %v5879_v23 = vld [vmem:[%s9452_s8 + $0x408] sm:$0xf] }
 0x343   : > { %3838 = vmatpush.bf16.msra.mxu0 %v5760_v57  ;;  %v6375_v57 = vld [vmem:[%s9452_s8 + $0x220] sm:$0xf0] }
 0x344   : > { %3786 = vmatpush.bf16.msra.mxu1 %v5644_v59  ;;  %6052 = vmatmul.msk.bf16.vlgmr.msrb.gmra.mxu3 %vm1657_vm0, %v8504_v44  ;;  %v5568_v59 = vor.u32 %v6358_v48, %v5565_v49  ;;  %v5620_v2 = vor.u32 %v6375_v57, %v5619_v56  ;;  %v5815_v48 = vld [vmem:[%s9452_s8 + $0x390] sm:$0xf]  ;;  %v6424_v49 = vld [vmem:[%s9452_s8 + $0x3a8] sm:$0xf0]  ;;  %v5425_v56 = vld [vmem:[%s9452_s8 + $0x9c] sm:$0xf0] }
 0x345   : > { %3826 = vmatpush.bf16.msra.mxu3 %v5480_v1  ;;  %v5792_v1 = vor.u32 %v6414_v53, %v5789_v55  ;;  %v6323_v55 = vld [vmem:[%s9452_s8 + $0x84] sm:$0xf] }
 0x346   : > { %3799 = vmatpush.bf16.msra.mxu2 %v5896_v4  ;;  %v5537_v4 = vld [vmem:[%s9452_s8 + $0x17c] sm:$0xf0]  ;;  %v6379_v57 = vld [vmem:[%s9452_s8 + $0x244] sm:$0xf] }
 0x347   : > { %3839 = vmatpush.bf16.msra.mxu0 %v5732_v7  ;;  %v5591_v7 = vld [vmem:[%s9452_s8 + $0x1d0] sm:$0xf]  ;;  %v5540_v13 = vor.u32 %v6351_v3, %v5537_v4  ;;  %v5428_v3 = vor.u32 %v6323_v55, %v5425_v56  ;;  %v5571_v4 = vld [vmem:[%s9452_s8 + $0x1a0] sm:$0xf]  ;;  %v6404_v56 = vld [vmem:[%s9452_s8 + $0x308] sm:$0xf0] }
 0x348   : > { %3787 = vmatpush.bf16.msra.mxu1 %v5616_v11  ;;  %v6013_v11 = vld [vmem:[%s9452_s8 + $0x534] sm:$0xf0]  ;;  %v5592_v16 = vor.u32 %v6368_v9, %v5591_v7  ;;  %v6362_v7 = vld [vmem:[%s9452_s8 + $0x1b8] sm:$0xf0]  ;;  %v6316_v9 = vld [vmem:[%s9452_s8 + $0x4c] sm:$0xf] }
 0x349   : > { %3827 = vmatpush.bf16.msra.mxu3 %v5452_v14  ;;  %v5899_v14 = vld [vmem:[%s9452_s8 + $0x438] sm:$0xf]  ;;  %v6016_v19 = vor.u32 %v6470_v10, %v6013_v11  ;;  %v5397_v10 = vld [vmem:[%s9452_s8 + $0x64] sm:$0xf0]  ;;  %v5739_v55 = vld [vmem:[%s9452_s8 + $0x2f0] sm:$0xf] }
 0x34a   : > { %3800 = vmatpush.bf16.msra.mxu2 %v5868_v18  ;;  %v6344_v18 = vld [vmem:[%s9452_s8 + $0x12c] sm:$0xf] }
 0x34b   : > { %3840 = vmatpush.bf16.msra.mxu0 %v5704_v21  ;;  %v5733_v21 = vld [vmem:[%s9452_s8 + $0x304] sm:$0xf0]  ;;  %v5512_v26 = vor.u32 %v6344_v18, %v5509_v61  ;;  %v6355_v61 = vld [vmem:[%s9452_s8 + $0x180] sm:$0xf0] }
 0x34c   : > { %3788 = vmatpush.bf16.msra.mxu1 %v5588_v25  ;;  %v5900_v25 = vor.u32 %v6445_v17, %v5899_v14  ;;  %v6435_v14 = vld [vmem:[%s9452_s8 + $0x404] sm:$0xf]  ;;  %v5400_v17 = vor.u32 %v6316_v9, %v5397_v10  ;;  %v5543_v18 = vld [vmem:[%s9452_s8 + $0x168] sm:$0xf] }
 0x34d   : > { %3828 = vmatpush.bf16.msra.mxu3 %v5424_v28  ;;  %v5736_v28 = vor.u32 %v6400_v20, %v5733_v21  ;;  %v5369_v21 = vld [vmem:[%s9452_s8 + $0x2c] sm:$0xf0]  ;;  %v5431_v10 = vld [vmem:[%s9452_s8 + $0x88] sm:$0xf] }
 0x34e   : > { %3801 = vmatpush.bf16.msra.mxu2 %v5840_v54  ;;  %v5481_v54 = vld [vmem:[%s9452_s8 + $0x10c] sm:$0xf0] }
 0x34f   : > { %3789 = vmatmul.bf16.vlgmr.msra.gmra.mxu1 %v8466_v24  ;;  %3841 = vmatpush.bf16.msra.mxu0 %v5676_v62  ;;  %v6456_v62 = vld [vmem:[%s9452_s8 + $0x4ac] sm:$0xf]  ;;  %v5484_v37 = vor.u32 %v6337_v30, %v5481_v54  ;;  %v5845_v54 = vld [vmem:[%s9452_s8 + $0x3e4] sm:$0xf0] }
 0x350   : > { %3851 = vmatpush.bf16.msrb.mxu1 %v6012_v29  ;;  %v6438_v29 = vld [vmem:[%s9452_s8 + $0x418] sm:$0xf0]  ;;  %v5960_v63 = vor.u32 %v6456_v62, %v5957_v33  ;;  %v6428_v30 = vld [vmem:[%s9452_s8 + $0x3cc] sm:$0xf]  ;;  %v5515_v33 = vld [vmem:[%s9452_s8 + $0x130] sm:$0xf] }
 0x351   : > { %3829 = vmatpush.bf16.msra.mxu3 %v5396_v42  ;;  %v5872_v34 = vor.u32 %v6438_v29, %v5871_v8  ;;  %v6330_v42 = vld [vmem:[%s9452_s8 + $0xbc] sm:$0xf] }
 0x352   : > { %3802 = vmatpush.bf16.msra.mxu2 %v5812_v40  ;;  %v6386_v40 = vld [vmem:[%s9452_s8 + $0x27c] sm:$0xf] }
 0x353   : > { %3842 = vmatpush.bf16.msra.mxu0 %v5648_v46  ;;  %v5844_v46 = vor.u32 %v6431_v38, %v5843_v35  ;;  %v5680_v53 = vor.u32 %v6386_v40, %v5677_v41  ;;  %v6418_v8 = vld [vmem:[%s9452_s8 + $0x378] sm:$0xf0]  ;;  %v5848_v35 = vor.u32 %v6428_v30, %v5845_v54  ;;  %v6411_v38 = vld [vmem:[%s9452_s8 + $0x340] sm:$0xf0]  ;;  %v5817_v40 = vld [vmem:[%s9452_s8 + $0x3ac] sm:$0xf0] }
 0x354   : > { %3852 = vmatpush.bf16.msrb.mxu1 %v5984_v51  ;;  %v5453_v51 = vld [vmem:[%s9452_s8 + $0xd4] sm:$0xf0]  ;;  %v6474_v29 = vld [vmem:[%s9452_s8 + $0x538] sm:$0xf0]  ;;  %v5627_v54 = vld [vmem:[%s9452_s8 + $0x210] sm:$0xf] }
 0x355   : > { %3803 = vmatmul.bf16.vlgmr.msra.gmra.mxu2 %v8468_v27  ;;  %3830 = vmatpush.bf16.msra.mxu3 %v5368_v50  ;;  %v5932_v50 = vor.u32 %v6449_v43, %v5929_v45  ;;  %v6047_v43 = vld [vmem:[%s9452_s8 + $0x558] sm:$0xf]  ;;  %v6481_v45 = vld [vmem:[%s9452_s8 + $0x570] sm:$0xf0] }
 0x356   : > { %3872 = vmatpush.bf16.msrb.mxu2 %v6040_v47  ;;  %v5456_v47 = vor.u32 %v6330_v42, %v5453_v51  ;;  %v5991_v42 = vld [vmem:[%s9452_s8 + $0x4e8] sm:$0xf]  ;;  %v6467_v51 = vld [vmem:[%s9452_s8 + $0x500] sm:$0xf0] }
 0x357   : > { %3843 = vmatpush.bf16.msra.mxu0 %v5620_v2  ;;  %v5816_v2 = vor.u32 %v6424_v49, %v5815_v48  ;;  %v6341_v48 = vld [vmem:[%s9452_s8 + $0x110] sm:$0xf0]  ;;  %v5992_v49 = vor.u32 %v6467_v51, %v5991_v42 }
 0x358   : > { %3853 = vmatpush.bf16.msrb.mxu1 %v5956_v58  ;;  %3831 = vmatmul.bf16.vlgmr.msra.gmra.mxu3 %v8496_v39  ;;  %v5649_v58 = vld [vmem:[%s9452_s8 + $0x25c] sm:$0xf0] }
 0x359   : > { %3893 = vmatpush.bf16.msrb.mxu3 %v5792_v1  ;;  %v5901_v1 = vld [vmem:[%s9452_s8 + $0x454] sm:$0xf0]  ;;  %v5652_v5 = vor.u32 %v6379_v57, %v5649_v58  ;;  %v5963_v57 = vld [vmem:[%s9452_s8 + $0x4b0] sm:$0xf]  ;;  %v6048_v58 = vor.u32 %v6481_v45, %v6047_v43 }
 0x35a   : > { %3879 = vmatpush.bf16.msra.mxu2 %v5568_v59  ;;  %v6477_v59 = vld [vmem:[%s9452_s8 + $0x554] sm:$0xf]  ;;  %v5904_v11 = vor.u32 %v6442_v0, %v5901_v1  ;;  %v5459_v0 = vld [vmem:[%s9452_s8 + $0xc0] sm:$0xf]  ;;  %v6334_v1 = vld [vmem:[%s9452_s8 + $0xd8] sm:$0xf0] }
 0x35b   : > { %3844 = vmatpush.bf16.msra.mxu0 %v5592_v16  ;;  %v6044_v6 = vor.u32 %v6477_v59, %v6041_v60  ;;  %v5572_v16 = vor.u32 %v6362_v7, %v5571_v4  ;;  %v5740_v60 = vor.u32 %v6404_v56, %v5739_v55  ;;  %v6397_v4 = vld [vmem:[%s9452_s8 + $0x2d0] sm:$0xf0]  ;;  %v5460_v7 = vor.u32 %v6334_v1, %v5459_v0 }
 0x35c   : > { %3854 = vmatpush.bf16.msrb.mxu1 %v5928_v12  ;;  %v6372_v12 = vld [vmem:[%s9452_s8 + $0x20c] sm:$0xf] }
 0x35d   : > { %3894 = vmatpush.bf16.msrb.mxu3 %v5764_v15  ;;  %v5873_v15 = vld [vmem:[%s9452_s8 + $0x41c] sm:$0xf0] }
 0x35e   : > { %3880 = vmatpush.bf16.msra.mxu2 %v5540_v13  ;;  %3845 = vmatmul.bf16.vlgmr.msra.gmra.mxu0 %v8466_v24  ;;  %v5621_v13 = vld [vmem:[%s9452_s8 + $0x224] sm:$0xf0] }
 0x35f   : > { %3907 = vmatpush.bf16.msrb.mxu0 %v6016_v19  ;;  %v6309_v19 = vld [vmem:[%s9452_s8 + $0x14] sm:$0xf]  ;;  %v5624_v20 = vor.u32 %v6372_v12, %v5621_v13  ;;  %v5683_v13 = vld [vmem:[%s9452_s8 + $0x280] sm:$0xf] }
 0x360   : > { %3855 = vmatpush.bf16.msrb.mxu1 %v5900_v25  ;;  %v5876_v25 = vor.u32 %v6435_v14, %v5873_v15  ;;  %v5372_v32 = vor.u32 %v6309_v19, %v5369_v21  ;;  %v6390_v14 = vld [vmem:[%s9452_s8 + $0x298] sm:$0xf0]  ;;  %v5907_v15 = vld [vmem:[%s9452_s8 + $0x440] sm:$0xf]  ;;  %v6320_v19 = vld [vmem:[%s9452_s8 + $0x68] sm:$0xf0] }
 0x361   : > { %3895 = vmatpush.bf16.msrb.mxu3 %v5736_v28  ;;  %v6019_v28 = vld [vmem:[%s9452_s8 + $0x520] sm:$0xf]  ;;  %v5655_v21 = vld [vmem:[%s9452_s8 + $0x248] sm:$0xf] }
 0x362   : > { %3881 = vmatpush.bf16.msra.mxu2 %v5512_v26  ;;  %v5795_v26 = vld [vmem:[%s9452_s8 + $0x360] sm:$0xf] }
 0x363   : > { %3908 = vmatpush.bf16.msrb.mxu0 %v5988_v31  ;;  %v5544_v31 = vor.u32 %v6355_v61, %v5543_v18  ;;  %v5796_v62 = vor.u32 %v6418_v8, %v5795_v26  ;;  %v5684_v18 = vor.u32 %v6390_v14, %v5683_v13  ;;  %v5403_v61 = vld [vmem:[%s9452_s8 + $0x50] sm:$0xf]  ;;  %v5656_v8 = vor.u32 %v6383_v22, %v5655_v21 }
 0x364   : > { %3856 = vmatpush.bf16.msrb.mxu1 %v5872_v34  ;;  %v6348_v34 = vld [vmem:[%s9452_s8 + $0x148] sm:$0xf0]  ;;  %v5404_v26 = vor.u32 %v6320_v19, %v5403_v61 }
 0x365   : > { %3896 = vmatpush.bf16.msrb.mxu3 %v5708_v36  ;;  %6053 = vmatmul.msk.bf16.vlgmr.msrb.gmra.mxu2 %vm1657_vm0, %v8504_v44  ;;  %v5767_v36 = vld [vmem:[%s9452_s8 + $0x328] sm:$0xf]  ;;  %v5516_v41 = vor.u32 %v6348_v34, %v5515_v33 }
 0x366   : > { %3882 = vmatpush.bf16.msra.mxu2 %v5484_v37  ;;  %v6020_v37 = vor.u32 %v6474_v29, %v6019_v28  ;;  %v5375_v28 = vld [vmem:[%s9452_s8 + $0x18] sm:$0xf]  ;;  %v6313_v29 = vld [vmem:[%s9452_s8 + $0x30] sm:$0xf0] }
 0x367   : > { %3909 = vmatpush.bf16.msrb.mxu0 %v5960_v63  ;;  %v6421_v63 = vld [vmem:[%s9452_s8 + $0x394] sm:$0xf] }
 0x368   : > { %3857 = vmatpush.bf16.msrb.mxu1 %v5844_v46  ;;  %v5768_v46 = vor.u32 %v6411_v38, %v5767_v36  ;;  %v5823_v36 = vld [vmem:[%s9452_s8 + $0x398] sm:$0xf]  ;;  %v6425_v38 = vld [vmem:[%s9452_s8 + $0x3b0] sm:$0xf0] }
 0x369   : > { %3897 = vmatpush.bf16.msrb.mxu3 %v5680_v53  ;;  %v5820_v53 = vor.u32 %v6421_v63, %v5817_v40  ;;  %v5824_v51 = vor.u32 %v6425_v38, %v5823_v36 }
 0x36a   : > { %3883 = vmatpush.bf16.msra.mxu2 %v5456_v47  ;;  %v5487_v47 = vld [vmem:[%s9452_s8 + $0xf8] sm:$0xf] }
 0x36b   : > { %3910 = vmatpush.bf16.msrb.mxu0 %v5932_v50  ;;  %v6460_v50 = vld [vmem:[%s9452_s8 + $0x4c8] sm:$0xf0]  ;;  %v5488_v59 = vor.u32 %v6341_v48, %v5487_v47 }
 0x36c   : > { %3858 = vmatpush.bf16.msrb.mxu1 %v5816_v2  ;;  %v5964_v2 = vor.u32 %v6460_v50, %v5963_v57 }
 0x36d   : > { %3898 = vmatpush.bf16.msrb.mxu3 %v5652_v5  ;;  %v5935_v5 = vld [vmem:[%s9452_s8 + $0x478] sm:$0xf] }
 0x36e   : > { %3884 = vmatpush.bf16.msra.mxu2 %v5428_v3  ;;  %v5711_v3 = vld [vmem:[%s9452_s8 + $0x2b8] sm:$0xf] }
 0x36f   : > { %3911 = vmatpush.bf16.msrb.mxu0 %v5904_v11  ;;  %3859 = vmatmul.bf16.vlgmr.msrb.gmra.mxu1 %v8468_v27  ;;  %v5712_v9 = vor.u32 %v6397_v4, %v5711_v3  ;;  %v6327_v11 = vld [vmem:[%s9452_s8 + $0xa0] sm:$0xf0] }
 0x370   : > { %3928 = vmatpush.bf16.msra.mxu1 %v6044_v6  ;;  %v6453_v6 = vld [vmem:[%s9452_s8 + $0x490] sm:$0xf0] }
 0x371   : > { %3899 = vmatpush.bf16.msrb.mxu3 %v5624_v20  ;;  %v5936_v12 = vor.u32 %v6453_v6, %v5935_v5 }
 0x372   : > { %3885 = vmatpush.bf16.msra.mxu2 %v5400_v17  ;;  %v5432_v17 = vor.u32 %v6327_v11, %v5431_v10 }
 0x373   : > { %3912 = vmatpush.bf16.msrb.mxu0 %v5876_v25  ;;  %v6439_v25 = vld [vmem:[%s9452_s8 + $0x420] sm:$0xf0] }
 0x374   : > { %3935 = vmatpush.bf16.msrb.mxu1 %v5572_v16  ;;  %v6446_v16 = vld [vmem:[%s9452_s8 + $0x458] sm:$0xf0]  ;;  %v5880_v30 = vor.u32 %v6439_v25, %v5879_v23 }
 0x375   : > { %3900 = vmatpush.bf16.msrb.mxu3 %v5596_v52  ;;  %v5908_v20 = vor.u32 %v6446_v16, %v5907_v15  ;;  %v6432_v52 = vld [vmem:[%s9452_s8 + $0x3e8] sm:$0xf0] }
 0x376   : > { %3886 = vmatpush.bf16.msra.mxu2 %v5372_v32  ;;  %v5851_v32 = vld [vmem:[%s9452_s8 + $0x3d0] sm:$0xf] }
 0x377   : > { %3913 = vmatpush.bf16.msrb.mxu0 %v5848_v35  ;;  %v5852_v34 = vor.u32 %v6432_v52, %v5851_v32  ;;  %v6369_v35 = vld [vmem:[%s9452_s8 + $0x1f0] sm:$0xf0] }
 0x378   : > { %3936 = vmatpush.bf16.msrb.mxu1 %v5544_v31  ;;  %3901 = vmatmul.bf16.vlgmr.msrb.gmra.mxu3 %v8466_v24  ;;  %v6376_v31 = vld [vmem:[%s9452_s8 + $0x228] sm:$0xf0] }
 0x379   : > { %3963 = vmatpush.bf16.msra.mxu3 %v6020_v37  ;;  %3887 = vmatmul.bf16.vlgmr.msra.gmra.mxu2 %v8496_v39  ;;  %v5628_v33 = vor.u32 %v6376_v31, %v5627_v54  ;;  %v5599_v37 = vld [vmem:[%s9452_s8 + $0x1d8] sm:$0xf] }
 0x37a   : > { %3949 = vmatpush.bf16.msrb.mxu2 %v5796_v62  ;;  %v5376_v62 = vor.u32 %v6313_v29, %v5375_v28  ;;  %v5600_v42 = vor.u32 %v6369_v35, %v5599_v37 }
 0x37b   : > { %3914 = vmatpush.bf16.msrb.mxu0 %v5820_v53 }
 0x37c   : > { %3937 = vmatpush.bf16.msrb.mxu1 %v5516_v41  ;;  %v9250_v41 = vld [vmem:[%s9453_s9] sm:$0x7f] }
 0x37d   : > { %3964 = vmatpush.bf16.msra.mxu3 %v5992_v49  ;;  %v2684_v19 = vperm.slane %v9250_v41, 2 }
 0x37e   : > { %3950 = vmatpush.bf16.msrb.mxu2 %v5768_v46  ;;  %3915 = vmatmul.bf16.vlgmr.msrb.gmra.mxu0 %v8468_v27 }
 0x37f   : > { %3984 = vmatpush.bf16.msra.mxu0 %v6048_v58  ;;  %6054 = vmatmul.msk.bf16.vlgmr.msra.gmra.mxu1 %vm1657_vm0, %v8504_v44 }
 0x380   : > { %3938 = vmatpush.bf16.msrb.mxu1 %v5488_v59 }
 0x381   : > { %3965 = vmatpush.bf16.msra.mxu3 %v5964_v2 }
 0x382   : > { %3951 = vmatpush.bf16.msrb.mxu2 %v5740_v60  ;;  %v2683_v60 = vperm.slane %v9250_v41, 1 }
 0x384   : > { %3939 = vmatpush.bf16.msrb.mxu1 %v5460_v7 }
 0x385   : > { %3966 = vmatpush.bf16.msra.mxu3 %v5936_v12 }
 0x386   : > { %3952 = vmatpush.bf16.msrb.mxu2 %v5712_v9 }
 0x388   : > { %3940 = vmatpush.bf16.msrb.mxu1 %v5432_v17 }
 0x389   : > { %3967 = vmatpush.bf16.msra.mxu3 %v5908_v20 }
 0x38a   : > { %3953 = vmatpush.bf16.msrb.mxu2 %v5684_v18 }
 0x38b   : > { %v3622_v40 = vpop.f32.mrf.mxu0 }
 0x38c   : > { %3941 = vmatpush.bf16.msrb.mxu1 %v5404_v26  ;;  %v3636_v63 = vpop.f32.mrf.mxu1 }
 0x38d   : > { %3968 = vmatpush.bf16.msra.mxu3 %v5880_v30 }
 0x38e   : > { %3954 = vmatpush.bf16.msrb.mxu2 %v5656_v8  ;;  %6055 = vmatmul.msk.bf16.vlgmr.msra.gmra.mxu0 %vm1657_vm0, %v8504_v44  ;;  %v2682_v44 = vperm.slane %v9250_v41, 0 }
 0x390   : > { %3942 = vmatpush.bf16.msrb.mxu1 %v5376_v62 }
 0x391   : > { %3969 = vmatpush.bf16.msra.mxu3 %v5852_v34 }
 0x392   : > { %3955 = vmatpush.bf16.msrb.mxu2 %v5628_v33 }
 0x393   : > { %3943 = vmatmul.bf16.vlgmr.msrb.gmra.mxu1 %v8496_v39  ;;  %v3624_v48 = vpop.f32.mrf.mxu0 }
 0x394   : > { %v3638_v43 = vpop.f32.mrf.mxu1 }
 0x395   : > { %3970 = vmatpush.bf16.msra.mxu3 %v5824_v51 }
 0x396   : > { %3956 = vmatpush.bf16.msrb.mxu2 %v5600_v42 }
 0x397   : > { %v3608_v45 = vpop.f32.mrf.mxu3 }
 0x398   : > { %3971 = vmatmul.bf16.vlgmr.msra.gmra.mxu3 %v8468_v27  ;;  %v3609_v46 = vadd.f32 %v3608_v45, %v2682_v44  ;;  %v3650_v47 = vpop.f32.mrf.mxu2 }
 0x399   : > { %3957 = vmatmul.bf16.vlgmr.msrb.gmra.mxu2 %v8466_v24 }
 0x39a   : > { %v3623_v39 = vadd.f32 %v3622_v40, %v3609_v46 }
 0x39b   : > { %v3692_v59 = vpop.f32.mrf.mxu0 }
 0x39c   : > { %v3637_v49 = vadd.f32 %v3636_v63, %v3623_v39  ;;  %v3706_v57 = vpop.f32.mrf.mxu1 }
 0x39e   : > { %v3651_v53 = vadd.f32 %v3650_v47, %v3637_v49 }
 0x39f   : > { %v3610_v55 = vpop.f32.mrf.mxu3 }
 0x3a0   : > { %v6056_v24 = vmul.f32 -1.442695, %v3651_v53  ;;  %v3611_v56 = vadd.f32 %v3610_v55, %v2682_v44  ;;  %v3652_v27 = vpop.f32.mrf.mxu2 }
 0x3a2   : > { %v3625_v50 = vadd.f32 %v3624_v48, %v3611_v56  ;;  %6532 = vpow2.f32 %v6056_v24 }
 0x3a3   : > { %v3694_v11 = vpop.f32.mrf.mxu0 }
 0x3a4   : > { %v3639_v58 = vadd.f32 %v3638_v43, %v3625_v50  ;;  %v3708_v6 = vpop.f32.mrf.mxu1 }
 0x3a6   : > { %v3653_v0 = vadd.f32 %v3652_v27, %v3639_v58 }
 0x3a7   : > { %v3678_v1 = vpop.f32.mrf.mxu3 }
 0x3a8   : > { %v6063_v2 = vmul.f32 -1.442695, %v3653_v0  ;;  %v3664_v3 = vpop.f32.mrf.mxu2  ;;  %v6533_v5 = vpop.eup %6532 }
 0x3a9   : > { %v3665_v4 = vadd.f32 %v3664_v3, %v2683_v60  ;;  %v9254_v9 = vadd.f32 1.0, %v6533_v5 }
 0x3aa   : > { %6534 = vpow2.f32 %v6063_v2 }
 0x3ab   : > { %v3679_v7 = vadd.f32 %v3678_v1, %v3665_v4  ;;  %6536 = vrcp.f32 %v9254_v9  ;;  %v3762_v28 = vpop.f32.mrf.mxu0  ;;  %vm4052_vm4 = vweird.f32 %v9254_v9  ;;  %v4056_v49 = vand.u32 2147483647, %v9254_v9 }
 0x3ac   : > { %v3720_v20 = vpop.f32.mrf.mxu1  ;;  %v4058_v53 = vand.u32 2147483648, %v9254_v9 }
 0x3ad   : > { %v3693_v10 = vadd.f32 %v3692_v59, %v3679_v7  ;;  %v3721_v8 = vadd.f32 %v3720_v20, %v2684_v19  ;;  %vm4057_vm9 = vcmp.eq.f32.partialorder %v4056_v49, 8.507059e+37 }
 0x3ae   : > { %v4059_v2 = vor.u32 1.1754944e-38, %v4058_v53 }
 0x3af   : > { %v3680_v12 = vpop.f32.mrf.mxu3  ;;  %v3707_v13 = vadd.f32 %v3706_v57, %v3693_v10  ;;  %v2685_v10 = vperm.slane %v9250_v41, 3 }
 0x3b0   : > { %v3666_v14 = vpop.f32.mrf.mxu2  ;;  %v6535_v16 = vpop.eup %6534 }
 0x3b1   : > { %v3667_v15 = vadd.f32 %v3666_v14, %v2683_v60  ;;  %v6057_v17 = vmul.f32 -1.442695, %v3707_v13  ;;  %v9257_v61 = vadd.f32 1.0, %v6535_v16  ;;  %v9260_v22 = vpop.eup %6536 }
 0x3b2   : > { %v4048_v30 = vmul.f32 %v9260_v22, %v9254_v9  ;;  %vm4053_vm5 = vweird.f32 %v9260_v22 }
 0x3b3   : > { %6538 = vpow2.f32 %v6057_v17  ;;  %v3681_v18 = vadd.f32 %v3680_v12, %v3667_v15  ;;  %v3764_v44 = vpop.f32.mrf.mxu0  ;;  %vm9281_vm7 = vmor %vm4052_vm4, %vm4053_vm5  ;;  %v4161_v15 = vand.u32 2147483647, %v9257_v61  ;;  %v4163_v16 = vand.u32 2147483648, %v9257_v61 }
 0x3b4   : > { %6540 = vrcp.f32 %v9257_v61  ;;  %v4049_v52 = vsub.f32 1.0, %v4048_v30  ;;  %v3722_v33 = vpop.f32.mrf.mxu1  ;;  %vm4157_vm13 = vweird.f32 %v9257_v61 }
 0x3b5   : > { %v3695_v21 = vadd.f32 %v3694_v11, %v3681_v18  ;;  %v3723_v51 = vadd.f32 %v3722_v33, %v2684_v19  ;;  %vm4162_vm1 = vcmp.eq.f32.partialorder %v4161_v15, 8.507059e+37 }
 0x3b6   : > { %v4050_v38 = vmul.f32 %v9260_v22, %v4049_v52 }
 0x3b7   : > { %v3748_v23 = vpop.f32.mrf.mxu3  ;;  %v3709_v25 = vadd.f32 %v3708_v6, %v3695_v21 }
 0x3b8   : > { %v3734_v26 = vpop.f32.mrf.mxu2  ;;  %v4051_v47 = vadd.f32 %v9260_v22, %v4050_v38 }
 0x3b9   : > { %v6539_v29 = vpop.eup %6538  ;;  %v6064_v54 = vmul.f32 -1.442695, %v3709_v25  ;;  %v3735_v32 = vadd.f32 %v3734_v26, %v3721_v8  ;;  %v4164_v8 = vor.u32 1.1754944e-38, %v4163_v16 }
 0x3ba   : > { %v4034_v31 = vadd.f32 1.0, %v6539_v29  ;;  %v9265_v62 = vpop.eup %6540  ;;  %v4055_v59 = vsel %vm9281_vm7, %v9260_v22, %v4051_v47 }
 0x3bb   : > { %6542 = vpow2.f32 %v6064_v54  ;;  %v3749_v34 = vadd.f32 %v3748_v23, %v3735_v32  ;;  %v4153_v42 = vmul.f32 %v9265_v62, %v9257_v61  ;;  %v4060_v7 = vsel %vm4057_vm9, %v4059_v2, %v4055_v59  ;;  %v3776_v11 = vpop.f32.mrf.mxu0 }
 0x3bc   : > { %6544 = vrcp.f32 %v4034_v31  ;;  %v4073_v55 = vand.u32 2147483648, %v4034_v31  ;;  %v4071_v27 = vand.u32 2147483647, %v4034_v31  ;;  %vm4067_vm8 = vweird.f32 %v4034_v31 }
 0x3bd   : > { %v3763_v43 = vadd.f32 %v3762_v28, %v3749_v34  ;;  %v4154_v39 = vsub.f32 1.0, %v4153_v42  ;;  %vm4158_vm12 = vweird.f32 %v9265_v62  ;;  %v3777_v61 = vadd.f32 %v3776_v11, %v2685_v10 }
 0x3be   : > { %v4074_v3 = vor.u32 1.1754944e-38, %v4073_v55  ;;  %vm4072_vm11 = vcmp.eq.f32.partialorder %v4071_v27, 8.507059e+37  ;;  %vm9305_vm15 = vmor %vm4157_vm13, %vm4158_vm12 }
 0x3bf   : > { %v3750_v37 = vpop.f32.mrf.mxu3  ;;  %v6058_v24 = vmul.f32 -1.442695, %v3763_v43  ;;  %v4155_v60 = vmul.f32 %v9265_v62, %v4154_v39 }
 0x3c0   : > { %v3736_v35 = vpop.f32.mrf.mxu2 }
 0x3c1   : > { %v6543_v36 = vpop.eup %6542  ;;  %v3737_v46 = vadd.f32 %v3736_v35, %v3723_v51  ;;  %v4156_v12 = vadd.f32 %v9265_v62, %v4155_v60 }
 0x3c2   : > { %v6545_v63 = vpop.eup %6544  ;;  %v9270_v40 = vadd.f32 1.0, %v6543_v36 }
 0x3c3   : > { %v4063_v45 = vmul.f32 %v6545_v63, %v4034_v31  ;;  %vm4068_vm6 = vweird.f32 %v6545_v63  ;;  %v3751_v57 = vadd.f32 %v3750_v37, %v3737_v46  ;;  %v4160_v25 = vsel %vm9305_vm15, %v9265_v62, %v4156_v12  ;;  %v3778_v37 = vpop.f32.mrf.mxu0 }
 0x3c4   : > { %6546 = vrcp.f32 %v9270_v40  ;;  %vm4069_vm10 = vmor %vm4067_vm8, %vm4068_vm6  ;;  %v4176_v17 = vand.u32 2147483647, %v9270_v40  ;;  %v4178_v18 = vand.u32 2147483648, %v9270_v40  ;;  %vm4172_vm0 = vweird.f32 %v9270_v40 }
 0x3c5   : > { %v4064_v48 = vsub.f32 1.0, %v4063_v45  ;;  %6548 = vpow2.f32 %v6058_v24  ;;  %v3765_v6 = vadd.f32 %v3764_v44, %v3751_v57  ;;  %v4165_v32 = vsel %vm4162_vm1, %v4164_v8, %v4160_v25 }
 0x3c6   : > { %vm4177_vm3 = vcmp.eq.f32.partialorder %v4176_v17, 8.507059e+37  ;;  %v4179_v28 = vor.u32 1.1754944e-38, %v4178_v18  ;;  %v3779_v42 = vadd.f32 %v3778_v37, %v2685_v10  ;;  %v2686_v46 = vperm.slane %v9250_v41, 4 }
 0x3c7   : > { %v4065_v56 = vmul.f32 %v6545_v63, %v4064_v48  ;;  %v3818_v58 = vpop.f32.mrf.mxu3  ;;  %v6065_v21 = vmul.f32 -1.442695, %v3765_v6 }
 0x3c9   : > { %v4066_v0 = vadd.f32 %v6545_v63, %v4065_v56  ;;  %6550 = vpow2.f32 %v6065_v21 }
 0x3ca   : > { %v6547_v1 = vpop.eup %6546 }
 0x3cb   : > { %v4070_v4 = vsel %vm4069_vm10, %v6545_v63, %v4066_v0  ;;  %v4168_v5 = vmul.f32 %v6547_v1, %v9270_v40  ;;  %vm4173_vm14 = vweird.f32 %v6547_v1  ;;  %v6549_v22 = vpop.eup %6548 }
 0x3cc   : > { %v4075_v9 = vsel %vm4072_vm11, %v4074_v3, %v4070_v4  ;;  %v3790_v19 = vpop.f32.mrf.mxu1  ;;  %vm4174_vm2 = vmor %vm4172_vm0, %vm4173_vm14  ;;  %v9313_v54 = vadd.f32 1.0, %v6549_v22  ;;  %v2688_v22 = vperm.slane %v9250_v41, 6 }
 0x3cd   : > { %v4257_v13 = vpack.c.bf16 %v4075_v9, %v4060_v7  ;;  %v4169_v14 = vsub.f32 1.0, %v4168_v5  ;;  %v3791_v31 = vadd.f32 %v3790_v19, %v3777_v61  ;;  %v2687_v61 = vperm.slane %v9250_v41, 5 }
 0x3ce   : > { %6552 = vrcp.f32 %v9313_v54  ;;  %vm4082_vm5 = vweird.f32 %v9313_v54  ;;  %v4086_v17 = vand.u32 2147483647, %v9313_v54  ;;  %v4088_v18 = vand.u32 2147483648, %v9313_v54 }
 0x3cf   : > { %4265 = vst [vmem:[%s9300_s0] sm:$0xff] %v4257_v13  ;;  %v4170_v20 = vmul.f32 %v6547_v1, %v4169_v14  ;;  %v3820_v29 = vpop.f32.mrf.mxu3  ;;  %v6551_v38 = vpop.eup %6550 }
 0x3d0   : > { %v9317_v40 = vadd.f32 1.0, %v6551_v38  ;;  %vm4087_vm10 = vcmp.eq.f32.partialorder %v4086_v17, 8.507059e+37 }
 0x3d1   : > { %v4171_v26 = vadd.f32 %v6547_v1, %v4170_v20 }
 0x3d2   : > { %vm4187_vm13 = vweird.f32 %v9317_v40 }
 0x3d3   : > { %v4175_v30 = vsel %vm4174_vm2, %v6547_v1, %v4171_v26 }
 0x3d4   : > { %v4180_v52 = vsel %vm4177_vm3, %v4179_v28, %v4175_v30  ;;  %v3792_v36 = vpop.f32.mrf.mxu1  ;;  %v9319_v45 = vpop.eup %6552 }
 0x3d5   : > { %v4261_v62 = vpack.c.bf16 %v4180_v52, %v4165_v32  ;;  %v3793_v63 = vadd.f32 %v3792_v36, %v3779_v42  ;;  %v4078_v48 = vmul.f32 %v9319_v45, %v9313_v54  ;;  %vm4083_vm4 = vweird.f32 %v9319_v45 }
 0x3d6   : > { %vm9338_vm6 = vmor %vm4082_vm5, %vm4083_vm4  ;;  %v4089_v54 = vor.u32 1.1754944e-38, %v4088_v18 }
 0x3d7   : > { %4270 = vst [vmem:[%s9300_s0 + $0x1c] sm:$0xff] %v4261_v62  ;;  %v4079_v27 = vsub.f32 1.0, %v4078_v48 }
 0x3d8   : > { %v3804_v33 = vpop.f32.mrf.mxu2 }
 0x3d9   : > { %v3805_v34 = vadd.f32 %v3804_v33, %v3791_v31  ;;  %v4080_v1 = vmul.f32 %v9319_v45, %v4079_v27 }
 0x3db   : > { %v3819_v35 = vadd.f32 %v3818_v58, %v3805_v34  ;;  %v3832_v44 = vpop.f32.mrf.mxu3  ;;  %v3846_v56 = vpop.f32.mrf.mxu0  ;;  %v4081_v11 = vadd.f32 %v9319_v45, %v4080_v1 }
 0x3dc   : > { %v3833_v53 = vadd.f32 %v3832_v44, %v2686_v46  ;;  %v4193_v44 = vand.u32 2147483648, %v9317_v40 }
 0x3dd   : > { %v6059_v51 = vmul.f32 -1.442695, %v3819_v35  ;;  %v4085_v26 = vsel %vm9338_vm6, %v9319_v45, %v4081_v11 }
 0x3de   : > { %v3847_v50 = vadd.f32 %v3846_v56, %v3833_v53  ;;  %v4090_v33 = vsel %vm4087_vm10, %v4089_v54, %v4085_v26  ;;  %v4194_v27 = vor.u32 1.1754944e-38, %v4193_v44 }
 0x3df   : > { %6554 = vpow2.f32 %v6059_v51 }
 0x3e0   : > { %v3806_v43 = vpop.f32.mrf.mxu2  ;;  %6556 = vrcp.f32 %v9317_v40 }
 0x3e1   : > { %v3807_v47 = vadd.f32 %v3806_v43, %v3793_v63  ;;  %v4191_v63 = vand.u32 2147483647, %v9317_v40 }
 0x3e3   : > { %v3821_v39 = vadd.f32 %v3820_v29, %v3807_v47  ;;  %v3834_v59 = vpop.f32.mrf.mxu3  ;;  %v3848_v12 = vpop.f32.mrf.mxu0  ;;  %vm4192_vm2 = vcmp.eq.f32.partialorder %v4191_v63, 8.507059e+37 }
 0x3e4   : > { %v3835_v4 = vadd.f32 %v3834_v59, %v2686_v46 }
 0x3e5   : > { %v6555_v49 = vpop.eup %6554  ;;  %v6066_v55 = vmul.f32 -1.442695, %v3821_v39 }
 0x3e6   : > { %v4036_v24 = vadd.f32 1.0, %v6555_v49  ;;  %v9325_v58 = vpop.eup %6556  ;;  %v3849_v16 = vadd.f32 %v3848_v12, %v3835_v4 }
 0x3e7   : > { %6558 = vpow2.f32 %v6066_v55  ;;  %v4183_v3 = vmul.f32 %v9325_v58, %v9317_v40  ;;  %vm4188_vm12 = vweird.f32 %v9325_v58 }
 0x3e8   : > { %6560 = vrcp.f32 %v4036_v24  ;;  %v3874_v57 = vpop.f32.mrf.mxu2  ;;  %v4101_v19 = vand.u32 2147483647, %v4036_v24  ;;  %v4103_v20 = vand.u32 2147483648, %v4036_v24  ;;  %vm4097_vm8 = vweird.f32 %v4036_v24  ;;  %vm9358_vm15 = vmor %vm4187_vm13, %vm4188_vm12 }
 0x3e9   : > { %v4184_v14 = vsub.f32 1.0, %v4183_v3 }
 0x3ea   : > { %v4104_v31 = vor.u32 1.1754944e-38, %v4103_v20  ;;  %vm4102_vm11 = vcmp.eq.f32.partialorder %v4101_v19, 8.507059e+37 }
 0x3eb   : > { %v4185_v8 = vmul.f32 %v9325_v58, %v4184_v14 }
 0x3ec   : > { %v3860_v60 = vpop.f32.mrf.mxu1 }
 0x3ed   : > { %v3861_v0 = vadd.f32 %v3860_v60, %v3847_v50  ;;  %v6559_v2 = vpop.eup %6558  ;;  %v4186_v36 = vadd.f32 %v9325_v58, %v4185_v8 }
 0x3ee   : > { %v6561_v6 = vpop.eup %6560  ;;  %v9330_v7 = vadd.f32 1.0, %v6559_v2 }
 0x3ef   : > { %v3875_v5 = vadd.f32 %v3874_v57, %v3861_v0  ;;  %v4093_v9 = vmul.f32 %v6561_v6, %v4036_v24  ;;  %vm4098_vm7 = vweird.f32 %v6561_v6  ;;  %v4190_v55 = vsel %vm9358_vm15, %v9325_v58, %v4186_v36 }
 0x3f0   : > { %6562 = vrcp.f32 %v9330_v7  ;;  %v3876_v13 = vpop.f32.mrf.mxu2  ;;  %vm4099_vm9 = vmor %vm4097_vm8, %vm4098_vm7  ;;  %v4208_v43 = vand.u32 2147483648, %v9330_v7  ;;  %v4206_v47 = vand.u32 2147483647, %v9330_v7  ;;  %vm4202_vm0 = vweird.f32 %v9330_v7 }
 0x3f1   : > { %v6060_v10 = vmul.f32 -1.442695, %v3875_v5  ;;  %v4094_v15 = vsub.f32 1.0, %v4093_v9  ;;  %v4195_v60 = vsel %vm4192_vm2, %v4194_v27, %v4190_v55 }
 0x3f2   : > { %v4209_v57 = vor.u32 1.1754944e-38, %v4208_v43  ;;  %vm4207_vm3 = vcmp.eq.f32.partialorder %v4206_v47, 8.507059e+37 }
 0x3f3   : > { %v4095_v23 = vmul.f32 %v6561_v6, %v4094_v15  ;;  %6564 = vpow2.f32 %v6060_v10 }
 0x3f4   : > { %v3862_v21 = vpop.f32.mrf.mxu1 }
 0x3f5   : > { %v3863_v25 = vadd.f32 %v3862_v21, %v3849_v16  ;;  %v4096_v28 = vadd.f32 %v6561_v6, %v4095_v23 }
 0x3f6   : > { %v6563_v30 = vpop.eup %6562 }
 0x3f7   : > { %v3877_v29 = vadd.f32 %v3876_v13, %v3863_v25  ;;  %v4100_v32 = vsel %vm4099_vm9, %v6561_v6, %v4096_v28  ;;  %v4198_v52 = vmul.f32 %v6563_v30, %v9330_v7  ;;  %vm4203_vm14 = vweird.f32 %v6563_v30 }
 0x3f8   : > { %v4105_v62 = vsel %vm4102_vm11, %v4104_v31, %v4100_v32  ;;  %vm4204_vm1 = vmor %vm4202_vm0, %vm4203_vm14 }
 0x3f9   : > { %v6067_v34 = vmul.f32 -1.442695, %v3877_v29  ;;  %v6565_v35 = vpop.eup %6564  ;;  %v4258_v38 = vpack.c.bf16 %v4105_v62, %v4090_v33  ;;  %v4199_v42 = vsub.f32 1.0, %v4198_v52 }
 0x3fa   : > { %v9362_v53 = vadd.f32 1.0, %v6565_v35 }
 0x3fb   : > { %v3902_v45 = vpop.f32.mrf.mxu3  ;;  %4266 = vst [vmem:[%s9300_s0 + $0x8] sm:$0xff] %v4258_v38  ;;  %v4200_v46 = vmul.f32 %v6563_v30, %v4199_v42  ;;  %6566 = vpow2.f32 %v6067_v34  ;;  %v3916_v40 = vpop.f32.mrf.mxu0 }
 0x3fc   : > { %v3888_v37 = vpop.f32.mrf.mxu2  ;;  %v3930_v48 = vpop.f32.mrf.mxu1  ;;  %6568 = vrcp.f32 %v9362_v53  ;;  %vm4112_vm4 = vweird.f32 %v9362_v53  ;;  %v4116_v8 = vand.u32 2147483647, %v9362_v53  ;;  %v4118_v32 = vand.u32 2147483648, %v9362_v53 }
 0x3fd   : > { %v3889_v51 = vadd.f32 %v3888_v37, %v2687_v61  ;;  %v4201_v24 = vadd.f32 %v6563_v30, %v4200_v46 }
 0x3fe   : > { %vm4117_vm9 = vcmp.eq.f32.partialorder %v4116_v8, 8.507059e+37  ;;  %v4119_v44 = vor.u32 1.1754944e-38, %v4118_v32 }
 0x3ff   : > { %v3903_v39 = vadd.f32 %v3902_v45, %v3889_v51  ;;  %v4205_v50 = vsel %vm4204_vm1, %v6563_v30, %v4201_v24 }
 0x400   : > { %v4210_v0 = vsel %vm4207_vm3, %v4209_v57, %v4205_v50 }
 0x401   : > { %v3917_v56 = vadd.f32 %v3916_v40, %v3903_v39  ;;  %v4262_v2 = vpack.c.bf16 %v4210_v0, %v4195_v60  ;;  %v6567_v58 = vpop.eup %6566 }
 0x402   : > { %v9370_v6 = vadd.f32 1.0, %v6567_v58  ;;  %v6569_v10 = vpop.eup %6568 }
 0x403   : > { %v3931_v59 = vadd.f32 %v3930_v48, %v3917_v56  ;;  %4271 = vst [vmem:[%s9300_s0 + $0x24] sm:$0xff] %v4262_v2  ;;  %v3904_v5 = vpop.f32.mrf.mxu3  ;;  %v3918_v11 = vpop.f32.mrf.mxu0  ;;  %v4108_v14 = vmul.f32 %v6569_v10, %v9362_v53  ;;  %vm4113_vm5 = vweird.f32 %v6569_v10 }
 0x404   : > { %v3890_v1 = vpop.f32.mrf.mxu2  ;;  %v3932_v9 = vpop.f32.mrf.mxu1  ;;  %vm9387_vm7 = vmor %vm4112_vm4, %vm4113_vm5  ;;  %vm4217_vm13 = vweird.f32 %v9370_v6  ;;  %v4223_v60 = vand.u32 2147483648, %v9370_v6  ;;  %v4221_v2 = vand.u32 2147483647, %v9370_v6 }
 0x405   : > { %v6061_v3 = vmul.f32 -1.442695, %v3931_v59  ;;  %v3891_v4 = vadd.f32 %v3890_v1, %v2687_v61  ;;  %v4109_v18 = vsub.f32 1.0, %v4108_v14 }
 0x406   : > { %vm4222_vm2 = vcmp.eq.f32.partialorder %v4221_v2, 8.507059e+37 }
 0x407   : > { %6570 = vpow2.f32 %v6061_v3  ;;  %v3905_v7 = vadd.f32 %v3904_v5, %v3891_v4  ;;  %v4110_v21 = vmul.f32 %v6569_v10, %v4109_v18 }
 0x408   : > { %6572 = vrcp.f32 %v9370_v6 }
 0x409   : > { %v3919_v12 = vadd.f32 %v3918_v11, %v3905_v7  ;;  %v4111_v29 = vadd.f32 %v6569_v10, %v4110_v21 }
 0x40b   : > { %v3933_v15 = vadd.f32 %v3932_v9, %v3919_v12  ;;  %v3986_v37 = vpop.f32.mrf.mxu0  ;;  %v4115_v38 = vsel %vm9387_vm7, %v6569_v10, %v4111_v29  ;;  %v4224_v10 = vor.u32 1.1754944e-38, %v4223_v60 }
 0x40c   : > { %v4120_v48 = vsel %vm4117_vm9, %v4119_v44, %v4115_v38 }
 0x40d   : > { %v6571_v13 = vpop.eup %6570  ;;  %v6068_v17 = vmul.f32 -1.442695, %v3933_v15 }
 0x40e   : > { %v4038_v16 = vadd.f32 1.0, %v6571_v13  ;;  %v9374_v19 = vpop.eup %6572 }
 0x40f   : > { %v4213_v25 = vmul.f32 %v9374_v19, %v9370_v6  ;;  %vm4218_vm12 = vweird.f32 %v9374_v19 }
 0x410   : > { %6574 = vrcp.f32 %v4038_v16  ;;  %v3944_v20 = vpop.f32.mrf.mxu1  ;;  %v4133_v52 = vand.u32 2147483648, %v4038_v16  ;;  %v4131_v34 = vand.u32 2147483647, %v4038_v16  ;;  %vm4127_vm8 = vweird.f32 %v4038_v16  ;;  %vm4219_vm15 = vmor %vm4217_vm13, %vm4218_vm12 }
 0x411   : > { %6576 = vpow2.f32 %v6068_v17  ;;  %v3945_v54 = vadd.f32 %v3944_v20, %v2688_v22  ;;  %v4214_v41 = vsub.f32 1.0, %v4213_v25 }
 0x412   : > { %v4134_v43 = vor.u32 1.1754944e-38, %v4133_v52  ;;  %vm4132_vm11 = vcmp.eq.f32.partialorder %v4131_v34, 8.507059e+37 }
 0x413   : > { %v4215_v45 = vmul.f32 %v9374_v19, %v4214_v41  ;;  %v3988_v4 = vpop.f32.mrf.mxu0 }
 0x415   : > { %v4216_v57 = vadd.f32 %v9374_v19, %v4215_v45 }
 0x416   : > { %v6575_v23 = vpop.eup %6574 }
 0x417   : > { %v6577_v26 = vpop.eup %6576  ;;  %v4123_v61 = vmul.f32 %v6575_v23, %v4038_v16  ;;  %vm4128_vm6 = vweird.f32 %v6575_v23  ;;  %v4220_v7 = vsel %vm4219_vm15, %v9374_v19, %v4216_v57 }
 0x418   : > { %v9381_v28 = vadd.f32 1.0, %v6577_v26  ;;  %v3946_v51 = vpop.f32.mrf.mxu1  ;;  %vm4129_vm10 = vmor %vm4127_vm8, %vm4128_vm6  ;;  %v4225_v14 = vsel %vm4222_vm2, %v4224_v10, %v4220_v7  ;;  %vm4268_vm8 = vcmask 125952  }
 0x419   : > { %v4124_v30 = vsub.f32 1.0, %v4123_v61  ;;  %v3947_v53 = vadd.f32 %v3946_v51, %v2688_v22 }
 0x41a   : > { %6578 = vrcp.f32 %v9381_v28  ;;  %v4238_v0 = vand.u32 2147483648, %v9381_v28  ;;  %v4236_v58 = vand.u32 2147483647, %v9381_v28  ;;  %vm4232_vm0 = vweird.f32 %v9381_v28 }
 0x41b   : > { %v3972_v33 = vpop.f32.mrf.mxu3  ;;  %v4125_v62 = vmul.f32 %v6575_v23, %v4124_v30 }
 0x41c   : > { %v3958_v31 = vpop.f32.mrf.mxu2  ;;  %v4239_v11 = vor.u32 1.1754944e-38, %v4238_v0  ;;  %vm4237_vm3 = vcmp.eq.f32.partialorder %v4236_v58, 8.507059e+37 }
 0x41d   : > { %v3959_v35 = vadd.f32 %v3958_v31, %v3945_v54  ;;  %v4126_v42 = vadd.f32 %v6575_v23, %v4125_v62 }
 0x41f   : > { %v3973_v63 = vadd.f32 %v3972_v33, %v3959_v35  ;;  %v4130_v46 = vsel %vm4129_vm10, %v6575_v23, %v4126_v42 }
 0x420   : > { %v6579_v39 = vpop.eup %6578  ;;  %v4135_v49 = vsel %vm4132_vm11, %v4134_v43, %v4130_v46 }
 0x421   : > { %v3987_v47 = vadd.f32 %v3986_v37, %v3973_v63  ;;  %v4259_v40 = vpack.c.bf16 %v4135_v49, %v4120_v48  ;;  %v4228_v55 = vmul.f32 %v6579_v39, %v9381_v28  ;;  %vm4233_vm14 = vweird.f32 %v6579_v39 }
 0x422   : > { %vm4234_vm1 = vmor %vm4232_vm0, %vm4233_vm14 }
 0x423   : > { %v6062_v24 = vmul.f32 -1.442695, %v3987_v47  ;;  %4267 = vst [vmem:[%s9300_s0 + $0x10] sm:$0xff] %v4259_v40  ;;  %v4229_v50 = vsub.f32 1.0, %v4228_v55  ;;  %v3974_v59 = vpop.f32.mrf.mxu3 }
 0x424   : > { %v3960_v56 = vpop.f32.mrf.mxu2 }
 0x425   : > { %v3961_v27 = vadd.f32 %v3960_v56, %v3947_v53  ;;  %6580 = vpow2.f32 %v6062_v24  ;;  %v4230_v3 = vmul.f32 %v6579_v39, %v4229_v50 }
 0x427   : > { %v3975_v1 = vadd.f32 %v3974_v59, %v3961_v27  ;;  %v4231_v9 = vadd.f32 %v6579_v39, %v4230_v3 }
 0x429   : > { %v3989_v5 = vadd.f32 %v3988_v4, %v3975_v1  ;;  %v4235_v6 = vsel %vm4234_vm1, %v6579_v39, %v4231_v9 }
 0x42a   : > { %v4240_v15 = vsel %vm4237_vm3, %v4239_v11, %v4235_v6 }
 0x42b   : > { %v6069_v12 = vmul.f32 -1.442695, %v3989_v5  ;;  %v6581_v13 = vpop.eup %6580  ;;  %v4263_v17 = vpack.c.bf16 %v4240_v15, %v4225_v14 }
 0x42c   : > { %v4039_v16 = vadd.f32 1.0, %v6581_v13 }
 0x42d   : > { %6582 = vpow2.f32 %v6069_v12  ;;  %4272 = vst [vmem:[%s9300_s0 + $0x2c] sm:$0xff] %v4263_v17 }
 0x42e   : > { %6584 = vrcp.f32 %v4039_v16  ;;  %v4148_v23 = vand.u32 2147483648, %v4039_v16  ;;  %v4146_v26 = vand.u32 2147483647, %v4039_v16  ;;  %vm4142_vm5 = vweird.f32 %v4039_v16 }
 0x430   : > { %v4149_v28 = vor.u32 1.1754944e-38, %v4148_v23  ;;  %vm4147_vm7 = vcmp.eq.f32.partialorder %v4146_v26, 8.507059e+37 }
 0x433   : > { %v6583_v18 = vpop.eup %6582 }
 0x434   : > { %v4046_v19 = vadd.f32 1.0, %v6583_v18  ;;  %v6585_v20 = vpop.eup %6584 }
 0x435   : > { %v4138_v21 = vmul.f32 %v6585_v20, %v4039_v16  ;;  %vm4143_vm4 = vweird.f32 %v6585_v20 }
 0x436   : > { %6586 = vrcp.f32 %v4046_v19  ;;  %vm4144_vm6 = vmor %vm4142_vm5, %vm4143_vm4  ;;  %v4253_v41 = vand.u32 2147483648, %v4046_v19  ;;  %v4251_v33 = vand.u32 2147483647, %v4046_v19  ;;  %vm4247_vm10 = vweird.f32 %v4046_v19 }
 0x437   : > { %v4139_v22 = vsub.f32 1.0, %v4138_v21 }
 0x438   : > { %v4254_v34 = vor.u32 1.1754944e-38, %v4253_v41  ;;  %vm4252_vm12 = vcmp.eq.f32.partialorder %v4251_v33, 8.507059e+37 }
 0x439   : > { %v4140_v25 = vmul.f32 %v6585_v20, %v4139_v22 }
 0x43b   : > { %v4141_v8 = vadd.f32 %v6585_v20, %v4140_v25 }
 0x43c   : > { %v6587_v61 = vpop.eup %6586 }
 0x43d   : > { %v4243_v29 = vmul.f32 %v6587_v61, %v4046_v19  ;;  %v4145_v30 = vsel %vm4144_vm6, %v6585_v20, %v4141_v8  ;;  %vm4248_vm9 = vweird.f32 %v6587_v61 }
 0x43e   : > { %v4150_v54 = vsel %vm4147_vm7, %v4149_v28, %v4145_v30  ;;  %vm4249_vm11 = vmor %vm4247_vm10, %vm4248_vm9 }
 0x43f   : > { %v4244_v31 = vsub.f32 1.0, %v4243_v29  ;;  %v4260_v32 = vpack.c.bf16 %v4150_v54, %v4150_v54 }
 0x441   : > { %v4245_v52 = vmul.f32 %v6587_v61, %v4244_v31  ;;  %4269 = vst.msk [vmem:[%s9300_s0 + $0x18] sm:$0xf] %vm4268_vm8, %v4260_v32 }
 0x443   : > { %v4246_v62 = vadd.f32 %v6587_v61, %v4245_v52 }
 0x445   : > { %v4250_v37 = vsel %vm4249_vm11, %v6587_v61, %v4246_v62 }
 0x446   : > { %v4255_v35 = vsel %vm4252_vm12, %v4254_v34, %v4250_v37 }
 0x447   : > { %v4264_v36 = vpack.c.bf16 %v4255_v35, %v4255_v35 }
 0x449   : > { %4273 = vst.msk [vmem:[%s9300_s0 + $0x34] sm:$0xf] %vm4268_vm8, %v4264_v36 }
 0x44a   : > { %6615 = shalt.err (!%p6612_p3)
}
 0x44b   : > { %s6653_s12 = smov 448   ;;  %s6654_s0 = smov 28  }
 0x44c   : > { %6485 = dma.vmem_to_hbm [thread:$0]  (%p6753_p5), %s4297_s21, 896, %s4299_s29, %s4278_s13, %s6653_s12, %s6653_s12, %s6654_s0  }
 0x44d PF: > { %p6491_p4 = scmp.ge.s32.totalorder %s6650_s20, 2  ;;  %s4317_s22 = sand.u32 1, %s6638_s17  }
 0x44e   : > { %s4318_s24 = scalar_lea.sflag [#allocation3], %s4317_s22 }
 0x44f   : > { %p6488_p7 = pnand %p6491_p4, %p6757_p6 }
 0x451   : > { %p6489_p8 = pneg %p6488_p7 }
 0x453   : > { %6633 = dma.done.wait (%p6489_p8), %s4318_s24, 896  }
 0x454   : > { %6635 = vsyncadd (%p6489_p8), %s4318_s24, 4294966400  ;;  %s9476_s20 = sld [smem:[#allocation6_spill]]  ;;  %s9479_s17 = smov %s6642_s18 }
 0x455   : > { %s9477_s23 = sld [smem:[#allocation5_spill]] }
 0x456   : > { %s9478_s19 = sld [smem:[#allocation7_spill]] }
 0x45a   : > { %p22_p9 = scmp.ge.s32.totalorder %s9476_s20, 6  }
 0x45b   : > { %s9480_s18 = smov %s9477_s23 }
 0x45c   :  { %24 = sbr.rel (!%p22_p9) target bundleno = 5 (0x5), region = 110 }
 0x461   :  { %4332 = vsyncpa [#allocation3], 1 }
 0x462   :  { %4334 = vsyncpa [#allocation3 + $0x1], 1 }

</bundles_post_ra>
